<compile_context>
chip_gen: v7x
topology: tpu7x:2x2x1
jax: 0.10.0
libtpu: 0.0.40
codegen_flags: <defaults>
</compile_context>

<pallas_src>
import jax
import jax.numpy as jnp
from jax.experimental import pallas as pl
from jax.experimental.pallas import tpu as pltpu

LANE = 128     # vreg lane width
SUBLANE = 8    # vreg sublane width


def _round_up(n, m):
    return ((n + m - 1) // m) * m


# ---------------------------------------------------------------------------
# Fused kernel: n_layer LSTM layers over T timesteps + Linear classifier
# ---------------------------------------------------------------------------
def make_fused_kernel(n_layer, T, H_pad):
    def kernel(x_ref, *rest):
        # rest = [w0, b0, w1, b1, ..., w_{L-1}, b_{L-1}, wc, bc, out]
        wc_ref = rest[2 * n_layer]
        bc_ref = rest[2 * n_layer + 1]
        out_ref = rest[2 * n_layer + 2]

        x_all = x_ref[...]                      # (B_pad, T, Din_pad), batch-first
        B = x_all.shape[0]
        seq = [x_all[:, t, :] for t in range(T)]   # static slices, T is small/static

        for l in range(n_layer):
            w = rest[2 * l][...]                # (Kin_pad + H_pad, 4*H_pad)
            b = rest[2 * l + 1][...]            # (1, 4*H_pad)
            h = jnp.zeros((B, H_pad), jnp.float32)
            c = jnp.zeros((B, H_pad), jnp.float32)
            nxt = []
            for t in range(T):                  # fully unrolled recurrence
                xh = jnp.concatenate([seq[t], h], axis=-1)      # lane-aligned concat
                gates = jnp.dot(xh, w, preferred_element_type=jnp.float32) + b
                # each gate occupies a full 128-lane block -> full-vreg slices
                i_g = jax.nn.sigmoid(gates[:, 0 * H_pad:1 * H_pad])
                f_g = jax.nn.sigmoid(gates[:, 1 * H_pad:2 * H_pad])
                g_g = jnp.tanh(gates[:, 2 * H_pad:3 * H_pad])
                o_g = jax.nn.sigmoid(gates[:, 3 * H_pad:4 * H_pad])
                c = f_g * c + i_g * g_g
                h = o_g * jnp.tanh(c)
                nxt.append(h)
            seq = nxt                            # feed next layer (stays in VMEM/vregs)

        last = seq[-1]                           # == out[:, -1, :] in PyTorch
        out_ref[...] = (
            jnp.dot(last, wc_ref[...], preferred_element_type=jnp.float32)
            + bc_ref[...]
        )

    return kernel


# ---------------------------------------------------------------------------
# Parameter packing: PyTorch layout -> padded, gate-lane-aligned kernel layout
# ---------------------------------------------------------------------------
def pack_params(params, hidden_dim, n_class):
    """Merge (W_ih, W_hh) per layer into one (Kin_pad + H_pad, 4*H_pad) matrix,
    fold b_ih + b_hh, pad every gate block to 128 lanes with zeros."""
    H = hidden_dim
    H_pad = _round_up(H, LANE)
    C_pad = _round_up(n_class, LANE)

    layers = []
    for (w_ih, w_hh, b_ih, b_hh) in params["lstm"]:
        din = w_ih.shape[1]
        din_pad = _round_up(din, LANE)
        w = jnp.zeros((din_pad + H_pad, 4 * H_pad), jnp.float32)
        b = jnp.zeros((1, 4 * H_pad), jnp.float32)
        for g in range(4):
            w = w.at[:din, g * H_pad:g * H_pad + H].set(w_ih[g * H:(g + 1) * H, :].T)
            w = w.at[din_pad:din_pad + H, g * H_pad:g * H_pad + H].set(
                w_hh[g * H:(g + 1) * H, :].T)
            b = b.at[0, g * H_pad:g * H_pad + H].set(
                b_ih[g * H:(g + 1) * H] + b_hh[g * H:(g + 1) * H])
        layers.append((w, b))

    wc = jnp.zeros((H_pad, C_pad), jnp.float32).at[:H, :n_class].set(params["wc"].T)
    bc = jnp.zeros((1, C_pad), jnp.float32).at[0, :n_class].set(params["bc"])
    return layers, wc, bc


# ---------------------------------------------------------------------------
# Wrapper
# ---------------------------------------------------------------------------
def rnn_network_forward(x_btd, params, hidden_dim, n_class):
    """Forward pass of RNNNetword.  x_btd: (B, T, in_dim) -> (B, n_class)."""
    B, T, in_dim = x_btd.shape
    H_pad = _round_up(hidden_dim, LANE)
    D_pad = _round_up(in_dim, LANE)
    C_pad = _round_up(n_class, LANE)
    B_pad = _round_up(B, SUBLANE)

    layers, wc, bc = pack_params(params, hidden_dim, n_class)
    n_layer = len(layers)

    # pad batch to sublane width and feature dim to lane width (zeros)
    x_pad = jnp.zeros((B_pad, T, D_pad), jnp.float32).at[:B, :, :in_dim].set(x_btd)

    flat_args = [x_pad]
    for (w, b) in layers:
        flat_args += [w, b]
    flat_args += [wc, bc]

    vmem_spec = pl.BlockSpec(memory_space=pltpu.MemorySpace.VMEM)
    out = pl.pallas_call(
        make_fused_kernel(n_layer, T, H_pad),
        out_shape=jax.ShapeDtypeStruct((B_pad, C_pad), jnp.float32),
        in_specs=[vmem_spec] * len(flat_args),
        out_specs=vmem_spec,
    )(*flat_args)
    return out[:B, :n_class]


# ---------------------------------------------------------------------------
# Pure-JAX reference (PyTorch-layout params, for correctness check)
# ---------------------------------------------------------------------------
def rnn_network_ref(x_btd, params):
    B, T, _ = x_btd.shape
    seq = x_btd
    for (w_ih, w_hh, b_ih, b_hh) in params["lstm"]:
        H = w_hh.shape[1]
        h = jnp.zeros((B, H), jnp.float32)
        c = jnp.zeros((B, H), jnp.float32)
        outs = []
        for t in range(T):
            gates = seq[:, t, :] @ w_ih.T + h @ w_hh.T + b_ih + b_hh
            i_g = jax.nn.sigmoid(gates[:, 0 * H:1 * H])
            f_g = jax.nn.sigmoid(gates[:, 1 * H:2 * H])
            g_g = jnp.tanh(gates[:, 2 * H:3 * H])
            o_g = jax.nn.sigmoid(gates[:, 3 * H:4 * H])
            c = f_g * c + i_g * g_g
            h = o_g * jnp.tanh(c)
            outs.append(h)
        seq = jnp.stack(outs, axis=1)
    return seq[:, -1, :] @ params["wc"].T + params["bc"]


# ---------------------------------------------------------------------------
# Deterministic parameter init (mirrors nn.LSTM / nn.Linear shapes & layout)
# ---------------------------------------------------------------------------
def make_params(key, in_dim, hidden_dim, n_layer, n_class):
    def uni(k, shape, bound):
        return jax.random.uniform(k, shape, jnp.float32, -bound, bound)

    bound = 1.0 / float(jnp.sqrt(jnp.float32(hidden_dim)))
    lstm = []
    for layer in range(n_layer):
        din = in_dim if layer == 0 else hidden_dim
        key, k1, k2, k3, k4 = jax.random.split(key, 5)
        w_ih = uni(k1, (4 * hidden_dim, din), bound)        # PyTorch (4H, Din)
        w_hh = uni(k2, (4 * hidden_dim, hidden_dim), bound)  # PyTorch (4H, H)
        b_ih = uni(k3, (4 * hidden_dim,), bound)
        b_hh = uni(k4, (4 * hidden_dim,), bound)
        lstm.append((w_ih, w_hh, b_ih, b_hh))
    key, k1, k2 = jax.random.split(key, 3)
    wc = uni(k1, (n_class, hidden_dim), bound)               # PyTorch (C, H)
    bc = uni(k2, (n_class,), bound)
    return {"lstm": lstm, "wc": wc, "bc": bc}


# ---------------------------------------------------------------------------
if __name__ == "__main__":
    B, T = 2, 8
    in_dim = 16
    hidden_dim = 32
    n_layer = 2
    n_class = 10

    key = jax.random.PRNGKey(0)
    key, kx, kp = jax.random.split(key, 3)
    x = jax.random.normal(kx, (B, T, in_dim), jnp.float32)
    params = make_params(kp, in_dim, hidden_dim, n_layer, n_class)

    out = jax.block_until_ready(rnn_network_forward(x, params, hidden_dim, n_class))
    ref = jax.block_until_ready(rnn_network_ref(x, params))

    assert out.shape == (B, n_class), out.shape
    assert jnp.allclose(out, ref, rtol=1e-5, atol=3e-5), (
        f"mismatch: max abs diff {jnp.max(jnp.abs(out - ref))}"
    )
    print("KERNEL_OK")
</pallas_src>

<mosaic_0001>
module attributes {stable_mosaic.version = 11 : i64} {
  func.func @kernel(%arg0: memref<8x8x128xf32, #tpu.memory_space<vmem>>, %arg1: memref<256x512xf32, #tpu.memory_space<vmem>>, %arg2: memref<1x512xf32, #tpu.memory_space<vmem>>, %arg3: memref<256x512xf32, #tpu.memory_space<vmem>>, %arg4: memref<1x512xf32, #tpu.memory_space<vmem>>, %arg5: memref<128x128xf32, #tpu.memory_space<vmem>>, %arg6: memref<1x128xf32, #tpu.memory_space<vmem>>, %arg7: memref<8x128xf32, #tpu.memory_space<vmem>>) attributes {dimension_semantics = [], scalar_prefetch = 0 : i64, scratch_operands = 0 : i64, tpu.core_type = #tpu.core_type<tc>} {
    %c0 = arith.constant 0 : index
    %c0_0 = arith.constant 0 : index
    %c0_1 = arith.constant 0 : index
    %0 = vector.load %arg0[%c0, %c0_0, %c0_1] : memref<8x8x128xf32, #tpu.memory_space<vmem>>, vector<8x8x128xf32>
    %1 = vector.extract_strided_slice %0 {offsets = [0, 0, 0], sizes = [8, 1, 128], strides = [1, 1, 1]} : vector<8x8x128xf32> to vector<8x1x128xf32>
    %2 = vector.shape_cast %1 : vector<8x1x128xf32> to vector<8x128xf32>
    %3 = vector.extract_strided_slice %0 {offsets = [0, 1, 0], sizes = [8, 1, 128], strides = [1, 1, 1]} : vector<8x8x128xf32> to vector<8x1x128xf32>
    %4 = vector.shape_cast %3 : vector<8x1x128xf32> to vector<8x128xf32>
    %5 = vector.extract_strided_slice %0 {offsets = [0, 2, 0], sizes = [8, 1, 128], strides = [1, 1, 1]} : vector<8x8x128xf32> to vector<8x1x128xf32>
    %6 = vector.shape_cast %5 : vector<8x1x128xf32> to vector<8x128xf32>
    %7 = vector.extract_strided_slice %0 {offsets = [0, 3, 0], sizes = [8, 1, 128], strides = [1, 1, 1]} : vector<8x8x128xf32> to vector<8x1x128xf32>
    %8 = vector.shape_cast %7 : vector<8x1x128xf32> to vector<8x128xf32>
    %9 = vector.extract_strided_slice %0 {offsets = [0, 4, 0], sizes = [8, 1, 128], strides = [1, 1, 1]} : vector<8x8x128xf32> to vector<8x1x128xf32>
    %10 = vector.shape_cast %9 : vector<8x1x128xf32> to vector<8x128xf32>
    %11 = vector.extract_strided_slice %0 {offsets = [0, 5, 0], sizes = [8, 1, 128], strides = [1, 1, 1]} : vector<8x8x128xf32> to vector<8x1x128xf32>
    %12 = vector.shape_cast %11 : vector<8x1x128xf32> to vector<8x128xf32>
    %13 = vector.extract_strided_slice %0 {offsets = [0, 6, 0], sizes = [8, 1, 128], strides = [1, 1, 1]} : vector<8x8x128xf32> to vector<8x1x128xf32>
    %14 = vector.shape_cast %13 : vector<8x1x128xf32> to vector<8x128xf32>
    %15 = vector.extract_strided_slice %0 {offsets = [0, 7, 0], sizes = [8, 1, 128], strides = [1, 1, 1]} : vector<8x8x128xf32> to vector<8x1x128xf32>
    %16 = vector.shape_cast %15 : vector<8x1x128xf32> to vector<8x128xf32>
    %c0_2 = arith.constant 0 : index
    %c0_3 = arith.constant 0 : index
    %17 = vector.load %arg1[%c0_2, %c0_3] : memref<256x512xf32, #tpu.memory_space<vmem>>, vector<256x512xf32>
    %c0_4 = arith.constant 0 : index
    %c0_5 = arith.constant 0 : index
    %18 = vector.load %arg2[%c0_4, %c0_5] : memref<1x512xf32, #tpu.memory_space<vmem>>, vector<1x512xf32>
    %cst = arith.constant 0.000000e+00 : f32
    %19 = vector.broadcast %cst : f32 to vector<8x128xf32>
    %cst_6 = arith.constant 0.000000e+00 : f32
    %20 = vector.broadcast %cst_6 : f32 to vector<8x128xf32>
    %21 = tpu.concatenate %2, %19 in 1 : vector<8x128xf32>, vector<8x128xf32> -> vector<8x256xf32>
    %cst_7 = arith.constant dense<0.000000e+00> : vector<8x512xf32>
    %22 = tpu.matmul %21, %17, %cst_7 {dimension_numbers = #tpu.dot_dimension_numbers<[1], [0], [0], [1], [0, 0, 1, 1], [], []>} : vector<8x256xf32>, vector<256x512xf32>, vector<8x512xf32> -> vector<8x512xf32>
    %23 = vector.broadcast %18 : vector<1x512xf32> to vector<8x512xf32>
    %24 = arith.addf %22, %23 : vector<8x512xf32>
    %25 = vector.extract_strided_slice %24 {offsets = [0, 0], sizes = [8, 128], strides = [1, 1]} : vector<8x512xf32> to vector<8x128xf32>
    %26 = arith.negf %25 : vector<8x128xf32>
    %27 = math.exp %26 : vector<8x128xf32>
    %cst_8 = arith.constant 1.000000e+00 : f32
    %28 = vector.broadcast %cst_8 : f32 to vector<8x128xf32>
    %29 = arith.addf %28, %27 : vector<8x128xf32>
    %30 = arith.divf %28, %29 : vector<8x128xf32>
    %31 = vector.extract_strided_slice %24 {offsets = [0, 128], sizes = [8, 128], strides = [1, 1]} : vector<8x512xf32> to vector<8x128xf32>
    %32 = arith.negf %31 : vector<8x128xf32>
    %33 = math.exp %32 : vector<8x128xf32>
    %cst_9 = arith.constant 1.000000e+00 : f32
    %34 = vector.broadcast %cst_9 : f32 to vector<8x128xf32>
    %35 = arith.addf %34, %33 : vector<8x128xf32>
    %36 = arith.divf %34, %35 : vector<8x128xf32>
    %37 = vector.extract_strided_slice %24 {offsets = [0, 256], sizes = [8, 128], strides = [1, 1]} : vector<8x512xf32> to vector<8x128xf32>
    %38 = math.tanh %37 : vector<8x128xf32>
    %39 = vector.extract_strided_slice %24 {offsets = [0, 384], sizes = [8, 128], strides = [1, 1]} : vector<8x512xf32> to vector<8x128xf32>
    %40 = arith.negf %39 : vector<8x128xf32>
    %41 = math.exp %40 : vector<8x128xf32>
    %cst_10 = arith.constant 1.000000e+00 : f32
    %42 = vector.broadcast %cst_10 : f32 to vector<8x128xf32>
    %43 = arith.addf %42, %41 : vector<8x128xf32>
    %44 = arith.divf %42, %43 : vector<8x128xf32>
    %45 = arith.mulf %36, %20 : vector<8x128xf32>
    %46 = arith.mulf %30, %38 : vector<8x128xf32>
    %47 = arith.addf %45, %46 : vector<8x128xf32>
    %48 = math.tanh %47 : vector<8x128xf32>
    %49 = arith.mulf %44, %48 : vector<8x128xf32>
    %50 = tpu.concatenate %4, %49 in 1 : vector<8x128xf32>, vector<8x128xf32> -> vector<8x256xf32>
    %cst_11 = arith.constant dense<0.000000e+00> : vector<8x512xf32>
    %51 = tpu.matmul %50, %17, %cst_11 {dimension_numbers = #tpu.dot_dimension_numbers<[1], [0], [0], [1], [0, 0, 1, 1], [], []>} : vector<8x256xf32>, vector<256x512xf32>, vector<8x512xf32> -> vector<8x512xf32>
    %52 = vector.broadcast %18 : vector<1x512xf32> to vector<8x512xf32>
    %53 = arith.addf %51, %52 : vector<8x512xf32>
    %54 = vector.extract_strided_slice %53 {offsets = [0, 0], sizes = [8, 128], strides = [1, 1]} : vector<8x512xf32> to vector<8x128xf32>
    %55 = arith.negf %54 : vector<8x128xf32>
    %56 = math.exp %55 : vector<8x128xf32>
    %cst_12 = arith.constant 1.000000e+00 : f32
    %57 = vector.broadcast %cst_12 : f32 to vector<8x128xf32>
    %58 = arith.addf %57, %56 : vector<8x128xf32>
    %59 = arith.divf %57, %58 : vector<8x128xf32>
    %60 = vector.extract_strided_slice %53 {offsets = [0, 128], sizes = [8, 128], strides = [1, 1]} : vector<8x512xf32> to vector<8x128xf32>
    %61 = arith.negf %60 : vector<8x128xf32>
    %62 = math.exp %61 : vector<8x128xf32>
    %cst_13 = arith.constant 1.000000e+00 : f32
    %63 = vector.broadcast %cst_13 : f32 to vector<8x128xf32>
    %64 = arith.addf %63, %62 : vector<8x128xf32>
    %65 = arith.divf %63, %64 : vector<8x128xf32>
    %66 = vector.extract_strided_slice %53 {offsets = [0, 256], sizes = [8, 128], strides = [1, 1]} : vector<8x512xf32> to vector<8x128xf32>
    %67 = math.tanh %66 : vector<8x128xf32>
    %68 = vector.extract_strided_slice %53 {offsets = [0, 384], sizes = [8, 128], strides = [1, 1]} : vector<8x512xf32> to vector<8x128xf32>
    %69 = arith.negf %68 : vector<8x128xf32>
    %70 = math.exp %69 : vector<8x128xf32>
    %cst_14 = arith.constant 1.000000e+00 : f32
    %71 = vector.broadcast %cst_14 : f32 to vector<8x128xf32>
    %72 = arith.addf %71, %70 : vector<8x128xf32>
    %73 = arith.divf %71, %72 : vector<8x128xf32>
    %74 = arith.mulf %65, %47 : vector<8x128xf32>
    %75 = arith.mulf %59, %67 : vector<8x128xf32>
    %76 = arith.addf %74, %75 : vector<8x128xf32>
    %77 = math.tanh %76 : vector<8x128xf32>
    %78 = arith.mulf %73, %77 : vector<8x128xf32>
    %79 = tpu.concatenate %6, %78 in 1 : vector<8x128xf32>, vector<8x128xf32> -> vector<8x256xf32>
    %cst_15 = arith.constant dense<0.000000e+00> : vector<8x512xf32>
    %80 = tpu.matmul %79, %17, %cst_15 {dimension_numbers = #tpu.dot_dimension_numbers<[1], [0], [0], [1], [0, 0, 1, 1], [], []>} : vector<8x256xf32>, vector<256x512xf32>, vector<8x512xf32> -> vector<8x512xf32>
    %81 = vector.broadcast %18 : vector<1x512xf32> to vector<8x512xf32>
    %82 = arith.addf %80, %81 : vector<8x512xf32>
    %83 = vector.extract_strided_slice %82 {offsets = [0, 0], sizes = [8, 128], strides = [1, 1]} : vector<8x512xf32> to vector<8x128xf32>
    %84 = arith.negf %83 : vector<8x128xf32>
    %85 = math.exp %84 : vector<8x128xf32>
    %cst_16 = arith.constant 1.000000e+00 : f32
    %86 = vector.broadcast %cst_16 : f32 to vector<8x128xf32>
    %87 = arith.addf %86, %85 : vector<8x128xf32>
    %88 = arith.divf %86, %87 : vector<8x128xf32>
    %89 = vector.extract_strided_slice %82 {offsets = [0, 128], sizes = [8, 128], strides = [1, 1]} : vector<8x512xf32> to vector<8x128xf32>
    %90 = arith.negf %89 : vector<8x128xf32>
    %91 = math.exp %90 : vector<8x128xf32>
    %cst_17 = arith.constant 1.000000e+00 : f32
    %92 = vector.broadcast %cst_17 : f32 to vector<8x128xf32>
    %93 = arith.addf %92, %91 : vector<8x128xf32>
    %94 = arith.divf %92, %93 : vector<8x128xf32>
    %95 = vector.extract_strided_slice %82 {offsets = [0, 256], sizes = [8, 128], strides = [1, 1]} : vector<8x512xf32> to vector<8x128xf32>
    %96 = math.tanh %95 : vector<8x128xf32>
    %97 = vector.extract_strided_slice %82 {offsets = [0, 384], sizes = [8, 128], strides = [1, 1]} : vector<8x512xf32> to vector<8x128xf32>
    %98 = arith.negf %97 : vector<8x128xf32>
    %99 = math.exp %98 : vector<8x128xf32>
    %cst_18 = arith.constant 1.000000e+00 : f32
    %100 = vector.broadcast %cst_18 : f32 to vector<8x128xf32>
    %101 = arith.addf %100, %99 : vector<8x128xf32>
    %102 = arith.divf %100, %101 : vector<8x128xf32>
    %103 = arith.mulf %94, %76 : vector<8x128xf32>
    %104 = arith.mulf %88, %96 : vector<8x128xf32>
    %105 = arith.addf %103, %104 : vector<8x128xf32>
    %106 = math.tanh %105 : vector<8x128xf32>
    %107 = arith.mulf %102, %106 : vector<8x128xf32>
    %108 = tpu.concatenate %8, %107 in 1 : vector<8x128xf32>, vector<8x128xf32> -> vector<8x256xf32>
    %cst_19 = arith.constant dense<0.000000e+00> : vector<8x512xf32>
    %109 = tpu.matmul %108, %17, %cst_19 {dimension_numbers = #tpu.dot_dimension_numbers<[1], [0], [0], [1], [0, 0, 1, 1], [], []>} : vector<8x256xf32>, vector<256x512xf32>, vector<8x512xf32> -> vector<8x512xf32>
    %110 = vector.broadcast %18 : vector<1x512xf32> to vector<8x512xf32>
    %111 = arith.addf %109, %110 : vector<8x512xf32>
    %112 = vector.extract_strided_slice %111 {offsets = [0, 0], sizes = [8, 128], strides = [1, 1]} : vector<8x512xf32> to vector<8x128xf32>
    %113 = arith.negf %112 : vector<8x128xf32>
    %114 = math.exp %113 : vector<8x128xf32>
    %cst_20 = arith.constant 1.000000e+00 : f32
    %115 = vector.broadcast %cst_20 : f32 to vector<8x128xf32>
    %116 = arith.addf %115, %114 : vector<8x128xf32>
    %117 = arith.divf %115, %116 : vector<8x128xf32>
    %118 = vector.extract_strided_slice %111 {offsets = [0, 128], sizes = [8, 128], strides = [1, 1]} : vector<8x512xf32> to vector<8x128xf32>
    %119 = arith.negf %118 : vector<8x128xf32>
    %120 = math.exp %119 : vector<8x128xf32>
    %cst_21 = arith.constant 1.000000e+00 : f32
    %121 = vector.broadcast %cst_21 : f32 to vector<8x128xf32>
    %122 = arith.addf %121, %120 : vector<8x128xf32>
    %123 = arith.divf %121, %122 : vector<8x128xf32>
    %124 = vector.extract_strided_slice %111 {offsets = [0, 256], sizes = [8, 128], strides = [1, 1]} : vector<8x512xf32> to vector<8x128xf32>
    %125 = math.tanh %124 : vector<8x128xf32>
    %126 = vector.extract_strided_slice %111 {offsets = [0, 384], sizes = [8, 128], strides = [1, 1]} : vector<8x512xf32> to vector<8x128xf32>
    %127 = arith.negf %126 : vector<8x128xf32>
    %128 = math.exp %127 : vector<8x128xf32>
    %cst_22 = arith.constant 1.000000e+00 : f32
    %129 = vector.broadcast %cst_22 : f32 to vector<8x128xf32>
    %130 = arith.addf %129, %128 : vector<8x128xf32>
    %131 = arith.divf %129, %130 : vector<8x128xf32>
    %132 = arith.mulf %123, %105 : vector<8x128xf32>
    %133 = arith.mulf %117, %125 : vector<8x128xf32>
    %134 = arith.addf %132, %133 : vector<8x128xf32>
    %135 = math.tanh %134 : vector<8x128xf32>
    %136 = arith.mulf %131, %135 : vector<8x128xf32>
    %137 = tpu.concatenate %10, %136 in 1 : vector<8x128xf32>, vector<8x128xf32> -> vector<8x256xf32>
    %cst_23 = arith.constant dense<0.000000e+00> : vector<8x512xf32>
    %138 = tpu.matmul %137, %17, %cst_23 {dimension_numbers = #tpu.dot_dimension_numbers<[1], [0], [0], [1], [0, 0, 1, 1], [], []>} : vector<8x256xf32>, vector<256x512xf32>, vector<8x512xf32> -> vector<8x512xf32>
    %139 = vector.broadcast %18 : vector<1x512xf32> to vector<8x512xf32>
    %140 = arith.addf %138, %139 : vector<8x512xf32>
    %141 = vector.extract_strided_slice %140 {offsets = [0, 0], sizes = [8, 128], strides = [1, 1]} : vector<8x512xf32> to vector<8x128xf32>
    %142 = arith.negf %141 : vector<8x128xf32>
    %143 = math.exp %142 : vector<8x128xf32>
    %cst_24 = arith.constant 1.000000e+00 : f32
    %144 = vector.broadcast %cst_24 : f32 to vector<8x128xf32>
    %145 = arith.addf %144, %143 : vector<8x128xf32>
    %146 = arith.divf %144, %145 : vector<8x128xf32>
    %147 = vector.extract_strided_slice %140 {offsets = [0, 128], sizes = [8, 128], strides = [1, 1]} : vector<8x512xf32> to vector<8x128xf32>
    %148 = arith.negf %147 : vector<8x128xf32>
    %149 = math.exp %148 : vector<8x128xf32>
    %cst_25 = arith.constant 1.000000e+00 : f32
    %150 = vector.broadcast %cst_25 : f32 to vector<8x128xf32>
    %151 = arith.addf %150, %149 : vector<8x128xf32>
    %152 = arith.divf %150, %151 : vector<8x128xf32>
    %153 = vector.extract_strided_slice %140 {offsets = [0, 256], sizes = [8, 128], strides = [1, 1]} : vector<8x512xf32> to vector<8x128xf32>
    %154 = math.tanh %153 : vector<8x128xf32>
    %155 = vector.extract_strided_slice %140 {offsets = [0, 384], sizes = [8, 128], strides = [1, 1]} : vector<8x512xf32> to vector<8x128xf32>
    %156 = arith.negf %155 : vector<8x128xf32>
    %157 = math.exp %156 : vector<8x128xf32>
    %cst_26 = arith.constant 1.000000e+00 : f32
    %158 = vector.broadcast %cst_26 : f32 to vector<8x128xf32>
    %159 = arith.addf %158, %157 : vector<8x128xf32>
    %160 = arith.divf %158, %159 : vector<8x128xf32>
    %161 = arith.mulf %152, %134 : vector<8x128xf32>
    %162 = arith.mulf %146, %154 : vector<8x128xf32>
    %163 = arith.addf %161, %162 : vector<8x128xf32>
    %164 = math.tanh %163 : vector<8x128xf32>
    %165 = arith.mulf %160, %164 : vector<8x128xf32>
    %166 = tpu.concatenate %12, %165 in 1 : vector<8x128xf32>, vector<8x128xf32> -> vector<8x256xf32>
    %cst_27 = arith.constant dense<0.000000e+00> : vector<8x512xf32>
    %167 = tpu.matmul %166, %17, %cst_27 {dimension_numbers = #tpu.dot_dimension_numbers<[1], [0], [0], [1], [0, 0, 1, 1], [], []>} : vector<8x256xf32>, vector<256x512xf32>, vector<8x512xf32> -> vector<8x512xf32>
    %168 = vector.broadcast %18 : vector<1x512xf32> to vector<8x512xf32>
    %169 = arith.addf %167, %168 : vector<8x512xf32>
    %170 = vector.extract_strided_slice %169 {offsets = [0, 0], sizes = [8, 128], strides = [1, 1]} : vector<8x512xf32> to vector<8x128xf32>
    %171 = arith.negf %170 : vector<8x128xf32>
    %172 = math.exp %171 : vector<8x128xf32>
    %cst_28 = arith.constant 1.000000e+00 : f32
    %173 = vector.broadcast %cst_28 : f32 to vector<8x128xf32>
    %174 = arith.addf %173, %172 : vector<8x128xf32>
    %175 = arith.divf %173, %174 : vector<8x128xf32>
    %176 = vector.extract_strided_slice %169 {offsets = [0, 128], sizes = [8, 128], strides = [1, 1]} : vector<8x512xf32> to vector<8x128xf32>
    %177 = arith.negf %176 : vector<8x128xf32>
    %178 = math.exp %177 : vector<8x128xf32>
    %cst_29 = arith.constant 1.000000e+00 : f32
    %179 = vector.broadcast %cst_29 : f32 to vector<8x128xf32>
    %180 = arith.addf %179, %178 : vector<8x128xf32>
    %181 = arith.divf %179, %180 : vector<8x128xf32>
    %182 = vector.extract_strided_slice %169 {offsets = [0, 256], sizes = [8, 128], strides = [1, 1]} : vector<8x512xf32> to vector<8x128xf32>
    %183 = math.tanh %182 : vector<8x128xf32>
    %184 = vector.extract_strided_slice %169 {offsets = [0, 384], sizes = [8, 128], strides = [1, 1]} : vector<8x512xf32> to vector<8x128xf32>
    %185 = arith.negf %184 : vector<8x128xf32>
    %186 = math.exp %185 : vector<8x128xf32>
    %cst_30 = arith.constant 1.000000e+00 : f32
    %187 = vector.broadcast %cst_30 : f32 to vector<8x128xf32>
    %188 = arith.addf %187, %186 : vector<8x128xf32>
    %189 = arith.divf %187, %188 : vector<8x128xf32>
    %190 = arith.mulf %181, %163 : vector<8x128xf32>
    %191 = arith.mulf %175, %183 : vector<8x128xf32>
    %192 = arith.addf %190, %191 : vector<8x128xf32>
    %193 = math.tanh %192 : vector<8x128xf32>
    %194 = arith.mulf %189, %193 : vector<8x128xf32>
    %195 = tpu.concatenate %14, %194 in 1 : vector<8x128xf32>, vector<8x128xf32> -> vector<8x256xf32>
    %cst_31 = arith.constant dense<0.000000e+00> : vector<8x512xf32>
    %196 = tpu.matmul %195, %17, %cst_31 {dimension_numbers = #tpu.dot_dimension_numbers<[1], [0], [0], [1], [0, 0, 1, 1], [], []>} : vector<8x256xf32>, vector<256x512xf32>, vector<8x512xf32> -> vector<8x512xf32>
    %197 = vector.broadcast %18 : vector<1x512xf32> to vector<8x512xf32>
    %198 = arith.addf %196, %197 : vector<8x512xf32>
    %199 = vector.extract_strided_slice %198 {offsets = [0, 0], sizes = [8, 128], strides = [1, 1]} : vector<8x512xf32> to vector<8x128xf32>
    %200 = arith.negf %199 : vector<8x128xf32>
    %201 = math.exp %200 : vector<8x128xf32>
    %cst_32 = arith.constant 1.000000e+00 : f32
    %202 = vector.broadcast %cst_32 : f32 to vector<8x128xf32>
    %203 = arith.addf %202, %201 : vector<8x128xf32>
    %204 = arith.divf %202, %203 : vector<8x128xf32>
    %205 = vector.extract_strided_slice %198 {offsets = [0, 128], sizes = [8, 128], strides = [1, 1]} : vector<8x512xf32> to vector<8x128xf32>
    %206 = arith.negf %205 : vector<8x128xf32>
    %207 = math.exp %206 : vector<8x128xf32>
    %cst_33 = arith.constant 1.000000e+00 : f32
    %208 = vector.broadcast %cst_33 : f32 to vector<8x128xf32>
    %209 = arith.addf %208, %207 : vector<8x128xf32>
    %210 = arith.divf %208, %209 : vector<8x128xf32>
    %211 = vector.extract_strided_slice %198 {offsets = [0, 256], sizes = [8, 128], strides = [1, 1]} : vector<8x512xf32> to vector<8x128xf32>
    %212 = math.tanh %211 : vector<8x128xf32>
    %213 = vector.extract_strided_slice %198 {offsets = [0, 384], sizes = [8, 128], strides = [1, 1]} : vector<8x512xf32> to vector<8x128xf32>
    %214 = arith.negf %213 : vector<8x128xf32>
    %215 = math.exp %214 : vector<8x128xf32>
    %cst_34 = arith.constant 1.000000e+00 : f32
    %216 = vector.broadcast %cst_34 : f32 to vector<8x128xf32>
    %217 = arith.addf %216, %215 : vector<8x128xf32>
    %218 = arith.divf %216, %217 : vector<8x128xf32>
    %219 = arith.mulf %210, %192 : vector<8x128xf32>
    %220 = arith.mulf %204, %212 : vector<8x128xf32>
    %221 = arith.addf %219, %220 : vector<8x128xf32>
    %222 = math.tanh %221 : vector<8x128xf32>
    %223 = arith.mulf %218, %222 : vector<8x128xf32>
    %224 = tpu.concatenate %16, %223 in 1 : vector<8x128xf32>, vector<8x128xf32> -> vector<8x256xf32>
    %cst_35 = arith.constant dense<0.000000e+00> : vector<8x512xf32>
    %225 = tpu.matmul %224, %17, %cst_35 {dimension_numbers = #tpu.dot_dimension_numbers<[1], [0], [0], [1], [0, 0, 1, 1], [], []>} : vector<8x256xf32>, vector<256x512xf32>, vector<8x512xf32> -> vector<8x512xf32>
    %226 = vector.broadcast %18 : vector<1x512xf32> to vector<8x512xf32>
    %227 = arith.addf %225, %226 : vector<8x512xf32>
    %228 = vector.extract_strided_slice %227 {offsets = [0, 0], sizes = [8, 128], strides = [1, 1]} : vector<8x512xf32> to vector<8x128xf32>
    %229 = arith.negf %228 : vector<8x128xf32>
    %230 = math.exp %229 : vector<8x128xf32>
    %cst_36 = arith.constant 1.000000e+00 : f32
    %231 = vector.broadcast %cst_36 : f32 to vector<8x128xf32>
    %232 = arith.addf %231, %230 : vector<8x128xf32>
    %233 = arith.divf %231, %232 : vector<8x128xf32>
    %234 = vector.extract_strided_slice %227 {offsets = [0, 128], sizes = [8, 128], strides = [1, 1]} : vector<8x512xf32> to vector<8x128xf32>
    %235 = arith.negf %234 : vector<8x128xf32>
    %236 = math.exp %235 : vector<8x128xf32>
    %cst_37 = arith.constant 1.000000e+00 : f32
    %237 = vector.broadcast %cst_37 : f32 to vector<8x128xf32>
    %238 = arith.addf %237, %236 : vector<8x128xf32>
    %239 = arith.divf %237, %238 : vector<8x128xf32>
    %240 = vector.extract_strided_slice %227 {offsets = [0, 256], sizes = [8, 128], strides = [1, 1]} : vector<8x512xf32> to vector<8x128xf32>
    %241 = math.tanh %240 : vector<8x128xf32>
    %242 = vector.extract_strided_slice %227 {offsets = [0, 384], sizes = [8, 128], strides = [1, 1]} : vector<8x512xf32> to vector<8x128xf32>
    %243 = arith.negf %242 : vector<8x128xf32>
    %244 = math.exp %243 : vector<8x128xf32>
    %cst_38 = arith.constant 1.000000e+00 : f32
    %245 = vector.broadcast %cst_38 : f32 to vector<8x128xf32>
    %246 = arith.addf %245, %244 : vector<8x128xf32>
    %247 = arith.divf %245, %246 : vector<8x128xf32>
    %248 = arith.mulf %239, %221 : vector<8x128xf32>
    %249 = arith.mulf %233, %241 : vector<8x128xf32>
    %250 = arith.addf %248, %249 : vector<8x128xf32>
    %251 = math.tanh %250 : vector<8x128xf32>
    %252 = arith.mulf %247, %251 : vector<8x128xf32>
    %c0_39 = arith.constant 0 : index
    %c0_40 = arith.constant 0 : index
    %253 = vector.load %arg3[%c0_39, %c0_40] : memref<256x512xf32, #tpu.memory_space<vmem>>, vector<256x512xf32>
    %c0_41 = arith.constant 0 : index
    %c0_42 = arith.constant 0 : index
    %254 = vector.load %arg4[%c0_41, %c0_42] : memref<1x512xf32, #tpu.memory_space<vmem>>, vector<1x512xf32>
    %cst_43 = arith.constant 0.000000e+00 : f32
    %255 = vector.broadcast %cst_43 : f32 to vector<8x128xf32>
    %cst_44 = arith.constant 0.000000e+00 : f32
    %256 = vector.broadcast %cst_44 : f32 to vector<8x128xf32>
    %257 = tpu.concatenate %49, %255 in 1 : vector<8x128xf32>, vector<8x128xf32> -> vector<8x256xf32>
    %cst_45 = arith.constant dense<0.000000e+00> : vector<8x512xf32>
    %258 = tpu.matmul %257, %253, %cst_45 {dimension_numbers = #tpu.dot_dimension_numbers<[1], [0], [0], [1], [0, 0, 1, 1], [], []>} : vector<8x256xf32>, vector<256x512xf32>, vector<8x512xf32> -> vector<8x512xf32>
    %259 = vector.broadcast %254 : vector<1x512xf32> to vector<8x512xf32>
    %260 = arith.addf %258, %259 : vector<8x512xf32>
    %261 = vector.extract_strided_slice %260 {offsets = [0, 0], sizes = [8, 128], strides = [1, 1]} : vector<8x512xf32> to vector<8x128xf32>
    %262 = arith.negf %261 : vector<8x128xf32>
    %263 = math.exp %262 : vector<8x128xf32>
    %cst_46 = arith.constant 1.000000e+00 : f32
    %264 = vector.broadcast %cst_46 : f32 to vector<8x128xf32>
    %265 = arith.addf %264, %263 : vector<8x128xf32>
    %266 = arith.divf %264, %265 : vector<8x128xf32>
    %267 = vector.extract_strided_slice %260 {offsets = [0, 128], sizes = [8, 128], strides = [1, 1]} : vector<8x512xf32> to vector<8x128xf32>
    %268 = arith.negf %267 : vector<8x128xf32>
    %269 = math.exp %268 : vector<8x128xf32>
    %cst_47 = arith.constant 1.000000e+00 : f32
    %270 = vector.broadcast %cst_47 : f32 to vector<8x128xf32>
    %271 = arith.addf %270, %269 : vector<8x128xf32>
    %272 = arith.divf %270, %271 : vector<8x128xf32>
    %273 = vector.extract_strided_slice %260 {offsets = [0, 256], sizes = [8, 128], strides = [1, 1]} : vector<8x512xf32> to vector<8x128xf32>
    %274 = math.tanh %273 : vector<8x128xf32>
    %275 = vector.extract_strided_slice %260 {offsets = [0, 384], sizes = [8, 128], strides = [1, 1]} : vector<8x512xf32> to vector<8x128xf32>
    %276 = arith.negf %275 : vector<8x128xf32>
    %277 = math.exp %276 : vector<8x128xf32>
    %cst_48 = arith.constant 1.000000e+00 : f32
    %278 = vector.broadcast %cst_48 : f32 to vector<8x128xf32>
    %279 = arith.addf %278, %277 : vector<8x128xf32>
    %280 = arith.divf %278, %279 : vector<8x128xf32>
    %281 = arith.mulf %272, %256 : vector<8x128xf32>
    %282 = arith.mulf %266, %274 : vector<8x128xf32>
    %283 = arith.addf %281, %282 : vector<8x128xf32>
    %284 = math.tanh %283 : vector<8x128xf32>
    %285 = arith.mulf %280, %284 : vector<8x128xf32>
    %286 = tpu.concatenate %78, %285 in 1 : vector<8x128xf32>, vector<8x128xf32> -> vector<8x256xf32>
    %cst_49 = arith.constant dense<0.000000e+00> : vector<8x512xf32>
    %287 = tpu.matmul %286, %253, %cst_49 {dimension_numbers = #tpu.dot_dimension_numbers<[1], [0], [0], [1], [0, 0, 1, 1], [], []>} : vector<8x256xf32>, vector<256x512xf32>, vector<8x512xf32> -> vector<8x512xf32>
    %288 = vector.broadcast %254 : vector<1x512xf32> to vector<8x512xf32>
    %289 = arith.addf %287, %288 : vector<8x512xf32>
    %290 = vector.extract_strided_slice %289 {offsets = [0, 0], sizes = [8, 128], strides = [1, 1]} : vector<8x512xf32> to vector<8x128xf32>
    %291 = arith.negf %290 : vector<8x128xf32>
    %292 = math.exp %291 : vector<8x128xf32>
    %cst_50 = arith.constant 1.000000e+00 : f32
    %293 = vector.broadcast %cst_50 : f32 to vector<8x128xf32>
    %294 = arith.addf %293, %292 : vector<8x128xf32>
    %295 = arith.divf %293, %294 : vector<8x128xf32>
    %296 = vector.extract_strided_slice %289 {offsets = [0, 128], sizes = [8, 128], strides = [1, 1]} : vector<8x512xf32> to vector<8x128xf32>
    %297 = arith.negf %296 : vector<8x128xf32>
    %298 = math.exp %297 : vector<8x128xf32>
    %cst_51 = arith.constant 1.000000e+00 : f32
    %299 = vector.broadcast %cst_51 : f32 to vector<8x128xf32>
    %300 = arith.addf %299, %298 : vector<8x128xf32>
    %301 = arith.divf %299, %300 : vector<8x128xf32>
    %302 = vector.extract_strided_slice %289 {offsets = [0, 256], sizes = [8, 128], strides = [1, 1]} : vector<8x512xf32> to vector<8x128xf32>
    %303 = math.tanh %302 : vector<8x128xf32>
    %304 = vector.extract_strided_slice %289 {offsets = [0, 384], sizes = [8, 128], strides = [1, 1]} : vector<8x512xf32> to vector<8x128xf32>
    %305 = arith.negf %304 : vector<8x128xf32>
    %306 = math.exp %305 : vector<8x128xf32>
    %cst_52 = arith.constant 1.000000e+00 : f32
    %307 = vector.broadcast %cst_52 : f32 to vector<8x128xf32>
    %308 = arith.addf %307, %306 : vector<8x128xf32>
    %309 = arith.divf %307, %308 : vector<8x128xf32>
    %310 = arith.mulf %301, %283 : vector<8x128xf32>
    %311 = arith.mulf %295, %303 : vector<8x128xf32>
    %312 = arith.addf %310, %311 : vector<8x128xf32>
    %313 = math.tanh %312 : vector<8x128xf32>
    %314 = arith.mulf %309, %313 : vector<8x128xf32>
    %315 = tpu.concatenate %107, %314 in 1 : vector<8x128xf32>, vector<8x128xf32> -> vector<8x256xf32>
    %cst_53 = arith.constant dense<0.000000e+00> : vector<8x512xf32>
    %316 = tpu.matmul %315, %253, %cst_53 {dimension_numbers = #tpu.dot_dimension_numbers<[1], [0], [0], [1], [0, 0, 1, 1], [], []>} : vector<8x256xf32>, vector<256x512xf32>, vector<8x512xf32> -> vector<8x512xf32>
    %317 = vector.broadcast %254 : vector<1x512xf32> to vector<8x512xf32>
    %318 = arith.addf %316, %317 : vector<8x512xf32>
    %319 = vector.extract_strided_slice %318 {offsets = [0, 0], sizes = [8, 128], strides = [1, 1]} : vector<8x512xf32> to vector<8x128xf32>
    %320 = arith.negf %319 : vector<8x128xf32>
    %321 = math.exp %320 : vector<8x128xf32>
    %cst_54 = arith.constant 1.000000e+00 : f32
    %322 = vector.broadcast %cst_54 : f32 to vector<8x128xf32>
    %323 = arith.addf %322, %321 : vector<8x128xf32>
    %324 = arith.divf %322, %323 : vector<8x128xf32>
    %325 = vector.extract_strided_slice %318 {offsets = [0, 128], sizes = [8, 128], strides = [1, 1]} : vector<8x512xf32> to vector<8x128xf32>
    %326 = arith.negf %325 : vector<8x128xf32>
    %327 = math.exp %326 : vector<8x128xf32>
    %cst_55 = arith.constant 1.000000e+00 : f32
    %328 = vector.broadcast %cst_55 : f32 to vector<8x128xf32>
    %329 = arith.addf %328, %327 : vector<8x128xf32>
    %330 = arith.divf %328, %329 : vector<8x128xf32>
    %331 = vector.extract_strided_slice %318 {offsets = [0, 256], sizes = [8, 128], strides = [1, 1]} : vector<8x512xf32> to vector<8x128xf32>
    %332 = math.tanh %331 : vector<8x128xf32>
    %333 = vector.extract_strided_slice %318 {offsets = [0, 384], sizes = [8, 128], strides = [1, 1]} : vector<8x512xf32> to vector<8x128xf32>
    %334 = arith.negf %333 : vector<8x128xf32>
    %335 = math.exp %334 : vector<8x128xf32>
    %cst_56 = arith.constant 1.000000e+00 : f32
    %336 = vector.broadcast %cst_56 : f32 to vector<8x128xf32>
    %337 = arith.addf %336, %335 : vector<8x128xf32>
    %338 = arith.divf %336, %337 : vector<8x128xf32>
    %339 = arith.mulf %330, %312 : vector<8x128xf32>
    %340 = arith.mulf %324, %332 : vector<8x128xf32>
    %341 = arith.addf %339, %340 : vector<8x128xf32>
    %342 = math.tanh %341 : vector<8x128xf32>
    %343 = arith.mulf %338, %342 : vector<8x128xf32>
    %344 = tpu.concatenate %136, %343 in 1 : vector<8x128xf32>, vector<8x128xf32> -> vector<8x256xf32>
    %cst_57 = arith.constant dense<0.000000e+00> : vector<8x512xf32>
    %345 = tpu.matmul %344, %253, %cst_57 {dimension_numbers = #tpu.dot_dimension_numbers<[1], [0], [0], [1], [0, 0, 1, 1], [], []>} : vector<8x256xf32>, vector<256x512xf32>, vector<8x512xf32> -> vector<8x512xf32>
    %346 = vector.broadcast %254 : vector<1x512xf32> to vector<8x512xf32>
    %347 = arith.addf %345, %346 : vector<8x512xf32>
    %348 = vector.extract_strided_slice %347 {offsets = [0, 0], sizes = [8, 128], strides = [1, 1]} : vector<8x512xf32> to vector<8x128xf32>
    %349 = arith.negf %348 : vector<8x128xf32>
    %350 = math.exp %349 : vector<8x128xf32>
    %cst_58 = arith.constant 1.000000e+00 : f32
    %351 = vector.broadcast %cst_58 : f32 to vector<8x128xf32>
    %352 = arith.addf %351, %350 : vector<8x128xf32>
    %353 = arith.divf %351, %352 : vector<8x128xf32>
    %354 = vector.extract_strided_slice %347 {offsets = [0, 128], sizes = [8, 128], strides = [1, 1]} : vector<8x512xf32> to vector<8x128xf32>
    %355 = arith.negf %354 : vector<8x128xf32>
    %356 = math.exp %355 : vector<8x128xf32>
    %cst_59 = arith.constant 1.000000e+00 : f32
    %357 = vector.broadcast %cst_59 : f32 to vector<8x128xf32>
    %358 = arith.addf %357, %356 : vector<8x128xf32>
    %359 = arith.divf %357, %358 : vector<8x128xf32>
    %360 = vector.extract_strided_slice %347 {offsets = [0, 256], sizes = [8, 128], strides = [1, 1]} : vector<8x512xf32> to vector<8x128xf32>
    %361 = math.tanh %360 : vector<8x128xf32>
    %362 = vector.extract_strided_slice %347 {offsets = [0, 384], sizes = [8, 128], strides = [1, 1]} : vector<8x512xf32> to vector<8x128xf32>
    %363 = arith.negf %362 : vector<8x128xf32>
    %364 = math.exp %363 : vector<8x128xf32>
    %cst_60 = arith.constant 1.000000e+00 : f32
    %365 = vector.broadcast %cst_60 : f32 to vector<8x128xf32>
    %366 = arith.addf %365, %364 : vector<8x128xf32>
    %367 = arith.divf %365, %366 : vector<8x128xf32>
    %368 = arith.mulf %359, %341 : vector<8x128xf32>
    %369 = arith.mulf %353, %361 : vector<8x128xf32>
    %370 = arith.addf %368, %369 : vector<8x128xf32>
    %371 = math.tanh %370 : vector<8x128xf32>
    %372 = arith.mulf %367, %371 : vector<8x128xf32>
    %373 = tpu.concatenate %165, %372 in 1 : vector<8x128xf32>, vector<8x128xf32> -> vector<8x256xf32>
    %cst_61 = arith.constant dense<0.000000e+00> : vector<8x512xf32>
    %374 = tpu.matmul %373, %253, %cst_61 {dimension_numbers = #tpu.dot_dimension_numbers<[1], [0], [0], [1], [0, 0, 1, 1], [], []>} : vector<8x256xf32>, vector<256x512xf32>, vector<8x512xf32> -> vector<8x512xf32>
    %375 = vector.broadcast %254 : vector<1x512xf32> to vector<8x512xf32>
    %376 = arith.addf %374, %375 : vector<8x512xf32>
    %377 = vector.extract_strided_slice %376 {offsets = [0, 0], sizes = [8, 128], strides = [1, 1]} : vector<8x512xf32> to vector<8x128xf32>
    %378 = arith.negf %377 : vector<8x128xf32>
    %379 = math.exp %378 : vector<8x128xf32>
    %cst_62 = arith.constant 1.000000e+00 : f32
    %380 = vector.broadcast %cst_62 : f32 to vector<8x128xf32>
    %381 = arith.addf %380, %379 : vector<8x128xf32>
    %382 = arith.divf %380, %381 : vector<8x128xf32>
    %383 = vector.extract_strided_slice %376 {offsets = [0, 128], sizes = [8, 128], strides = [1, 1]} : vector<8x512xf32> to vector<8x128xf32>
    %384 = arith.negf %383 : vector<8x128xf32>
    %385 = math.exp %384 : vector<8x128xf32>
    %cst_63 = arith.constant 1.000000e+00 : f32
    %386 = vector.broadcast %cst_63 : f32 to vector<8x128xf32>
    %387 = arith.addf %386, %385 : vector<8x128xf32>
    %388 = arith.divf %386, %387 : vector<8x128xf32>
    %389 = vector.extract_strided_slice %376 {offsets = [0, 256], sizes = [8, 128], strides = [1, 1]} : vector<8x512xf32> to vector<8x128xf32>
    %390 = math.tanh %389 : vector<8x128xf32>
    %391 = vector.extract_strided_slice %376 {offsets = [0, 384], sizes = [8, 128], strides = [1, 1]} : vector<8x512xf32> to vector<8x128xf32>
    %392 = arith.negf %391 : vector<8x128xf32>
    %393 = math.exp %392 : vector<8x128xf32>
    %cst_64 = arith.constant 1.000000e+00 : f32
    %394 = vector.broadcast %cst_64 : f32 to vector<8x128xf32>
    %395 = arith.addf %394, %393 : vector<8x128xf32>
    %396 = arith.divf %394, %395 : vector<8x128xf32>
    %397 = arith.mulf %388, %370 : vector<8x128xf32>
    %398 = arith.mulf %382, %390 : vector<8x128xf32>
    %399 = arith.addf %397, %398 : vector<8x128xf32>
    %400 = math.tanh %399 : vector<8x128xf32>
    %401 = arith.mulf %396, %400 : vector<8x128xf32>
    %402 = tpu.concatenate %194, %401 in 1 : vector<8x128xf32>, vector<8x128xf32> -> vector<8x256xf32>
    %cst_65 = arith.constant dense<0.000000e+00> : vector<8x512xf32>
    %403 = tpu.matmul %402, %253, %cst_65 {dimension_numbers = #tpu.dot_dimension_numbers<[1], [0], [0], [1], [0, 0, 1, 1], [], []>} : vector<8x256xf32>, vector<256x512xf32>, vector<8x512xf32> -> vector<8x512xf32>
    %404 = vector.broadcast %254 : vector<1x512xf32> to vector<8x512xf32>
    %405 = arith.addf %403, %404 : vector<8x512xf32>
    %406 = vector.extract_strided_slice %405 {offsets = [0, 0], sizes = [8, 128], strides = [1, 1]} : vector<8x512xf32> to vector<8x128xf32>
    %407 = arith.negf %406 : vector<8x128xf32>
    %408 = math.exp %407 : vector<8x128xf32>
    %cst_66 = arith.constant 1.000000e+00 : f32
    %409 = vector.broadcast %cst_66 : f32 to vector<8x128xf32>
    %410 = arith.addf %409, %408 : vector<8x128xf32>
    %411 = arith.divf %409, %410 : vector<8x128xf32>
    %412 = vector.extract_strided_slice %405 {offsets = [0, 128], sizes = [8, 128], strides = [1, 1]} : vector<8x512xf32> to vector<8x128xf32>
    %413 = arith.negf %412 : vector<8x128xf32>
    %414 = math.exp %413 : vector<8x128xf32>
    %cst_67 = arith.constant 1.000000e+00 : f32
    %415 = vector.broadcast %cst_67 : f32 to vector<8x128xf32>
    %416 = arith.addf %415, %414 : vector<8x128xf32>
    %417 = arith.divf %415, %416 : vector<8x128xf32>
    %418 = vector.extract_strided_slice %405 {offsets = [0, 256], sizes = [8, 128], strides = [1, 1]} : vector<8x512xf32> to vector<8x128xf32>
    %419 = math.tanh %418 : vector<8x128xf32>
    %420 = vector.extract_strided_slice %405 {offsets = [0, 384], sizes = [8, 128], strides = [1, 1]} : vector<8x512xf32> to vector<8x128xf32>
    %421 = arith.negf %420 : vector<8x128xf32>
    %422 = math.exp %421 : vector<8x128xf32>
    %cst_68 = arith.constant 1.000000e+00 : f32
    %423 = vector.broadcast %cst_68 : f32 to vector<8x128xf32>
    %424 = arith.addf %423, %422 : vector<8x128xf32>
    %425 = arith.divf %423, %424 : vector<8x128xf32>
    %426 = arith.mulf %417, %399 : vector<8x128xf32>
    %427 = arith.mulf %411, %419 : vector<8x128xf32>
    %428 = arith.addf %426, %427 : vector<8x128xf32>
    %429 = math.tanh %428 : vector<8x128xf32>
    %430 = arith.mulf %425, %429 : vector<8x128xf32>
    %431 = tpu.concatenate %223, %430 in 1 : vector<8x128xf32>, vector<8x128xf32> -> vector<8x256xf32>
    %cst_69 = arith.constant dense<0.000000e+00> : vector<8x512xf32>
    %432 = tpu.matmul %431, %253, %cst_69 {dimension_numbers = #tpu.dot_dimension_numbers<[1], [0], [0], [1], [0, 0, 1, 1], [], []>} : vector<8x256xf32>, vector<256x512xf32>, vector<8x512xf32> -> vector<8x512xf32>
    %433 = vector.broadcast %254 : vector<1x512xf32> to vector<8x512xf32>
    %434 = arith.addf %432, %433 : vector<8x512xf32>
    %435 = vector.extract_strided_slice %434 {offsets = [0, 0], sizes = [8, 128], strides = [1, 1]} : vector<8x512xf32> to vector<8x128xf32>
    %436 = arith.negf %435 : vector<8x128xf32>
    %437 = math.exp %436 : vector<8x128xf32>
    %cst_70 = arith.constant 1.000000e+00 : f32
    %438 = vector.broadcast %cst_70 : f32 to vector<8x128xf32>
    %439 = arith.addf %438, %437 : vector<8x128xf32>
    %440 = arith.divf %438, %439 : vector<8x128xf32>
    %441 = vector.extract_strided_slice %434 {offsets = [0, 128], sizes = [8, 128], strides = [1, 1]} : vector<8x512xf32> to vector<8x128xf32>
    %442 = arith.negf %441 : vector<8x128xf32>
    %443 = math.exp %442 : vector<8x128xf32>
    %cst_71 = arith.constant 1.000000e+00 : f32
    %444 = vector.broadcast %cst_71 : f32 to vector<8x128xf32>
    %445 = arith.addf %444, %443 : vector<8x128xf32>
    %446 = arith.divf %444, %445 : vector<8x128xf32>
    %447 = vector.extract_strided_slice %434 {offsets = [0, 256], sizes = [8, 128], strides = [1, 1]} : vector<8x512xf32> to vector<8x128xf32>
    %448 = math.tanh %447 : vector<8x128xf32>
    %449 = vector.extract_strided_slice %434 {offsets = [0, 384], sizes = [8, 128], strides = [1, 1]} : vector<8x512xf32> to vector<8x128xf32>
    %450 = arith.negf %449 : vector<8x128xf32>
    %451 = math.exp %450 : vector<8x128xf32>
    %cst_72 = arith.constant 1.000000e+00 : f32
    %452 = vector.broadcast %cst_72 : f32 to vector<8x128xf32>
    %453 = arith.addf %452, %451 : vector<8x128xf32>
    %454 = arith.divf %452, %453 : vector<8x128xf32>
    %455 = arith.mulf %446, %428 : vector<8x128xf32>
    %456 = arith.mulf %440, %448 : vector<8x128xf32>
    %457 = arith.addf %455, %456 : vector<8x128xf32>
    %458 = math.tanh %457 : vector<8x128xf32>
    %459 = arith.mulf %454, %458 : vector<8x128xf32>
    %460 = tpu.concatenate %252, %459 in 1 : vector<8x128xf32>, vector<8x128xf32> -> vector<8x256xf32>
    %cst_73 = arith.constant dense<0.000000e+00> : vector<8x512xf32>
    %461 = tpu.matmul %460, %253, %cst_73 {dimension_numbers = #tpu.dot_dimension_numbers<[1], [0], [0], [1], [0, 0, 1, 1], [], []>} : vector<8x256xf32>, vector<256x512xf32>, vector<8x512xf32> -> vector<8x512xf32>
    %462 = vector.broadcast %254 : vector<1x512xf32> to vector<8x512xf32>
    %463 = arith.addf %461, %462 : vector<8x512xf32>
    %464 = vector.extract_strided_slice %463 {offsets = [0, 0], sizes = [8, 128], strides = [1, 1]} : vector<8x512xf32> to vector<8x128xf32>
    %465 = arith.negf %464 : vector<8x128xf32>
    %466 = math.exp %465 : vector<8x128xf32>
    %cst_74 = arith.constant 1.000000e+00 : f32
    %467 = vector.broadcast %cst_74 : f32 to vector<8x128xf32>
    %468 = arith.addf %467, %466 : vector<8x128xf32>
    %469 = arith.divf %467, %468 : vector<8x128xf32>
    %470 = vector.extract_strided_slice %463 {offsets = [0, 128], sizes = [8, 128], strides = [1, 1]} : vector<8x512xf32> to vector<8x128xf32>
    %471 = arith.negf %470 : vector<8x128xf32>
    %472 = math.exp %471 : vector<8x128xf32>
    %cst_75 = arith.constant 1.000000e+00 : f32
    %473 = vector.broadcast %cst_75 : f32 to vector<8x128xf32>
    %474 = arith.addf %473, %472 : vector<8x128xf32>
    %475 = arith.divf %473, %474 : vector<8x128xf32>
    %476 = vector.extract_strided_slice %463 {offsets = [0, 256], sizes = [8, 128], strides = [1, 1]} : vector<8x512xf32> to vector<8x128xf32>
    %477 = math.tanh %476 : vector<8x128xf32>
    %478 = vector.extract_strided_slice %463 {offsets = [0, 384], sizes = [8, 128], strides = [1, 1]} : vector<8x512xf32> to vector<8x128xf32>
    %479 = arith.negf %478 : vector<8x128xf32>
    %480 = math.exp %479 : vector<8x128xf32>
    %cst_76 = arith.constant 1.000000e+00 : f32
    %481 = vector.broadcast %cst_76 : f32 to vector<8x128xf32>
    %482 = arith.addf %481, %480 : vector<8x128xf32>
    %483 = arith.divf %481, %482 : vector<8x128xf32>
    %484 = arith.mulf %475, %457 : vector<8x128xf32>
    %485 = arith.mulf %469, %477 : vector<8x128xf32>
    %486 = arith.addf %484, %485 : vector<8x128xf32>
    %487 = math.tanh %486 : vector<8x128xf32>
    %488 = arith.mulf %483, %487 : vector<8x128xf32>
    %c0_77 = arith.constant 0 : index
    %c0_78 = arith.constant 0 : index
    %489 = vector.load %arg5[%c0_77, %c0_78] : memref<128x128xf32, #tpu.memory_space<vmem>>, vector<128x128xf32>
    %cst_79 = arith.constant dense<0.000000e+00> : vector<8x128xf32>
    %490 = tpu.matmul %488, %489, %cst_79 {dimension_numbers = #tpu.dot_dimension_numbers<[1], [0], [0], [1], [0, 0, 1, 1], [], []>} : vector<8x128xf32>, vector<128x128xf32>, vector<8x128xf32> -> vector<8x128xf32>
    %c0_80 = arith.constant 0 : index
    %c0_81 = arith.constant 0 : index
    %491 = vector.load %arg6[%c0_80, %c0_81] : memref<1x128xf32, #tpu.memory_space<vmem>>, vector<1x128xf32>
    %492 = vector.broadcast %491 : vector<1x128xf32> to vector<8x128xf32>
    %493 = arith.addf %490, %492 : vector<8x128xf32>
    %c0_82 = arith.constant 0 : index
    %c0_83 = arith.constant 0 : index
    %494 = vector.load %arg7[%c0_82, %c0_83] : memref<8x128xf32, #tpu.memory_space<vmem>>, vector<8x128xf32>
    tpu.vector_store %arg7[%c0_82, %c0_83], %493 {strides = array<i32>} : memref<8x128xf32, #tpu.memory_space<vmem>>, vector<8x128xf32>,
    return
  }
}

</mosaic_0001>

<bundles_post_ra>
// kernel: tpu_custom_call.1
= control target key start
LH: loop header
LB: loop body
LE: loop exit
PB: predicated region body
PF: predicated region fallthrough
CT: control target
= control target key end

     0   :  { %12 = vsyncpa [#allocation3], 0  ;;  %s7612_s0 = inlined_call_operand.hbm [shape: f32[8,8,128], index: 0, kind: input, shape index: {}]   ;;  %s7613_s1 = inlined_call_operand.hbm [shape: f32[256,512], index: 1, kind: input, shape index: {}]   ;;  %s7614_s2 = inlined_call_operand.vmem [shape: f32[1,512], index: 2, kind: input, shape index: {}]   ;;  %s7615_s3 = inlined_call_operand.hbm [shape: f32[256,512], index: 3, kind: input, shape index: {}]   ;;  %s7616_s4 = inlined_call_operand.vmem [shape: f32[1,512], index: 4, kind: input, shape index: {}]   ;;  %s7617_s5 = inlined_call_operand.hbm [shape: f32[128,128], index: 5, kind: input, shape index: {}]   ;;  %s7618_s6 = inlined_call_operand.vmem [shape: f32[1,128], index: 6, kind: input, shape index: {}]   ;;  %s7619_s7 = inlined_call_operand.hbm [shape: f32[8,128], index: 7, kind: output, shape index: {}]  }
   0x1   :  { %13 = vsyncpa [#allocation6], 0 }
   0x2   :  { %14 = vsyncpa [#allocation9], 0 }
   0x3   :  { %15 = vsyncpa [#allocation4], 0  ;;  %s5859_s24 = smov [#allocation5]   ;;  %s5741_s28 = scalar_lea.hbm %s7613_s1, 16384 }
   0x4   :  { %s33_s25 = sshll.u32 %s5859_s24, 4  ;;  %p5742_p0 = scmp.ne.s32.totalorder %s7613_s1, %s5741_s28  ;;  %s34_s25 = int_to_ptr.vmem [resolvable:$true] %s33_s25 }
   0x5   :  { %p5745_p1 = scmp.lt.u32.totalorder %s5741_s28, %s7613_s1 }
   0x7   :  { %p5747_p2 = pnand %p5745_p1, %p5742_p0 }
   0x9   :  { %5750 = shalt.err (!%p5747_p2)
}
   0xa   :  { %s5751_s10 = scalar_lea.vmem %s34_s25, 16384  ;;  %p5756_p4 = scmp.lt.s32.totalorder %s34_s25, %s34_s25 }
   0xb   :  { %p5752_p3 = scmp.ne.s32.totalorder %s34_s25, %s5751_s10  ;;  %p5757_p5 = scmp.lt.s32.totalorder %s5751_s10, %s5751_s10 }
   0xd   :  { %p5758_p6 = por %p5757_p5, %p5756_p4 }
   0xf   :  { %p5759_p7 = pnand %p5758_p6, %p5752_p3 }
  0x11   :  { %5762 = shalt.err (!%p5759_p7)
}
  0x12   :  { %s5860_s11 = smov 512   ;;  %s5861_s12 = smov 32  }
  0x13   :  { %39 = dma.hbm_to_vmem [thread:$0]  %s7613_s1, 16384, %s34_s25, [#allocation6], %s5860_s11, %s5860_s11, %s5861_s12  }
  0x14   :  { %s5862_s15 = smov [#allocation2]   ;;  %s5763_s19 = scalar_lea.hbm %s7612_s0, 1024 }
  0x15   :  { %s21_s16 = sshll.u32 %s5862_s15, 4  ;;  %p5764_p8 = scmp.ne.s32.totalorder %s7612_s0, %s5763_s19  ;;  %s22_s16 = int_to_ptr.vmem [resolvable:$true] %s21_s16 }
  0x16   :  { %p5767_p9 = scmp.lt.u32.totalorder %s5763_s19, %s7612_s0 }
  0x18   :  { %p5769_p10 = pnand %p5767_p9, %p5764_p8 }
  0x1a   :  { %5772 = shalt.err (!%p5769_p10)
}
  0x1b   :  { %s5773_s24 = scalar_lea.vmem %s22_s16, 1024  ;;  %p5778_p12 = scmp.lt.s32.totalorder %s22_s16, %s22_s16 }
  0x1c   :  { %p5774_p11 = scmp.ne.s32.totalorder %s22_s16, %s5773_s24  ;;  %p5779_p13 = scmp.lt.s32.totalorder %s5773_s24, %s5773_s24 }
  0x1e   :  { %p5780_p0 = por %p5779_p13, %p5778_p12 }
  0x20   :  { %p5781_p1 = pnand %p5780_p0, %p5774_p11 }
  0x22   :  { %5784 = shalt.err (!%p5781_p1)
}
  0x23   :  { %s5863_s1 = smov 128   ;;  %s5864_s25 = smov 8  }
  0x24   :  { %27 = dma.hbm_to_vmem [thread:$0]  %s7612_s0, 1024, %s22_s16, [#allocation3], %s5863_s1, %s5863_s1, %s5864_s25  }
  0x25   :  { %s5865_s28 = smov [#allocation7]   ;;  %s5866_s30 = smov [#allocation8]  }
  0x26   :  { %s47_s29 = sshll.u32 %s5865_s28, 4  ;;  %s61_s8 = sshll.u32 %s5866_s30, 4  ;;  %s48_s29 = int_to_ptr.vmem [resolvable:$true] %s47_s29  ;;  %s5941_s8 = int_to_ptr.vmem [resolvable:$true] %s61_s8 }
  0x27   :  { %s5785_s13 = scalar_lea.hbm %s7615_s3, 16384 }
  0x28   :  { %p5786_p2 = scmp.ne.s32.totalorder %s7615_s3, %s5785_s13  ;;  %p5789_p3 = scmp.lt.u32.totalorder %s5785_s13, %s7615_s3 }
  0x2a   :  { %p5791_p4 = pnand %p5789_p3, %p5786_p2 }
  0x2c   :  { %5794 = shalt.err (!%p5791_p4)
}
  0x2d   :  { %s5795_s0 = scalar_lea.vmem %s48_s29, 16384  ;;  %p5800_p6 = scmp.lt.s32.totalorder %s48_s29, %s48_s29 }
  0x2e   :  { %p5796_p5 = scmp.ne.s32.totalorder %s48_s29, %s5795_s0  ;;  %p5801_p7 = scmp.lt.s32.totalorder %s5795_s0, %s5795_s0 }
  0x30   :  { %p5802_p8 = por %p5801_p7, %p5800_p6 }
  0x32   :  { %p5803_p9 = pnand %p5802_p8, %p5796_p5 }
  0x34   :  { %5806 = shalt.err (!%p5803_p9)
}
  0x35   :  { %53 = dma.hbm_to_vmem [thread:$0]  %s7615_s3, 16384, %s48_s29, [#allocation6], %s5860_s11, %s5860_s11, %s5861_s12  }
  0x36   :  { %s5807_s22 = scalar_lea.hbm %s7617_s5, 2048 }
  0x37   :  { %p5808_p10 = scmp.ne.s32.totalorder %s7617_s5, %s5807_s22  ;;  %p5811_p11 = scmp.lt.u32.totalorder %s5807_s22, %s7617_s5 }
  0x39   :  { %p5813_p12 = pnand %p5811_p11, %p5808_p10 }
  0x3b   :  { %5816 = shalt.err (!%p5813_p12)
}
  0x3c   :  { %s5817_s28 = scalar_lea.vmem %s5941_s8, 2048  ;;  %p5822_p0 = scmp.lt.s32.totalorder %s5941_s8, %s5941_s8 }
  0x3d   :  { %p5818_p13 = scmp.ne.s32.totalorder %s5941_s8, %s5817_s28  ;;  %p5823_p1 = scmp.lt.s32.totalorder %s5817_s28, %s5817_s28 }
  0x3f   :  { %p5824_p2 = por %p5823_p1, %p5822_p0 }
  0x41   :  { %p5825_p3 = pnand %p5824_p2, %p5818_p13 }
  0x43   :  { %5828 = shalt.err (!%p5825_p3)
}
  0x44   :  { %67 = dma.hbm_to_vmem [thread:$0]  %s7617_s5, 2048, %s5941_s8, [#allocation9], %s5863_s1, %s5863_s1, %s5864_s25  }
  0x45   :  { %5851 = dma.done.wait [#allocation3], 1024  }
  0x46   :  { %5852 = vsyncadd [#allocation3], 4294966272 }
  0x47   :  { %5853 = dma.done.wait [#allocation6], 32768  }
  0x48   :  { %5854 = vsyncadd [#allocation6], 4294934528 }
  0x49   :  { %5855 = dma.done.wait [#allocation9], 2048  }
  0x4a   :  { %5856 = vsyncadd [#allocation9], 4294965248  ;;  %v7620_v0 = vmov 0.0   ;;  %v91_v1 = vld [vmem:[#allocation5 + $0x8] sm:$0xff]  ;;  %v90_v3 = vld [vmem:[#allocation5] sm:$0xff]  ;;  %vm228_vm0 = vcmask 1041409  }
  0x4b   :  { %334 = vmatprep.mubr.f32.mxu0 %v7620_v0  ;;  %405 = vmatprep.mubr.f32.mxu1 %v7620_v0  ;;  %v95_v2 = vld [vmem:[#allocation5 + $0x28] sm:$0xff]  ;;  %v94_v5 = vld [vmem:[#allocation5 + $0x20] sm:$0xff]  ;;  %v93_v19 = vld [vmem:[#allocation5 + $0x18] sm:$0xff]  ;;  %vm231_vm1 = vcmask 1042434   ;;  %vm234_vm2 = vcmask 1043459   ;;  %vm237_vm3 = vcmask 1044484  }
  0x4c   :  { %v5980_v4 = vpack.c.bf16 %v95_v2, %v91_v1  ;;  %v99_v6 = vld [vmem:[#allocation5 + $0x48] sm:$0xff]  ;;  %v5982_v8 = vpack.c.bf16 %v94_v5, %v90_v3  ;;  %v98_v10 = vld [vmem:[#allocation5 + $0x40] sm:$0xff]  ;;  %v97_v20 = vld [vmem:[#allocation5 + $0x38] sm:$0xff]  ;;  %vm240_vm4 = vcmask 1045509   ;;  %vm243_vm5 = vcmask 1046534   ;;  %s5870_s29 = smov [#allocation10]  }
  0x4d   :  { %v103_v7 = vld [vmem:[#allocation5 + $0x68] sm:$0xff]  ;;  %v102_v11 = vld [vmem:[#allocation5 + $0x60] sm:$0xff]  ;;  %v5993_v22 = vpack.c.bf16 %v97_v20, %v93_v19  ;;  %v92_v23 = vld [vmem:[#allocation5 + $0x10] sm:$0xff]  ;;  %vm246_vm6 = vcmask 1047559   ;;  %vm444_vm7 = vcmask 1046528   ;;  %vm626_vm8 = vcmask 1045504  }
  0x4e   :  { %7783 = vst [vmem:[#allocation15_spill] sm:$0xff] %v5980_v4  ;;  %v5984_v9 = vpack.c.bf16 %v103_v7, %v99_v6  ;;  %v107_v12 = vld [vmem:[#allocation5 + $0x88] sm:$0xff]  ;;  %3401 = vmatprep.subr.bf16.mxu0 %v5980_v4  ;;  %v5988_v14 = vpack.c.bf16 %v102_v11, %v98_v10  ;;  %v106_v15 = vld [vmem:[#allocation5 + $0x80] sm:$0xff]  ;;  %v96_v24 = vld [vmem:[#allocation5 + $0x30] sm:$0xff]  ;;  %vm808_vm9 = vcmask 1044480   ;;  %vm990_vm10 = vcmask 1043456  }
  0x4f   :  { %v111_v13 = vld [vmem:[#allocation5 + $0xa8] sm:$0xff]  ;;  %3403 = vmatpush1.bf16.msra.mxu0 %v5982_v8  ;;  %v110_v16 = vld [vmem:[#allocation5 + $0xa0] sm:$0xff]  ;;  %7784 = vst [vmem:[#allocation16_spill] sm:$0xff] %v5993_v22  ;;  %v5995_v25 = vpack.c.bf16 %v96_v24, %v92_v23  ;;  %3465 = vmatprep.subr.bf16.mxu1 %v5993_v22  ;;  %v101_v27 = vld [vmem:[#allocation5 + $0x58] sm:$0xff]  ;;  %vm1172_vm11 = vcmask 1042432   ;;  %vm1354_vm12 = vcmask 1041408  }
  0x50   :  { %3405 = vmatprep.subr.bf16.mxu0 %v5984_v9  ;;  %v5991_v17 = vpack.c.bf16 %v111_v13, %v107_v12  ;;  %v115_v18 = vld [vmem:[#allocation5 + $0xc8] sm:$0xff]  ;;  %v5998_v26 = vpack.c.bf16 %v110_v16, %v106_v15  ;;  %v105_v28 = vld [vmem:[#allocation5 + $0x78] sm:$0xff]  ;;  %v100_v29 = vld [vmem:[#allocation5 + $0x50] sm:$0xff]  ;;  %vm1536_vm13 = vcmask 1040384   ;;  %vm5869_vm14 = vmmov 0   ;;  %s3288_s30 = sshll.u32 %s5870_s29, 4  ;;  %s3289_s30 = int_to_ptr.vmem [resolvable:$true] %s3288_s30 }
  0x51   :  { %v119_v21 = vld [vmem:[#allocation5 + $0xe8] sm:$0xff]  ;;  %v114_v31 = vld [vmem:[#allocation5 + $0xc0] sm:$0xff]  ;;  %3467 = vmatpush1.bf16.msra.mxu1 %v5995_v25  ;;  %v6005_v33 = vpack.c.bf16 %v105_v28, %v101_v27  ;;  %v104_v34 = vld [vmem:[#allocation5 + $0x70] sm:$0xff]  ;;  %s5829_s8 = scalar_lea.vmem %s3289_s30, 128  ;;  %p5834_p5 = scmp.lt.s32.totalorder %s3289_s30, %s3289_s30 }
  0x52   :  { %v6002_v30 = vpack.c.bf16 %v119_v21, %v115_v18  ;;  %v118_v32 = vld [vmem:[#allocation5 + $0xe0] sm:$0xff]  ;;  %v123_v35 = vld [vmem:[#allocation5 + $0x108] sm:$0xff]  ;;  %v6007_v37 = vpack.c.bf16 %v104_v34, %v100_v29  ;;  %v109_v38 = vld [vmem:[#allocation5 + $0x98] sm:$0xff]  ;;  %p5830_p4 = scmp.ne.s32.totalorder %s3289_s30, %s5829_s8  ;;  %p5835_p6 = scmp.lt.s32.totalorder %s5829_s8, %s5829_s8 }
  0x53   :  { %3407 = vmatpush1.bf16.msra.mxu0 %v5988_v14  ;;  %v127_v36 = vld [vmem:[#allocation5 + $0x128] sm:$0xff]  ;;  %3469 = vmatprep.subr.bf16.mxu1 %v6005_v33  ;;  %v113_v39 = vld [vmem:[#allocation5 + $0xb8] sm:$0xff]  ;;  %v108_v40 = vld [vmem:[#allocation5 + $0x90] sm:$0xff]  ;;  %v6011_v42 = vpack.c.bf16 %v118_v32, %v114_v31 }
  0x54   :  { %3409 = vmatprep.subr.bf16.mxu0 %v5991_v17  ;;  %v112_v41 = vld [vmem:[#allocation5 + $0xb0] sm:$0xff]  ;;  %v122_v43 = vld [vmem:[#allocation5 + $0x100] sm:$0xff]  ;;  %v6013_v45 = vpack.c.bf16 %v113_v39, %v109_v38  ;;  %v6016_v46 = vpack.c.bf16 %v127_v36, %v123_v35  ;;  %v131_v47 = vld [vmem:[#allocation5 + $0x148] sm:$0xff]  ;;  %p5836_p7 = por %p5835_p6, %p5834_p5 }
  0x55   :  { %v126_v44 = vld [vmem:[#allocation5 + $0x120] sm:$0xff]  ;;  %3471 = vmatpush1.bf16.msra.mxu1 %v6007_v37  ;;  %v6019_v48 = vpack.c.bf16 %v112_v41, %v108_v40  ;;  %v117_v49 = vld [vmem:[#allocation5 + $0xd8] sm:$0xff]  ;;  %v135_v51 = vld [vmem:[#allocation5 + $0x168] sm:$0xff] }
  0x56   :  { %v121_v50 = vld [vmem:[#allocation5 + $0xf8] sm:$0xff]  ;;  %3473 = vmatprep.subr.bf16.mxu1 %v6013_v45  ;;  %v116_v53 = vld [vmem:[#allocation5 + $0xd0] sm:$0xff]  ;;  %v6025_v55 = vpack.c.bf16 %v126_v44, %v122_v43  ;;  %v6028_v58 = vpack.c.bf16 %v135_v51, %v131_v47  ;;  %v130_v59 = vld [vmem:[#allocation5 + $0x140] sm:$0xff]  ;;  %p5837_p8 = pnand %p5836_p7, %p5830_p4 }
  0x57   :  { %3411 = vmatpush1.bf16.msra.mxu0 %v5998_v26  ;;  %v6022_v52 = vpack.c.bf16 %v121_v50, %v117_v49  ;;  %v120_v54 = vld [vmem:[#allocation5 + $0xf0] sm:$0xff]  ;;  %v125_v56 = vld [vmem:[#allocation5 + $0x118] sm:$0xff]  ;;  %v134_v60 = vld [vmem:[#allocation5 + $0x160] sm:$0xff] }
  0x58   :  { %3413 = vmatprep.subr.bf16.mxu0 %v6002_v30  ;;  %v129_v57 = vld [vmem:[#allocation5 + $0x138] sm:$0xff]  ;;  %v139_v61 = vld [vmem:[#allocation5 + $0x188] sm:$0xff]  ;;  %v6031_v62 = vpack.c.bf16 %v120_v54, %v116_v53  ;;  %v124_v2 = vld [vmem:[#allocation5 + $0x110] sm:$0xff]  ;;  %v6037_v7 = vpack.c.bf16 %v134_v60, %v130_v59 }
  0x59   :  { %3475 = vmatpush1.bf16.msra.mxu1 %v6019_v48  ;;  %v143_v63 = vld [vmem:[#allocation5 + $0x1a8] sm:$0xff]  ;;  %v6034_v1 = vpack.c.bf16 %v129_v57, %v125_v56  ;;  %v128_v3 = vld [vmem:[#allocation5 + $0x130] sm:$0xff]  ;;  %v133_v5 = vld [vmem:[#allocation5 + $0x158] sm:$0xff] }
  0x5a   :  { %3477 = vmatprep.subr.bf16.mxu1 %v6022_v52  ;;  %v137_v6 = vld [vmem:[#allocation5 + $0x178] sm:$0xff]  ;;  %v6040_v10 = vpack.c.bf16 %v143_v63, %v139_v61  ;;  %v138_v11 = vld [vmem:[#allocation5 + $0x180] sm:$0xff]  ;;  %v147_v13 = vld [vmem:[#allocation5 + $0x1c8] sm:$0xff]  ;;  %v6043_v15 = vpack.c.bf16 %v128_v3, %v124_v2 }
  0x5b   :  { %3415 = vmatpush1.bf16.msra.mxu0 %v6011_v42  ;;  %v142_v12 = vld [vmem:[#allocation5 + $0x1a0] sm:$0xff]  ;;  %v151_v16 = vld [vmem:[#allocation5 + $0x1e8] sm:$0xff]  ;;  %v6046_v18 = vpack.c.bf16 %v137_v6, %v133_v5  ;;  %v132_v19 = vld [vmem:[#allocation5 + $0x150] sm:$0xff] }
  0x5c   :  { %3417 = vmatprep.subr.bf16.mxu0 %v6016_v46  ;;  %v136_v20 = vld [vmem:[#allocation5 + $0x170] sm:$0xff]  ;;  %v141_v21 = vld [vmem:[#allocation5 + $0x198] sm:$0xff]  ;;  %v6049_v24 = vpack.c.bf16 %v142_v12, %v138_v11  ;;  %v6052_v27 = vpack.c.bf16 %v151_v16, %v147_v13  ;;  %v146_v28 = vld [vmem:[#allocation5 + $0x1c0] sm:$0xff] }
  0x5d   :  { %3479 = vmatpush1.bf16.msra.mxu1 %v6031_v62  ;;  %v145_v23 = vld [vmem:[#allocation5 + $0x1b8] sm:$0xff]  ;;  %v150_v29 = vld [vmem:[#allocation5 + $0x1e0] sm:$0xff]  ;;  %v155_v31 = vld [vmem:[#allocation5 + $0x208] sm:$0xff]  ;;  %v6055_v32 = vpack.c.bf16 %v136_v20, %v132_v19 }
  0x5e   :  { %3481 = vmatprep.subr.bf16.mxu1 %v6034_v1  ;;  %v159_v34 = vld [vmem:[#allocation5 + $0x228] sm:$0xff]  ;;  %v6058_v35 = vpack.c.bf16 %v145_v23, %v141_v21  ;;  %v140_v36 = vld [vmem:[#allocation5 + $0x190] sm:$0xff]  ;;  %v149_v39 = vld [vmem:[#allocation5 + $0x1d8] sm:$0xff]  ;;  %v6061_v41 = vpack.c.bf16 %v150_v29, %v146_v28 }
  0x5f   :  { %3419 = vmatpush1.bf16.msra.mxu0 %v6025_v55  ;;  %v144_v38 = vld [vmem:[#allocation5 + $0x1b0] sm:$0xff]  ;;  %v153_v40 = vld [vmem:[#allocation5 + $0x1f8] sm:$0xff]  ;;  %v6064_v43 = vpack.c.bf16 %v159_v34, %v155_v31  ;;  %v154_v44 = vld [vmem:[#allocation5 + $0x200] sm:$0xff] }
  0x60   :  { %3421 = vmatprep.subr.bf16.mxu0 %v6028_v58  ;;  %v158_v47 = vld [vmem:[#allocation5 + $0x220] sm:$0xff]  ;;  %v163_v49 = vld [vmem:[#allocation5 + $0x248] sm:$0xff]  ;;  %v6067_v50 = vpack.c.bf16 %v144_v38, %v140_v36  ;;  %v6070_v53 = vpack.c.bf16 %v153_v40, %v149_v39  ;;  %v148_v54 = vld [vmem:[#allocation5 + $0x1d0] sm:$0xff] }
  0x61   :  { %3483 = vmatpush1.bf16.msra.mxu1 %v6043_v15  ;;  %v167_v51 = vld [vmem:[#allocation5 + $0x268] sm:$0xff]  ;;  %v152_v56 = vld [vmem:[#allocation5 + $0x1f0] sm:$0xff]  ;;  %v157_v57 = vld [vmem:[#allocation5 + $0x218] sm:$0xff]  ;;  %v6073_v60 = vpack.c.bf16 %v158_v47, %v154_v44 }
  0x62   :  { %3485 = vmatprep.subr.bf16.mxu1 %v6046_v18  ;;  %v161_v59 = vld [vmem:[#allocation5 + $0x238] sm:$0xff]  ;;  %v6076_v61 = vpack.c.bf16 %v167_v51, %v163_v49  ;;  %v162_v63 = vld [vmem:[#allocation5 + $0x240] sm:$0xff]  ;;  %v171_v3 = vld [vmem:[#allocation5 + $0x288] sm:$0xff]  ;;  %v6079_v5 = vpack.c.bf16 %v152_v56, %v148_v54 }
  0x63   :  { %3423 = vmatpush1.bf16.msra.mxu0 %v6037_v7  ;;  %v166_v2 = vld [vmem:[#allocation5 + $0x260] sm:$0xff]  ;;  %v175_v6 = vld [vmem:[#allocation5 + $0x2a8] sm:$0xff]  ;;  %v6082_v11 = vpack.c.bf16 %v161_v59, %v157_v57  ;;  %v156_v12 = vld [vmem:[#allocation5 + $0x210] sm:$0xff] }
  0x64   :  { %3425 = vmatprep.subr.bf16.mxu0 %v6040_v10  ;;  %v160_v13 = vld [vmem:[#allocation5 + $0x230] sm:$0xff]  ;;  %v165_v16 = vld [vmem:[#allocation5 + $0x258] sm:$0xff]  ;;  %v6085_v20 = vpack.c.bf16 %v166_v2, %v162_v63  ;;  %v6088_v21 = vpack.c.bf16 %v175_v6, %v171_v3  ;;  %v170_v23 = vld [vmem:[#allocation5 + $0x280] sm:$0xff] }
  0x65   :  { %3487 = vmatpush1.bf16.msra.mxu1 %v6055_v32  ;;  %v169_v19 = vld [vmem:[#allocation5 + $0x278] sm:$0xff]  ;;  %v174_v28 = vld [vmem:[#allocation5 + $0x2a0] sm:$0xff]  ;;  %v179_v29 = vld [vmem:[#allocation5 + $0x2c8] sm:$0xff]  ;;  %v6091_v31 = vpack.c.bf16 %v160_v13, %v156_v12 }
  0x66   :  { %3489 = vmatprep.subr.bf16.mxu1 %v6058_v35  ;;  %7785 = vst [vmem:[#allocation17_spill] sm:$0xff] %v6085_v20  ;;  %7786 = vst [vmem:[#allocation18_spill] sm:$0xff] %v6088_v21  ;;  %v183_v34 = vld [vmem:[#allocation5 + $0x2e8] sm:$0xff]  ;;  %v6094_v36 = vpack.c.bf16 %v169_v19, %v165_v16  ;;  %v164_v38 = vld [vmem:[#allocation5 + $0x250] sm:$0xff]  ;;  %v6097_v49 = vpack.c.bf16 %v174_v28, %v170_v23 }
  0x67   :  { %3427 = vmatpush1.bf16.msra.mxu0 %v6049_v24  ;;  %v168_v39 = vld [vmem:[#allocation5 + $0x270] sm:$0xff]  ;;  %v173_v40 = vld [vmem:[#allocation5 + $0x298] sm:$0xff]  ;;  %v83_v47 = vld [vmem:[#allocation2 + $0x8] sm:$0xff]  ;;  %v6100_v54 = vpack.c.bf16 %v183_v34, %v179_v29 }
  0x68   :  { %3429 = vmatprep.subr.bf16.mxu0 %v6052_v27  ;;  %7787 = vst [vmem:[#allocation19_spill] sm:$0xff] %v6094_v36  ;;  %v177_v44 = vld [vmem:[#allocation5 + $0x2b8] sm:$0xff]  ;;  %7788 = vst [vmem:[#allocation20_spill] sm:$0xff] %v6097_v49  ;;  %v178_v51 = vld [vmem:[#allocation5 + $0x2c0] sm:$0xff]  ;;  %v6103_v63 = vpack.c.bf16 %v168_v39, %v164_v38  ;;  %v6108_v13 = vrot.slane %v83_v47, 7 }
  0x69   :  { %3491 = vmatpush1.bf16.msra.mxu1 %v6067_v50  ;;  %7789 = vst [vmem:[#allocation21_spill] sm:$0xff] %v6100_v54  ;;  %v182_v56 = vld [vmem:[#allocation5 + $0x2e0] sm:$0xff]  ;;  %v187_v57 = vld [vmem:[#allocation5 + $0x308] sm:$0xff]  ;;  %v6106_v2 = vpack.c.bf16 %v177_v44, %v173_v40  ;;  %v172_v3 = vld [vmem:[#allocation5 + $0x290] sm:$0xff] }
  0x6a   :  { %3493 = vmatprep.subr.bf16.mxu1 %v6070_v53  ;;  %v191_v59 = vld [vmem:[#allocation5 + $0x328] sm:$0xff]  ;;  %7790 = vst [vmem:[#allocation22_spill] sm:$0xff] %v6103_v63  ;;  %v176_v6 = vld [vmem:[#allocation5 + $0x2b0] sm:$0xff]  ;;  %7792 = vst [vmem:[#allocation24_spill] sm:$0xff] %v6108_v13  ;;  %v6113_v28 = vpack.c.bf16 %v182_v56, %v178_v51 }
  0x6b   :  { %3431 = vmatpush1.bf16.msra.mxu0 %v6061_v41  ;;  %7791 = vst [vmem:[#allocation23_spill] sm:$0xff] %v6106_v2  ;;  %v84_v12 = vld [vmem:[#allocation2 + $0x10] sm:$0xff]  ;;  %v181_v16 = vld [vmem:[#allocation5 + $0x2d8] sm:$0xff]  ;;  %v6110_v23 = vld [vmem:[#allocation2] sm:$0xff]  ;;  %v6116_v34 = vpack.c.bf16 %v191_v59, %v187_v57  ;;  %v6119_v40 = vpack.c.bf16 %v176_v6, %v172_v3 }
  0x6c   :  { %3433 = vmatprep.subr.bf16.mxu0 %v6064_v43  ;;  %v185_v19 = vld [vmem:[#allocation5 + $0x2f8] sm:$0xff]  ;;  %7793 = vst [vmem:[#allocation25_spill] sm:$0xff] %v6110_v23  ;;  %7794 = vst [vmem:[#allocation26_spill] sm:$0xff] %v6113_v28  ;;  %v186_v29 = vld [vmem:[#allocation5 + $0x300] sm:$0xff]  ;;  %v6121_v47 = vrot.slane %v84_v12, 6  ;;  %v229_v57 = vsel %vm228_vm0, %v6108_v13, %v6110_v23 }
  0x6d   :  { %3495 = vmatpush1.bf16.msra.mxu1 %v6079_v5  ;;  %7795 = vst [vmem:[#allocation27_spill] sm:$0xff] %v6116_v34  ;;  %v190_v38 = vld [vmem:[#allocation5 + $0x320] sm:$0xff]  ;;  %v195_v39 = vld [vmem:[#allocation5 + $0x348] sm:$0xff]  ;;  %7796 = vst [vmem:[#allocation28_spill] sm:$0xff] %v6119_v40 }
  0x6e   :  { %3497 = vmatprep.subr.bf16.mxu1 %v6082_v11  ;;  %v85_v44 = vld [vmem:[#allocation2 + $0x18] sm:$0xff]  ;;  %7797 = vst [vmem:[#allocation29_spill] sm:$0xff] %v6121_v47  ;;  %v199_v0 = vld [vmem:[#allocation5 + $0x368] sm:$0xff]  ;;  %v180_v51 = vld [vmem:[#allocation5 + $0x2d0] sm:$0xff]  ;;  %v6130_v3 = vpack.c.bf16 %v190_v38, %v186_v29  ;;  %v232_v23 = vsel %vm231_vm1, %v6121_v47, %v229_v57 }
  0x6f   :  { %3435 = vmatpush1.bf16.msra.mxu0 %v6073_v60  ;;  %v184_v56 = vld [vmem:[#allocation5 + $0x2f0] sm:$0xff]  ;;  %v189_v59 = vld [vmem:[#allocation5 + $0x318] sm:$0xff]  ;;  %v86_v6 = vld [vmem:[#allocation2 + $0x20] sm:$0xff]  ;;  %v6132_v12 = vrot.slane %v85_v44, 5 }
  0x70   :  { %3437 = vmatprep.subr.bf16.mxu0 %v6076_v61  ;;  %7799 = vst [vmem:[#allocation31_spill] sm:$0xff] %v6130_v3  ;;  %v6138_v13 = vpack.c.bf16 %v184_v56, %v180_v51  ;;  %v207_v29 = vld [vmem:[#allocation5 + $0x3a8] sm:$0xff]  ;;  %v188_v44 = vld [vmem:[#allocation5 + $0x310] sm:$0xff]  ;;  %v202_v56 = vld [vmem:[#allocation5 + $0x380] sm:$0xff] }
  0x71   :  { %3499 = vmatpush1.bf16.msra.mxu1 %v6091_v31  ;;  %7800 = vst [vmem:[#allocation32_spill] sm:$0xff] %v6132_v12  ;;  %v235_v57 = vsel %vm234_vm2, %v6132_v12, %v232_v23  ;;  %v215_v47 = vld [vmem:[#allocation5 + $0x3e8] sm:$0xff]  ;;  %v196_v23 = vld [vmem:[#allocation5 + $0x350] sm:$0xff] }
  0x72   :  { %3501 = vmatprep.subr.bf16.mxu1 %v6094_v36  ;;  %7802 = vst [vmem:[#allocation34_spill] sm:$0xff] %v6138_v13  ;;  %v201_v36 = vld [vmem:[#allocation5 + $0x378] sm:$0xff]  ;;  %v200_v12 = vld [vmem:[#allocation5 + $0x370] sm:$0xff] }
  0x73   :  { %3439 = vmatpush1.bf16.msra.mxu0 %v6085_v20 }
  0x74   :  { %3441 = vmatprep.subr.bf16.mxu0 %v6088_v21 }
  0x75   :  { %3503 = vmatpush1.bf16.msra.mxu1 %v6103_v63  ;;  %v193_v63 = vld [vmem:[#allocation5 + $0x338] sm:$0xff] }
  0x76   :  { %3505 = vmatprep.subr.bf16.mxu1 %v6106_v2  ;;  %v198_v2 = vld [vmem:[#allocation5 + $0x360] sm:$0xff]  ;;  %v6143_v38 = vpack.c.bf16 %v193_v63, %v189_v59 }
  0x77   :  { %3443 = vmatpush1.bf16.msra.mxu0 %v6097_v49  ;;  %v6124_v49 = vpack.c.bf16 %v185_v19, %v181_v16  ;;  %v6135_v16 = vpack.c.bf16 %v199_v0, %v195_v39  ;;  %v194_v19 = vld [vmem:[#allocation5 + $0x340] sm:$0xff]  ;;  %v87_v0 = vld [vmem:[#allocation2 + $0x28] sm:$0xff]  ;;  %v6145_v39 = vrot.slane %v86_v6, 4 }
  0x78   :  { %3445 = vmatprep.subr.bf16.mxu0 %v6100_v54  ;;  %v203_v54 = vld [vmem:[#allocation5 + $0x388] sm:$0xff]  ;;  %7803 = vst [vmem:[#allocation35_spill] sm:$0xff] %v6143_v38  ;;  %v6148_v51 = vpack.c.bf16 %v198_v2, %v194_v19  ;;  %v206_v59 = vld [vmem:[#allocation5 + $0x3a0] sm:$0xff]  ;;  %v88_v2 = vld [vmem:[#allocation2 + $0x30] sm:$0xff]  ;;  %v6159_v19 = vrot.slane %v87_v0, 3 }
  0x79   :  { %7798 = vst [vmem:[#allocation30_spill] sm:$0xff] %v6124_v49  ;;  %7801 = vst [vmem:[#allocation33_spill] sm:$0xff] %v6135_v16  ;;  %3507 = vmatpush1.bf16.msra.mxu1 %v6119_v40  ;;  %v6153_v63 = vpack.c.bf16 %v207_v29, %v203_v54  ;;  %v211_v6 = vld [vmem:[#allocation5 + $0x3c8] sm:$0xff]  ;;  %v238_v54 = vsel %vm237_vm3, %v6145_v39, %v235_v57  ;;  %v205_v29 = vld [vmem:[#allocation5 + $0x398] sm:$0xff] }
  0x7a   :  { %3509 = vmatprep.subr.bf16.mxu1 %v6124_v49  ;;  %7804 = vst [vmem:[#allocation36_spill] sm:$0xff] %v6145_v39  ;;  %7805 = vst [vmem:[#allocation37_spill] sm:$0xff] %v6148_v51  ;;  %v214_v0 = vld [vmem:[#allocation5 + $0x3e0] sm:$0xff]  ;;  %v241_v57 = vsel %vm240_vm4, %v6159_v19, %v238_v54  ;;  %v217_v39 = vld [vmem:[#allocation5 + $0x3f8] sm:$0xff] }
  0x7b   :  { %3447 = vmatpush1.bf16.msra.mxu0 %v6113_v28  ;;  %v197_v28 = vld [vmem:[#allocation5 + $0x358] sm:$0xff]  ;;  %7806 = vst [vmem:[#allocation38_spill] sm:$0xff] %v6153_v63  ;;  %v212_v54 = vld [vmem:[#allocation5 + $0x3d0] sm:$0xff] }
  0x7c   :  { %3449 = vmatprep.subr.bf16.mxu0 %v6116_v34  ;;  %v192_v34 = vld [vmem:[#allocation5 + $0x330] sm:$0xff] }
  0x7d   :  { %3511 = vmatpush1.bf16.msra.mxu1 %v6138_v13  ;;  %v6156_v49 = vpack.c.bf16 %v192_v34, %v188_v44  ;;  %v6166_v13 = vpack.c.bf16 %v206_v59, %v202_v56  ;;  %v6169_v34 = vpack.c.bf16 %v215_v47, %v211_v6  ;;  %v210_v44 = vld [vmem:[#allocation5 + $0x3c0] sm:$0xff]  ;;  %v204_v59 = vld [vmem:[#allocation5 + $0x390] sm:$0xff]  ;;  %v213_v6 = vld [vmem:[#allocation5 + $0x3d8] sm:$0xff] }
  0x7e   :  { %3513 = vmatprep.subr.bf16.mxu1 %v6143_v38  ;;  %v6174_v38 = vpack.c.bf16 %v200_v12, %v196_v23  ;;  %v208_v47 = vld [vmem:[#allocation5 + $0x3b0] sm:$0xff]  ;;  %v6193_v23 = vpack.c.bf16 %v217_v39, %v213_v6  ;;  %v7817_v39 = vld [vmem:[#allocation19_spill] sm:$0xff]  ;;  %v7822_v6 = vld [vmem:[#allocation26_spill] sm:$0xff] }
  0x7f   :  { %3451 = vmatpush1.bf16.msra.mxu0 %v6130_v3  ;;  %7807 = vst [vmem:[#allocation39_spill] sm:$0xff] %v6156_v49  ;;  %v6161_v3 = vpack.c.bf16 %v201_v36, %v197_v28  ;;  %7809 = vst [vmem:[#allocation41_spill] sm:$0xff] %v6166_v13  ;;  %v89_v36 = vld [vmem:[#allocation2 + $0x38] sm:$0xff]  ;;  %v6172_v28 = vrot.slane %v88_v2, 2 }
  0x80   :  { %3453 = vmatprep.subr.bf16.mxu0 %v6135_v16  ;;  %v209_v16 = vld [vmem:[#allocation5 + $0x3b8] sm:$0xff]  ;;  %7810 = vst [vmem:[#allocation42_spill] sm:$0xff] %v6169_v34  ;;  %7811 = vst [vmem:[#allocation43_spill] sm:$0xff] %v6174_v38  ;;  %v6184_v2 = vrot.slane %v89_v36, 1  ;;  %v7818_v36 = vld [vmem:[#allocation20_spill] sm:$0xff] }
  0x81   :  { %7808 = vst [vmem:[#allocation40_spill] sm:$0xff] %v6161_v3  ;;  %3515 = vmatpush1.bf16.msra.mxu1 %v6156_v49  ;;  %v6179_v56 = vpack.c.bf16 %v209_v16, %v205_v29  ;;  %v6182_v49 = vpack.c.bf16 %v214_v0, %v210_v44  ;;  %v244_v12 = vsel %vm243_vm5, %v6172_v28, %v241_v57  ;;  %7815 = vst [vmem:[#allocation47_spill] sm:$0xff] %v6193_v23  ;;  %v216_v29 = vld [vmem:[#allocation5 + $0x3f0] sm:$0xff]  ;;  %v7819_v57 = vld [vmem:[#allocation21_spill] sm:$0xff] }
  0x82   :  { %3517 = vmatprep.subr.bf16.mxu1 %v6161_v3  ;;  %v6190_v16 = vpack.c.bf16 %v208_v47, %v204_v59  ;;  %v247_v44 = vsel %vm246_vm6, %v6184_v2, %v244_v12  ;;  %v6199_v0 = vpack.c.bf16 %v216_v29, %v212_v54  ;;  %v7820_v59 = vld [vmem:[#allocation22_spill] sm:$0xff]  ;;  %v7821_v47 = vld [vmem:[#allocation23_spill] sm:$0xff] }
  0x83   :  { %3455 = vmatpush1.bf16.msra.mxu0 %v6148_v51  ;;  %7812 = vst [vmem:[#allocation44_spill] sm:$0xff] %v6179_v56  ;;  %7813 = vst [vmem:[#allocation45_spill] sm:$0xff] %v6182_v49  ;;  %v7823_v12 = vld [vmem:[#allocation27_spill] sm:$0xff]  ;;  %v7824_v54 = vld [vmem:[#allocation30_spill] sm:$0xff] }
  0x84   :  { %3457 = vmatprep.subr.bf16.mxu0 %v6153_v63  ;;  %7814 = vst [vmem:[#allocation46_spill] sm:$0xff] %v6190_v16  ;;  %7816 = vst [vmem:[#allocation48_spill] sm:$0xff] %v6199_v0  ;;  %v7825_v29 = vld [vmem:[#allocation31_spill] sm:$0xff] }
  0x85   :  { %3519 = vmatpush1.bf16.msra.mxu1 %v6174_v38 }
  0x86   :  { %3521 = vmatprep.subr.bf16.mxu1 %v6179_v56 }
  0x87   :  { %3459 = vmatpush1.bf16.msra.mxu0 %v6166_v13 }
  0x88   :  { %3461 = vmatprep.subr.bf16.mxu0 %v6169_v34 }
  0x89   :  { %3523 = vmatpush1.bf16.msra.mxu1 %v6190_v16 }
  0x8a   :  { %3525 = vmatprep.subr.bf16.mxu1 %v6193_v23 }
  0x8b   :  { %3463 = vmatpush1.bf16.msra.mxu0 %v6182_v49 }
  0x8c   :  { %3529 = vmatprep.subr.bf16.mxu0 %v5980_v4 }
  0x8d   :  { %3527 = vmatpush1.bf16.msra.mxu1 %v6199_v0 }
  0x8e   :  { %335 = vmatmul.mubr.f32.vlgmr.msra.gmra.mrb[0].mxu0 %v247_v44  ;;  %3593 = vmatprep.subr.bf16.mxu1 %v5993_v22 }
  0x8f   :  { %3531 = vmatpush1.bf16.msra.mxu0 %v5982_v8 }
  0x90   :  { %3533 = vmatprep.subr.bf16.mxu0 %v5984_v9  ;;  %406 = vmatmul.mubr.f32.vlgmr.msra.gmra.mrb[0].mxu1 %v247_v44  ;;  %v7826_v44 = vld [vmem:[#allocation33_spill] sm:$0xff] }
  0x91   :  { %3595 = vmatpush1.bf16.msra.mxu1 %v5995_v25 }
  0x92   :  { %3597 = vmatprep.subr.bf16.mxu1 %v6005_v33 }
  0x93   :  { %3535 = vmatpush1.bf16.msra.mxu0 %v5988_v14 }
  0x94   :  { %3537 = vmatprep.subr.bf16.mxu0 %v5991_v17 }
  0x95   :  { %3599 = vmatpush1.bf16.msra.mxu1 %v6007_v37 }
  0x96   :  { %3601 = vmatprep.subr.bf16.mxu1 %v6013_v45 }
  0x97   :  { %3539 = vmatpush1.bf16.msra.mxu0 %v5998_v26 }
  0x98   :  { %3541 = vmatprep.subr.bf16.mxu0 %v6002_v30 }
  0x99   :  { %3603 = vmatpush1.bf16.msra.mxu1 %v6019_v48 }
  0x9a   :  { %3605 = vmatprep.subr.bf16.mxu1 %v6022_v52 }
  0x9b   :  { %3543 = vmatpush1.bf16.msra.mxu0 %v6011_v42 }
  0x9c   :  { %3545 = vmatprep.subr.bf16.mxu0 %v6016_v46 }
  0x9d   :  { %3607 = vmatpush1.bf16.msra.mxu1 %v6031_v62 }
  0x9e   :  { %3609 = vmatprep.subr.bf16.mxu1 %v6034_v1 }
  0x9f   :  { %3547 = vmatpush1.bf16.msra.mxu0 %v6025_v55 }
  0xa0   :  { %3549 = vmatprep.subr.bf16.mxu0 %v6028_v58 }
  0xa1   :  { %3611 = vmatpush1.bf16.msra.mxu1 %v6043_v15 }
  0xa2   :  { %3613 = vmatprep.subr.bf16.mxu1 %v6046_v18 }
  0xa3   :  { %3551 = vmatpush1.bf16.msra.mxu0 %v6037_v7 }
  0xa4   :  { %3553 = vmatprep.subr.bf16.mxu0 %v6040_v10 }
  0xa5   :  { %3615 = vmatpush1.bf16.msra.mxu1 %v6055_v32 }
  0xa6   :  { %3617 = vmatprep.subr.bf16.mxu1 %v6058_v35 }
  0xa7   :  { %3555 = vmatpush1.bf16.msra.mxu0 %v6049_v24 }
  0xa8   :  { %3557 = vmatprep.subr.bf16.mxu0 %v6052_v27 }
  0xa9   :  { %3619 = vmatpush1.bf16.msra.mxu1 %v6067_v50 }
  0xaa   :  { %3621 = vmatprep.subr.bf16.mxu1 %v6070_v53 }
  0xab   :  { %3559 = vmatpush1.bf16.msra.mxu0 %v6061_v41 }
  0xac   :  { %3561 = vmatprep.subr.bf16.mxu0 %v6064_v43 }
  0xad   :  { %3623 = vmatpush1.bf16.msra.mxu1 %v6079_v5 }
  0xae   :  { %3625 = vmatprep.subr.bf16.mxu1 %v6082_v11 }
  0xaf   :  { %3563 = vmatpush1.bf16.msra.mxu0 %v6073_v60 }
  0xb0   :  { %3565 = vmatprep.subr.bf16.mxu0 %v6076_v61 }
  0xb1   :  { %3627 = vmatpush1.bf16.msra.mxu1 %v6091_v31 }
  0xb2   :  { %3629 = vmatprep.subr.bf16.mxu1 %v7817_v39 }
  0xb3   :  { %3567 = vmatpush1.bf16.msra.mxu0 %v6085_v20 }
  0xb4   :  { %3569 = vmatprep.subr.bf16.mxu0 %v6088_v21  ;;  %v7827_v21 = vld [vmem:[#allocation34_spill] sm:$0xff] }
  0xb5   :  { %3631 = vmatpush1.bf16.msra.mxu1 %v7820_v59 }
  0xb6   :  { %3633 = vmatprep.subr.bf16.mxu1 %v7821_v47 }
  0xb7   :  { %3571 = vmatpush1.bf16.msra.mxu0 %v7818_v36  ;;  %v7828_v36 = vld [vmem:[#allocation35_spill] sm:$0xff] }
  0xb8   :  { %3573 = vmatprep.subr.bf16.mxu0 %v7819_v57  ;;  %v7829_v57 = vld [vmem:[#allocation39_spill] sm:$0xff] }
  0xb9   :  { %3635 = vmatpush1.bf16.msra.mxu1 %v6119_v40 }
  0xba   :  { %3637 = vmatprep.subr.bf16.mxu1 %v7824_v54 }
  0xbb   :  { %3575 = vmatpush1.bf16.msra.mxu0 %v7822_v6 }
  0xbc   :  { %3577 = vmatprep.subr.bf16.mxu0 %v7823_v12  ;;  %v7836_v12 = vld [vmem:[#allocation24_spill] sm:$0xff] }
  0xbd   :  { %3639 = vmatpush1.bf16.msra.mxu1 %v7827_v21 }
  0xbe   :  { %3641 = vmatprep.subr.bf16.mxu1 %v7828_v36  ;;  %v7835_v36 = vld [vmem:[#allocation25_spill] sm:$0xff] }
  0xbf   :  { %3579 = vmatpush1.bf16.msra.mxu0 %v7825_v29 }
  0xc0   :  { %3581 = vmatprep.subr.bf16.mxu0 %v7826_v44 }
  0xc1   :  { %3643 = vmatpush1.bf16.msra.mxu1 %v7829_v57 }
  0xc2   :  { %3645 = vmatprep.subr.bf16.mxu1 %v6161_v3 }
  0xc3   :  { %3583 = vmatpush1.bf16.msra.mxu0 %v6148_v51 }
  0xc4   :  { %3585 = vmatprep.subr.bf16.mxu0 %v6153_v63  ;;  %v250_v63 = vlaneseq }
  0xc5   :  { %3647 = vmatpush1.bf16.msra.mxu1 %v6174_v38 }
  0xc6   :  { %3649 = vmatprep.subr.bf16.mxu1 %v6179_v56  ;;  %v218_v56 = vld [vmem:[%s7614_s2] sm:$0xf] }
  0xc7   :  { %3587 = vmatpush1.bf16.msra.mxu0 %v6166_v13  ;;  %v6269_v13 = vshrl.u32 %v250_v63, 7 }
  0xc8   :  { %3589 = vmatprep.subr.bf16.mxu0 %v6169_v34 }
  0xc9   :  { %3651 = vmatpush1.bf16.msra.mxu1 %v6190_v16  ;;  %7830 = vst [vmem:[#allocation19_spill] sm:$0xff] %v6269_v13  ;;  %v7686_v34 = vsub.s32 0, %v6269_v13 }
  0xca   :  { %3653 = vmatprep.subr.bf16.mxu1 %v6193_v23 }
  0xcb   :  { %3591 = vmatpush1.bf16.msra.mxu0 %v6182_v49  ;;  %v7687_v49 = vsub.s32 1, %v6269_v13 }
  0xcc   :  { %3657 = vmatprep.subr.bf16.mxu0 %v5980_v4  ;;  %v6278_v4 = vrot.slane %v218_v56, %v7686_v34  ;;  %v7695_v34 = vsub.s32 2, %v6269_v13 }
  0xcd   :  { %3655 = vmatpush1.bf16.msra.mxu1 %v6199_v0  ;;  %v6282_v0 = vrot.slane %v218_v56, %v7687_v49 }
  0xce   :  { %3721 = vmatprep.subr.bf16.mxu1 %v5993_v22  ;;  %7831 = vst [vmem:[#allocation49_spill] sm:$0xff] %v6278_v4  ;;  %v7690_v22 = vsub.s32 3, %v6269_v13 }
  0xcf   :  { %7832 = vst [vmem:[#allocation50_spill] sm:$0xff] %v6282_v0 }
  0xd0   :  { %v6289_v3 = vrot.slane %v218_v56, %v7690_v22 }
  0xd2   :  { %7833 = vst [vmem:[#allocation51_spill] sm:$0xff] %v6289_v3 }
 0x161   :  { %v336_v63 = vpop.f32.mrb[0].mxu0 }
 0x162   :  { %v337_v23 = vadd.f32 %v336_v63, %v6278_v4  ;;  %v338_v16 = vpop.f32.mrb[1].mxu0  ;;  %v6295_v63 = vrot.slane %v218_v56, %v7695_v34 }
 0x163   :  { %v339_v38 = vadd.f32 %v338_v16, %v6282_v0  ;;  %v407_v57 = vpop.f32.mrb[0].mxu1 }
 0x164   :  { %v3299_v51 = vmul.f32 -1.442695, %v337_v23  ;;  %v409_v49 = vpop.f32.mrb[1].mxu1  ;;  %7834 = vst [vmem:[#allocation52_spill] sm:$0xff] %v6295_v63  ;;  %v408_v16 = vadd.f32 %v407_v57, %v6295_v63  ;;  %v7837_v57 = vld [vmem:[#allocation29_spill] sm:$0xff] }
 0x165   :  { %v3300_v44 = vmul.f32 -1.442695, %v339_v38  ;;  %v410_v29 = vadd.f32 %v409_v49, %v6289_v3  ;;  %v436_v49 = vsel %vm231_vm1, %v7836_v12, %v7835_v36 }
 0x166   :  { %5484 = vpow2.f32 %v3299_v51 }
 0x167   :  { %5486 = vpow2.f32 %v3300_v44  ;;  %v3301_v4 = vmul.f32 -1.442695, %v410_v29 }
 0x169   :  { %5488 = vpow2.f32 %v3301_v4  ;;  %v437_v4 = vsel %vm234_vm2, %v7837_v57, %v436_v49  ;;  %v446_v49 = vrot.slane %v6184_v2, 1 }
 0x16a   :  { %5490 = vtanh.f32 %v408_v16  ;;  %v7839_v16 = vld [vmem:[#allocation36_spill] sm:$0xff] }
 0x170   :  { %v5485_v23 = vpop.eup %5484 }
 0x171   :  { %v5487_v22 = vpop.eup %5486  ;;  %v415_v0 = vadd.f32 1.0, %v5485_v23 }
 0x172   :  { %v421_v38 = vadd.f32 1.0, %v5487_v22  ;;  %v7838_v22 = vld [vmem:[#allocation32_spill] sm:$0xff] }
 0x173   :  { %5492 = vrcp.f32 %v415_v0  ;;  %v5489_v51 = vpop.eup %5488  ;;  %v438_v0 = vsel %vm237_vm3, %v7838_v22, %v437_v4 }
 0x174   :  { %5494 = vrcp.f32 %v421_v38  ;;  %v5491_v44 = vpop.eup %5490  ;;  %v428_v56 = vadd.f32 1.0, %v5489_v51  ;;  %v439_v23 = vsel %vm240_vm4, %v7839_v16, %v438_v0  ;;  %v7841_v0 = vld [vmem:[#allocation18_spill] sm:$0xff] }
 0x175   :  { %v440_v38 = vsel %vm243_vm5, %v6159_v19, %v439_v23  ;;  %v7842_v23 = vld [vmem:[#allocation20_spill] sm:$0xff] }
 0x176   :  { %5496 = vrcp.f32 %v428_v56 }
 0x17d   :  { %v5493_v13 = vpop.eup %5492 }
 0x17e   :  { %v5495_v34 = vpop.eup %5494  ;;  %v432_v29 = vmul.f32 %v5493_v13, %v5491_v44  ;;  %v441_v13 = vsel %vm246_vm6, %v6172_v28, %v440_v38  ;;  %v7843_v38 = vld [vmem:[#allocation21_spill] sm:$0xff] }
 0x17f   :  { %v431_v3 = vmul.f32 0.0, %v5495_v34 }
 0x180   :  { %v5497_v51 = vpop.eup %5496 }
 0x181   :  { %v6303_v63 = vadd.f32 %v432_v29, %v431_v3  ;;  %v445_v3 = vrot.slane %v441_v13, 1  ;;  %v7845_v13 = vld [vmem:[#allocation35_spill] sm:$0xff] }
 0x183   :  { %5498 = vtanh.f32 %v6303_v63  ;;  %v447_v4 = vsel %vm444_vm7, %v445_v3, %v446_v49  ;;  %v7847_v3 = vld [vmem:[#allocation39_spill] sm:$0xff]  ;;  %v7848_v49 = vld [vmem:[#allocation33_spill] sm:$0xff] }
 0x18d   :  { %v5499_v34 = vpop.eup %5498 }
 0x18e   :  { %v6314_v44 = vmul.f32 %v5499_v34, %v5497_v51  ;;  %v7844_v51 = vld [vmem:[#allocation27_spill] sm:$0xff] }
 0x18f   :  { %v7846_v34 = vld [vmem:[#allocation31_spill] sm:$0xff] }
 0x190   :  { %7840 = vst [vmem:[#allocation25_spill] sm:$0xff] %v6314_v44  ;;  %v443_v56 = vrot.slane %v6314_v44, 7  ;;  %v7852_v44 = vld [vmem:[#allocation38_spill] sm:$0xff] }
 0x192   :  { %v448_v29 = vrot.slane %v443_v56, 1  ;;  %v7849_v56 = vld [vmem:[#allocation40_spill] sm:$0xff] }
 0x194   :  { %516 = vmatprep.mubr.f32.mxu0 %v448_v29  ;;  %587 = vmatprep.mubr.f32.mxu1 %v448_v29  ;;  %v7850_v29 = vld [vmem:[#allocation37_spill] sm:$0xff] }
 0x195   :  { %517 = vmatmul.mubr.f32.vlgmr.msra.gmra.mrb[2].mxu0 %v447_v4  ;;  %588 = vmatmul.mubr.f32.vlgmr.msra.gmra.mrb[2].mxu1 %v447_v4  ;;  %v7851_v4 = vld [vmem:[#allocation43_spill] sm:$0xff] }
 0x196   :  { %3659 = vmatpush1.bf16.msra.mxu0 %v5982_v8  ;;  %3723 = vmatpush1.bf16.msra.mxu1 %v5995_v25 }
 0x197   :  { %3661 = vmatprep.subr.bf16.mxu0 %v5984_v9  ;;  %3725 = vmatprep.subr.bf16.mxu1 %v6005_v33 }
 0x19a   :  { %3663 = vmatpush1.bf16.msra.mxu0 %v5988_v14  ;;  %3727 = vmatpush1.bf16.msra.mxu1 %v6007_v37 }
 0x19b   :  { %3665 = vmatprep.subr.bf16.mxu0 %v5991_v17  ;;  %3729 = vmatprep.subr.bf16.mxu1 %v6013_v45 }
 0x19e   :  { %3667 = vmatpush1.bf16.msra.mxu0 %v5998_v26  ;;  %3731 = vmatpush1.bf16.msra.mxu1 %v6019_v48 }
 0x19f   :  { %3669 = vmatprep.subr.bf16.mxu0 %v6002_v30  ;;  %3733 = vmatprep.subr.bf16.mxu1 %v6022_v52 }
 0x1a2   :  { %3671 = vmatpush1.bf16.msra.mxu0 %v6011_v42  ;;  %3735 = vmatpush1.bf16.msra.mxu1 %v6031_v62 }
 0x1a3   :  { %3673 = vmatprep.subr.bf16.mxu0 %v6016_v46  ;;  %3737 = vmatprep.subr.bf16.mxu1 %v6034_v1 }
 0x1a6   :  { %3675 = vmatpush1.bf16.msra.mxu0 %v6025_v55  ;;  %3739 = vmatpush1.bf16.msra.mxu1 %v6043_v15 }
 0x1a7   :  { %3677 = vmatprep.subr.bf16.mxu0 %v6028_v58  ;;  %3741 = vmatprep.subr.bf16.mxu1 %v6046_v18 }
 0x1aa   :  { %3679 = vmatpush1.bf16.msra.mxu0 %v6037_v7  ;;  %3743 = vmatpush1.bf16.msra.mxu1 %v6055_v32 }
 0x1ab   :  { %3681 = vmatprep.subr.bf16.mxu0 %v6040_v10  ;;  %3745 = vmatprep.subr.bf16.mxu1 %v6058_v35 }
 0x1ae   :  { %3683 = vmatpush1.bf16.msra.mxu0 %v6049_v24  ;;  %3747 = vmatpush1.bf16.msra.mxu1 %v6067_v50 }
 0x1af   :  { %3685 = vmatprep.subr.bf16.mxu0 %v6052_v27  ;;  %3749 = vmatprep.subr.bf16.mxu1 %v6070_v53 }
 0x1b2   :  { %3687 = vmatpush1.bf16.msra.mxu0 %v6061_v41  ;;  %3751 = vmatpush1.bf16.msra.mxu1 %v6079_v5 }
 0x1b3   :  { %3689 = vmatprep.subr.bf16.mxu0 %v6064_v43  ;;  %3753 = vmatprep.subr.bf16.mxu1 %v6082_v11 }
 0x1b6   :  { %3691 = vmatpush1.bf16.msra.mxu0 %v6073_v60  ;;  %3755 = vmatpush1.bf16.msra.mxu1 %v6091_v31 }
 0x1b7   :  { %3693 = vmatprep.subr.bf16.mxu0 %v6076_v61  ;;  %3757 = vmatprep.subr.bf16.mxu1 %v7817_v39 }
 0x1ba   :  { %3695 = vmatpush1.bf16.msra.mxu0 %v6085_v20  ;;  %3759 = vmatpush1.bf16.msra.mxu1 %v7820_v59 }
 0x1bb   :  { %3697 = vmatprep.subr.bf16.mxu0 %v7841_v0  ;;  %3761 = vmatprep.subr.bf16.mxu1 %v7821_v47 }
 0x1be   :  { %3699 = vmatpush1.bf16.msra.mxu0 %v7842_v23  ;;  %3763 = vmatpush1.bf16.msra.mxu1 %v6119_v40  ;;  %v7863_v40 = vld [vmem:[#allocation50_spill] sm:$0xff] }
 0x1bf   :  { %3701 = vmatprep.subr.bf16.mxu0 %v7843_v38  ;;  %3765 = vmatprep.subr.bf16.mxu1 %v7824_v54  ;;  %v7862_v54 = vld [vmem:[#allocation49_spill] sm:$0xff] }
 0x1c2   :  { %3703 = vmatpush1.bf16.msra.mxu0 %v7822_v6  ;;  %3767 = vmatpush1.bf16.msra.mxu1 %v7827_v21  ;;  %v7853_v6 = vld [vmem:[#allocation44_spill] sm:$0xff]  ;;  %v7854_v21 = vld [vmem:[#allocation41_spill] sm:$0xff] }
 0x1c3   :  { %3705 = vmatprep.subr.bf16.mxu0 %v7844_v51  ;;  %3769 = vmatprep.subr.bf16.mxu1 %v7845_v13  ;;  %v7855_v51 = vld [vmem:[#allocation46_spill] sm:$0xff] }
 0x1c4   :  { %v7856_v13 = vld [vmem:[#allocation42_spill] sm:$0xff] }
 0x1c6   :  { %3707 = vmatpush1.bf16.msra.mxu0 %v7846_v34  ;;  %3771 = vmatpush1.bf16.msra.mxu1 %v7847_v3  ;;  %v7857_v34 = vld [vmem:[#allocation47_spill] sm:$0xff]  ;;  %v7858_v3 = vld [vmem:[#allocation45_spill] sm:$0xff] }
 0x1c7   :  { %3709 = vmatprep.subr.bf16.mxu0 %v7848_v49  ;;  %3773 = vmatprep.subr.bf16.mxu1 %v7849_v56  ;;  %v7859_v49 = vld [vmem:[#allocation48_spill] sm:$0xff]  ;;  %v7860_v56 = vld [vmem:[#allocation15_spill] sm:$0xff] }
 0x1ca   :  { %3711 = vmatpush1.bf16.msra.mxu0 %v7850_v29  ;;  %3775 = vmatpush1.bf16.msra.mxu1 %v7851_v4  ;;  %v7861_v29 = vld [vmem:[#allocation16_spill] sm:$0xff] }
 0x1cb   :  { %3713 = vmatprep.subr.bf16.mxu0 %v7852_v44  ;;  %3777 = vmatprep.subr.bf16.mxu1 %v7853_v6 }
 0x1ce   :  { %3715 = vmatpush1.bf16.msra.mxu0 %v7854_v21  ;;  %3779 = vmatpush1.bf16.msra.mxu1 %v7855_v51 }
 0x1cf   :  { %3717 = vmatprep.subr.bf16.mxu0 %v7856_v13  ;;  %3781 = vmatprep.subr.bf16.mxu1 %v7857_v34  ;;  %v7864_v34 = vld [vmem:[#allocation51_spill] sm:$0xff] }
 0x1d2   :  { %3719 = vmatpush1.bf16.msra.mxu0 %v7858_v3  ;;  %3783 = vmatpush1.bf16.msra.mxu1 %v7859_v49  ;;  %v7865_v49 = vld [vmem:[#allocation52_spill] sm:$0xff] }
 0x1d3   :  { %3785 = vmatprep.subr.bf16.mxu0 %v7860_v56  ;;  %3849 = vmatprep.subr.bf16.mxu1 %v7861_v29 }
 0x268   :  { %v518_v4 = vpop.f32.mrb[2].mxu0  ;;  %v589_v44 = vpop.f32.mrb[2].mxu1 }
 0x269   :  { %v519_v6 = vadd.f32 %v518_v4, %v7862_v54  ;;  %v520_v38 = vpop.f32.mrb[3].mxu0  ;;  %v591_v21 = vpop.f32.mrb[3].mxu1  ;;  %v590_v0 = vadd.f32 %v589_v44, %v7865_v49 }
 0x26a   :  { %v521_v51 = vadd.f32 %v520_v38, %v7863_v40  ;;  %v592_v3 = vadd.f32 %v591_v21, %v7864_v34  ;;  %v618_v21 = vsel %vm234_vm2, %v7836_v12, %v7835_v36 }
 0x26b   :  { %v3302_v23 = vmul.f32 -1.442695, %v519_v6 }
 0x26c   :  { %v3303_v13 = vmul.f32 -1.442695, %v521_v51  ;;  %v3304_v47 = vmul.f32 -1.442695, %v592_v3 }
 0x26d   :  { %5500 = vpow2.f32 %v3302_v23 }
 0x26e   :  { %5502 = vpow2.f32 %v3303_v13 }
 0x26f   :  { %5504 = vpow2.f32 %v3304_v47  ;;  %v619_v47 = vsel %vm237_vm3, %v7837_v57, %v618_v21  ;;  %v7869_v21 = vld [vmem:[#allocation18_spill] sm:$0xff] }
 0x270   :  { %5506 = vtanh.f32 %v590_v0  ;;  %v623_v0 = vsel %vm228_vm0, %v6184_v2, %v6172_v28 }
 0x277   :  { %v5501_v56 = vpop.eup %5500 }
 0x278   :  { %v5503_v29 = vpop.eup %5502  ;;  %v597_v59 = vadd.f32 1.0, %v5501_v56 }
 0x279   :  { %v603_v20 = vadd.f32 1.0, %v5503_v29  ;;  %v5505_v4 = vpop.eup %5504 }
 0x27a   :  { %5508 = vrcp.f32 %v597_v59  ;;  %v5507_v54 = vpop.eup %5506  ;;  %v610_v6 = vadd.f32 1.0, %v5505_v4  ;;  %v628_v4 = vrot.slane %v623_v0, 2  ;;  %v7875_v0 = vld [vmem:[#allocation26_spill] sm:$0xff] }
 0x27b   :  { %5510 = vrcp.f32 %v603_v20  ;;  %v620_v20 = vsel %vm240_vm4, %v7838_v22, %v619_v47  ;;  %v7870_v47 = vld [vmem:[#allocation23_spill] sm:$0xff] }
 0x27c   :  { %5512 = vrcp.f32 %v610_v6  ;;  %v621_v59 = vsel %vm243_vm5, %v7839_v16, %v620_v20  ;;  %v7871_v20 = vld [vmem:[#allocation20_spill] sm:$0xff] }
 0x284   :  { %v5509_v38 = vpop.eup %5508 }
 0x285   :  { %v5511_v51 = vpop.eup %5510  ;;  %v614_v23 = vmul.f32 %v5509_v38, %v5507_v54 }
 0x286   :  { %v613_v13 = vmul.f32 %v5511_v51, %v6303_v63  ;;  %v5513_v54 = vpop.eup %5512  ;;  %v622_v63 = vsel %vm246_vm6, %v6159_v19, %v621_v59  ;;  %v7872_v59 = vld [vmem:[#allocation28_spill] sm:$0xff] }
 0x287   :  { %v627_v29 = vrot.slane %v622_v63, 2  ;;  %v7874_v63 = vld [vmem:[#allocation30_spill] sm:$0xff] }
 0x288   :  { %v6390_v44 = vadd.f32 %v614_v23, %v613_v13  ;;  %v7867_v23 = vld [vmem:[#allocation17_spill] sm:$0xff]  ;;  %v7868_v13 = vld [vmem:[#allocation22_spill] sm:$0xff] }
 0x289   :  { %v629_v51 = vsel %vm626_vm8, %v627_v29, %v628_v4  ;;  %v7877_v29 = vld [vmem:[#allocation27_spill] sm:$0xff] }
 0x28a   :  { %5514 = vtanh.f32 %v6390_v44  ;;  %v7878_v4 = vld [vmem:[#allocation35_spill] sm:$0xff] }
 0x294   :  { %v5515_v3 = vpop.eup %5514 }
 0x295   :  { %v6404_v56 = vmul.f32 %v5515_v3, %v5513_v54  ;;  %v7873_v54 = vld [vmem:[#allocation21_spill] sm:$0xff]  ;;  %v7876_v3 = vld [vmem:[#allocation34_spill] sm:$0xff] }
 0x297   :  { %7866 = vst [vmem:[#allocation24_spill] sm:$0xff] %v6404_v56  ;;  %v625_v38 = vrot.slane %v6404_v56, 6  ;;  %v7882_v56 = vld [vmem:[#allocation40_spill] sm:$0xff] }
 0x299   :  { %v630_v6 = vrot.slane %v625_v38, 2  ;;  %v7879_v38 = vld [vmem:[#allocation31_spill] sm:$0xff] }
 0x29b   :  { %698 = vmatprep.mubr.f32.mxu0 %v630_v6  ;;  %769 = vmatprep.mubr.f32.mxu1 %v630_v6  ;;  %v7880_v6 = vld [vmem:[#allocation39_spill] sm:$0xff] }
 0x29c   :  { %699 = vmatmul.mubr.f32.vlgmr.msra.gmra.mrb[4].mxu0 %v629_v51  ;;  %770 = vmatmul.mubr.f32.vlgmr.msra.gmra.mrb[4].mxu1 %v629_v51  ;;  %v7881_v51 = vld [vmem:[#allocation33_spill] sm:$0xff] }
 0x29d   :  { %3787 = vmatpush1.bf16.msra.mxu0 %v5982_v8  ;;  %3851 = vmatpush1.bf16.msra.mxu1 %v5995_v25 }
 0x29e   :  { %3789 = vmatprep.subr.bf16.mxu0 %v5984_v9  ;;  %3853 = vmatprep.subr.bf16.mxu1 %v6005_v33 }
 0x2a1   :  { %3791 = vmatpush1.bf16.msra.mxu0 %v5988_v14  ;;  %3855 = vmatpush1.bf16.msra.mxu1 %v6007_v37 }
 0x2a2   :  { %3793 = vmatprep.subr.bf16.mxu0 %v5991_v17  ;;  %3857 = vmatprep.subr.bf16.mxu1 %v6013_v45 }
 0x2a5   :  { %3795 = vmatpush1.bf16.msra.mxu0 %v5998_v26  ;;  %3859 = vmatpush1.bf16.msra.mxu1 %v6019_v48 }
 0x2a6   :  { %3797 = vmatprep.subr.bf16.mxu0 %v6002_v30  ;;  %3861 = vmatprep.subr.bf16.mxu1 %v6022_v52 }
 0x2a9   :  { %3799 = vmatpush1.bf16.msra.mxu0 %v6011_v42  ;;  %3863 = vmatpush1.bf16.msra.mxu1 %v6031_v62 }
 0x2aa   :  { %3801 = vmatprep.subr.bf16.mxu0 %v6016_v46  ;;  %3865 = vmatprep.subr.bf16.mxu1 %v6034_v1 }
 0x2ad   :  { %3803 = vmatpush1.bf16.msra.mxu0 %v6025_v55  ;;  %3867 = vmatpush1.bf16.msra.mxu1 %v6043_v15 }
 0x2ae   :  { %3805 = vmatprep.subr.bf16.mxu0 %v6028_v58  ;;  %3869 = vmatprep.subr.bf16.mxu1 %v6046_v18 }
 0x2b1   :  { %3807 = vmatpush1.bf16.msra.mxu0 %v6037_v7  ;;  %3871 = vmatpush1.bf16.msra.mxu1 %v6055_v32 }
 0x2b2   :  { %3809 = vmatprep.subr.bf16.mxu0 %v6040_v10  ;;  %3873 = vmatprep.subr.bf16.mxu1 %v6058_v35 }
 0x2b5   :  { %3811 = vmatpush1.bf16.msra.mxu0 %v6049_v24  ;;  %3875 = vmatpush1.bf16.msra.mxu1 %v6067_v50 }
 0x2b6   :  { %3813 = vmatprep.subr.bf16.mxu0 %v6052_v27  ;;  %3877 = vmatprep.subr.bf16.mxu1 %v6070_v53 }
 0x2b9   :  { %3815 = vmatpush1.bf16.msra.mxu0 %v6061_v41  ;;  %3879 = vmatpush1.bf16.msra.mxu1 %v6079_v5 }
 0x2ba   :  { %3817 = vmatprep.subr.bf16.mxu0 %v6064_v43  ;;  %3881 = vmatprep.subr.bf16.mxu1 %v6082_v11 }
 0x2bd   :  { %3819 = vmatpush1.bf16.msra.mxu0 %v6073_v60  ;;  %3883 = vmatpush1.bf16.msra.mxu1 %v6091_v31 }
 0x2be   :  { %3821 = vmatprep.subr.bf16.mxu0 %v6076_v61  ;;  %3885 = vmatprep.subr.bf16.mxu1 %v7817_v39 }
 0x2c1   :  { %3823 = vmatpush1.bf16.msra.mxu0 %v7867_v23  ;;  %3887 = vmatpush1.bf16.msra.mxu1 %v7868_v13 }
 0x2c2   :  { %3825 = vmatprep.subr.bf16.mxu0 %v7869_v21  ;;  %3889 = vmatprep.subr.bf16.mxu1 %v7870_v47 }
 0x2c5   :  { %3827 = vmatpush1.bf16.msra.mxu0 %v7871_v20  ;;  %3891 = vmatpush1.bf16.msra.mxu1 %v7872_v59  ;;  %v7883_v59 = vld [vmem:[#allocation37_spill] sm:$0xff] }
 0x2c6   :  { %3829 = vmatprep.subr.bf16.mxu0 %v7873_v54  ;;  %3893 = vmatprep.subr.bf16.mxu1 %v7874_v63  ;;  %v7884_v54 = vld [vmem:[#allocation43_spill] sm:$0xff]  ;;  %v7885_v63 = vld [vmem:[#allocation38_spill] sm:$0xff]  ;;  %v7895_v20 = vld [vmem:[#allocation49_spill] sm:$0xff] }
 0x2c9   :  { %3831 = vmatpush1.bf16.msra.mxu0 %v7875_v0  ;;  %3895 = vmatpush1.bf16.msra.mxu1 %v7876_v3  ;;  %v7886_v0 = vld [vmem:[#allocation44_spill] sm:$0xff]  ;;  %v7887_v3 = vld [vmem:[#allocation41_spill] sm:$0xff] }
 0x2ca   :  { %3833 = vmatprep.subr.bf16.mxu0 %v7877_v29  ;;  %3897 = vmatprep.subr.bf16.mxu1 %v7878_v4  ;;  %v7888_v29 = vld [vmem:[#allocation46_spill] sm:$0xff] }
 0x2cb   :  { %v7889_v4 = vld [vmem:[#allocation42_spill] sm:$0xff] }
 0x2cd   :  { %3835 = vmatpush1.bf16.msra.mxu0 %v7879_v38  ;;  %3899 = vmatpush1.bf16.msra.mxu1 %v7880_v6  ;;  %v7890_v38 = vld [vmem:[#allocation47_spill] sm:$0xff]  ;;  %v7891_v6 = vld [vmem:[#allocation45_spill] sm:$0xff] }
 0x2ce   :  { %3837 = vmatprep.subr.bf16.mxu0 %v7881_v51  ;;  %3901 = vmatprep.subr.bf16.mxu1 %v7882_v56  ;;  %v7892_v51 = vld [vmem:[#allocation48_spill] sm:$0xff]  ;;  %v7893_v56 = vld [vmem:[#allocation15_spill] sm:$0xff] }
 0x2d1   :  { %3839 = vmatpush1.bf16.msra.mxu0 %v7883_v59  ;;  %3903 = vmatpush1.bf16.msra.mxu1 %v7884_v54  ;;  %v7894_v59 = vld [vmem:[#allocation16_spill] sm:$0xff] }
 0x2d2   :  { %3841 = vmatprep.subr.bf16.mxu0 %v7885_v63  ;;  %3905 = vmatprep.subr.bf16.mxu1 %v7886_v0 }
 0x2d5   :  { %3843 = vmatpush1.bf16.msra.mxu0 %v7887_v3  ;;  %3907 = vmatpush1.bf16.msra.mxu1 %v7888_v29 }
 0x2d6   :  { %3845 = vmatprep.subr.bf16.mxu0 %v7889_v4  ;;  %3909 = vmatprep.subr.bf16.mxu1 %v7890_v38 }
 0x2d9   :  { %3847 = vmatpush1.bf16.msra.mxu0 %v7891_v6  ;;  %3911 = vmatpush1.bf16.msra.mxu1 %v7892_v51 }
 0x2da   :  { %3913 = vmatprep.subr.bf16.mxu0 %v7893_v56  ;;  %3977 = vmatprep.subr.bf16.mxu1 %v7894_v59 }
 0x36f   :  { %v700_v54 = vpop.f32.mrb[4].mxu0  ;;  %v771_v63 = vpop.f32.mrb[4].mxu1 }
 0x370   :  { %v701_v0 = vadd.f32 %v700_v54, %v7895_v20  ;;  %v702_v47 = vpop.f32.mrb[5].mxu0  ;;  %v773_v3 = vpop.f32.mrb[5].mxu1  ;;  %v772_v51 = vadd.f32 %v771_v63, %v7865_v49  ;;  %v800_v63 = vsel %vm237_vm3, %v7836_v12, %v7835_v36 }
 0x371   :  { %v703_v29 = vadd.f32 %v702_v47, %v7863_v40  ;;  %v774_v6 = vadd.f32 %v773_v3, %v7864_v34 }
 0x372   :  { %v3305_v21 = vmul.f32 -1.442695, %v701_v0 }
 0x373   :  { %v3306_v4 = vmul.f32 -1.442695, %v703_v29  ;;  %v3307_v38 = vmul.f32 -1.442695, %v774_v6 }
 0x374   :  { %5516 = vpow2.f32 %v3305_v21 }
 0x375   :  { %5518 = vpow2.f32 %v3306_v4 }
 0x376   :  { %5520 = vpow2.f32 %v3307_v38 }
 0x377   :  { %5522 = vtanh.f32 %v772_v51 }
 0x37e   :  { %v5517_v56 = vpop.eup %5516 }
 0x37f   :  { %v5519_v59 = vpop.eup %5518  ;;  %v779_v13 = vadd.f32 1.0, %v5517_v56  ;;  %v801_v56 = vsel %vm240_vm4, %v7837_v57, %v800_v63  ;;  %v7900_v63 = vld [vmem:[#allocation23_spill] sm:$0xff] }
 0x380   :  { %v785_v23 = vadd.f32 1.0, %v5519_v59  ;;  %v5521_v54 = vpop.eup %5520 }
 0x381   :  { %5524 = vrcp.f32 %v779_v13  ;;  %v5523_v20 = vpop.eup %5522  ;;  %v792_v0 = vadd.f32 1.0, %v5521_v54  ;;  %v804_v13 = vsel %vm228_vm0, %v6172_v28, %v6159_v19 }
 0x382   :  { %5526 = vrcp.f32 %v785_v23  ;;  %v802_v23 = vsel %vm243_vm5, %v7838_v22, %v801_v56  ;;  %v805_v59 = vsel %vm231_vm1, %v6184_v2, %v804_v13  ;;  %v7901_v56 = vld [vmem:[#allocation20_spill] sm:$0xff]  ;;  %v7903_v13 = vld [vmem:[#allocation21_spill] sm:$0xff] }
 0x383   :  { %5528 = vrcp.f32 %v792_v0  ;;  %v810_v51 = vrot.slane %v805_v59, 3  ;;  %v7906_v59 = vld [vmem:[#allocation34_spill] sm:$0xff] }
 0x38b   :  { %v5525_v47 = vpop.eup %5524 }
 0x38c   :  { %v5527_v29 = vpop.eup %5526  ;;  %v796_v21 = vmul.f32 %v5525_v47, %v5523_v20  ;;  %v803_v20 = vsel %vm246_vm6, %v7839_v16, %v802_v23  ;;  %v7902_v23 = vld [vmem:[#allocation28_spill] sm:$0xff] }
 0x38d   :  { %v795_v4 = vmul.f32 %v5527_v29, %v6390_v44  ;;  %v5529_v44 = vpop.eup %5528  ;;  %v809_v6 = vrot.slane %v803_v20, 3  ;;  %v7897_v29 = vld [vmem:[#allocation17_spill] sm:$0xff]  ;;  %v7905_v20 = vld [vmem:[#allocation26_spill] sm:$0xff] }
 0x38f   :  { %v6476_v3 = vadd.f32 %v796_v21, %v795_v4  ;;  %v811_v0 = vsel %vm808_vm9, %v809_v6, %v810_v51  ;;  %v7898_v21 = vld [vmem:[#allocation22_spill] sm:$0xff]  ;;  %v7908_v6 = vld [vmem:[#allocation35_spill] sm:$0xff] }
 0x390   :  { %v7899_v4 = vld [vmem:[#allocation18_spill] sm:$0xff]  ;;  %v7909_v51 = vld [vmem:[#allocation31_spill] sm:$0xff] }
 0x391   :  { %5530 = vtanh.f32 %v6476_v3 }
 0x39b   :  { %v5531_v36 = vpop.eup %5530 }
 0x39c   :  { %v6493_v38 = vmul.f32 %v5531_v36, %v5529_v44  ;;  %v7904_v44 = vld [vmem:[#allocation30_spill] sm:$0xff]  ;;  %v7907_v36 = vld [vmem:[#allocation27_spill] sm:$0xff] }
 0x39e   :  { %7896 = vst [vmem:[#allocation29_spill] sm:$0xff] %v6493_v38  ;;  %v807_v54 = vrot.slane %v6493_v38, 5  ;;  %v7913_v38 = vld [vmem:[#allocation37_spill] sm:$0xff] }
 0x3a0   :  { %v812_v47 = vrot.slane %v807_v54, 3  ;;  %v7910_v54 = vld [vmem:[#allocation39_spill] sm:$0xff] }
 0x3a2   :  { %880 = vmatprep.mubr.f32.mxu0 %v812_v47  ;;  %951 = vmatprep.mubr.f32.mxu1 %v812_v47  ;;  %v7911_v47 = vld [vmem:[#allocation33_spill] sm:$0xff] }
 0x3a3   :  { %881 = vmatmul.mubr.f32.vlgmr.msra.gmra.mrb[6].mxu0 %v811_v0  ;;  %952 = vmatmul.mubr.f32.vlgmr.msra.gmra.mrb[6].mxu1 %v811_v0  ;;  %v7912_v0 = vld [vmem:[#allocation40_spill] sm:$0xff] }
 0x3a4   :  { %3915 = vmatpush1.bf16.msra.mxu0 %v5982_v8  ;;  %3979 = vmatpush1.bf16.msra.mxu1 %v5995_v25 }
 0x3a5   :  { %3917 = vmatprep.subr.bf16.mxu0 %v5984_v9  ;;  %3981 = vmatprep.subr.bf16.mxu1 %v6005_v33 }
 0x3a8   :  { %3919 = vmatpush1.bf16.msra.mxu0 %v5988_v14  ;;  %3983 = vmatpush1.bf16.msra.mxu1 %v6007_v37 }
 0x3a9   :  { %3921 = vmatprep.subr.bf16.mxu0 %v5991_v17  ;;  %3985 = vmatprep.subr.bf16.mxu1 %v6013_v45 }
 0x3ac   :  { %3923 = vmatpush1.bf16.msra.mxu0 %v5998_v26  ;;  %3987 = vmatpush1.bf16.msra.mxu1 %v6019_v48 }
 0x3ad   :  { %3925 = vmatprep.subr.bf16.mxu0 %v6002_v30  ;;  %3989 = vmatprep.subr.bf16.mxu1 %v6022_v52 }
 0x3b0   :  { %3927 = vmatpush1.bf16.msra.mxu0 %v6011_v42  ;;  %3991 = vmatpush1.bf16.msra.mxu1 %v6031_v62 }
 0x3b1   :  { %3929 = vmatprep.subr.bf16.mxu0 %v6016_v46  ;;  %3993 = vmatprep.subr.bf16.mxu1 %v6034_v1 }
 0x3b4   :  { %3931 = vmatpush1.bf16.msra.mxu0 %v6025_v55  ;;  %3995 = vmatpush1.bf16.msra.mxu1 %v6043_v15 }
 0x3b5   :  { %3933 = vmatprep.subr.bf16.mxu0 %v6028_v58  ;;  %3997 = vmatprep.subr.bf16.mxu1 %v6046_v18 }
 0x3b8   :  { %3935 = vmatpush1.bf16.msra.mxu0 %v6037_v7  ;;  %3999 = vmatpush1.bf16.msra.mxu1 %v6055_v32 }
 0x3b9   :  { %3937 = vmatprep.subr.bf16.mxu0 %v6040_v10  ;;  %4001 = vmatprep.subr.bf16.mxu1 %v6058_v35 }
 0x3bc   :  { %3939 = vmatpush1.bf16.msra.mxu0 %v6049_v24  ;;  %4003 = vmatpush1.bf16.msra.mxu1 %v6067_v50 }
 0x3bd   :  { %3941 = vmatprep.subr.bf16.mxu0 %v6052_v27  ;;  %4005 = vmatprep.subr.bf16.mxu1 %v6070_v53 }
 0x3c0   :  { %3943 = vmatpush1.bf16.msra.mxu0 %v6061_v41  ;;  %4007 = vmatpush1.bf16.msra.mxu1 %v6079_v5 }
 0x3c1   :  { %3945 = vmatprep.subr.bf16.mxu0 %v6064_v43  ;;  %4009 = vmatprep.subr.bf16.mxu1 %v6082_v11 }
 0x3c4   :  { %3947 = vmatpush1.bf16.msra.mxu0 %v6073_v60  ;;  %4011 = vmatpush1.bf16.msra.mxu1 %v6091_v31 }
 0x3c5   :  { %3949 = vmatprep.subr.bf16.mxu0 %v6076_v61  ;;  %4013 = vmatprep.subr.bf16.mxu1 %v7817_v39 }
 0x3c8   :  { %3951 = vmatpush1.bf16.msra.mxu0 %v7897_v29  ;;  %4015 = vmatpush1.bf16.msra.mxu1 %v7898_v21 }
 0x3c9   :  { %3953 = vmatprep.subr.bf16.mxu0 %v7899_v4  ;;  %4017 = vmatprep.subr.bf16.mxu1 %v7900_v63 }
 0x3cc   :  { %3955 = vmatpush1.bf16.msra.mxu0 %v7901_v56  ;;  %4019 = vmatpush1.bf16.msra.mxu1 %v7902_v23  ;;  %v7925_v23 = vld [vmem:[#allocation49_spill] sm:$0xff] }
 0x3cd   :  { %3957 = vmatprep.subr.bf16.mxu0 %v7903_v13  ;;  %4021 = vmatprep.subr.bf16.mxu1 %v7904_v44  ;;  %v7914_v13 = vld [vmem:[#allocation43_spill] sm:$0xff]  ;;  %v7915_v44 = vld [vmem:[#allocation38_spill] sm:$0xff] }
 0x3d0   :  { %3959 = vmatpush1.bf16.msra.mxu0 %v7905_v20  ;;  %4023 = vmatpush1.bf16.msra.mxu1 %v7906_v59  ;;  %v7916_v20 = vld [vmem:[#allocation44_spill] sm:$0xff]  ;;  %v7917_v59 = vld [vmem:[#allocation41_spill] sm:$0xff] }
 0x3d1   :  { %3961 = vmatprep.subr.bf16.mxu0 %v7907_v36  ;;  %4025 = vmatprep.subr.bf16.mxu1 %v7908_v6  ;;  %v7918_v36 = vld [vmem:[#allocation46_spill] sm:$0xff] }
 0x3d2   :  { %v7919_v6 = vld [vmem:[#allocation42_spill] sm:$0xff] }
 0x3d4   :  { %3963 = vmatpush1.bf16.msra.mxu0 %v7909_v51  ;;  %4027 = vmatpush1.bf16.msra.mxu1 %v7910_v54  ;;  %v7920_v51 = vld [vmem:[#allocation47_spill] sm:$0xff]  ;;  %v7921_v54 = vld [vmem:[#allocation45_spill] sm:$0xff] }
 0x3d5   :  { %3965 = vmatprep.subr.bf16.mxu0 %v7911_v47  ;;  %4029 = vmatprep.subr.bf16.mxu1 %v7912_v0  ;;  %v7922_v47 = vld [vmem:[#allocation48_spill] sm:$0xff]  ;;  %v7923_v0 = vld [vmem:[#allocation15_spill] sm:$0xff] }
 0x3d8   :  { %3967 = vmatpush1.bf16.msra.mxu0 %v7913_v38  ;;  %4031 = vmatpush1.bf16.msra.mxu1 %v7914_v13  ;;  %v7924_v38 = vld [vmem:[#allocation16_spill] sm:$0xff] }
 0x3d9   :  { %3969 = vmatprep.subr.bf16.mxu0 %v7915_v44  ;;  %4033 = vmatprep.subr.bf16.mxu1 %v7916_v20 }
 0x3dc   :  { %3971 = vmatpush1.bf16.msra.mxu0 %v7917_v59  ;;  %4035 = vmatpush1.bf16.msra.mxu1 %v7918_v36 }
 0x3dd   :  { %3973 = vmatprep.subr.bf16.mxu0 %v7919_v6  ;;  %4037 = vmatprep.subr.bf16.mxu1 %v7920_v51 }
 0x3e0   :  { %3975 = vmatpush1.bf16.msra.mxu0 %v7921_v54  ;;  %4039 = vmatpush1.bf16.msra.mxu1 %v7922_v47 }
 0x3e1   :  { %4041 = vmatprep.subr.bf16.mxu0 %v7923_v0  ;;  %4105 = vmatprep.subr.bf16.mxu1 %v7924_v38 }
 0x476   :  { %v882_v13 = vpop.f32.mrb[6].mxu0  ;;  %v953_v44 = vpop.f32.mrb[6].mxu1 }
 0x477   :  { %v883_v20 = vadd.f32 %v882_v13, %v7925_v23  ;;  %v884_v56 = vpop.f32.mrb[7].mxu0  ;;  %v955_v59 = vpop.f32.mrb[7].mxu1  ;;  %v954_v47 = vadd.f32 %v953_v44, %v7865_v49  ;;  %v6568_v44 = vld [vmem:[#allocation2] sm:$0xff] }
 0x478   :  { %v885_v36 = vadd.f32 %v884_v56, %v7863_v40  ;;  %v956_v54 = vadd.f32 %v955_v59, %v7864_v34 }
 0x479   :  { %v3308_v63 = vmul.f32 -1.442695, %v883_v20 }
 0x47a   :  { %v3309_v6 = vmul.f32 -1.442695, %v885_v36  ;;  %v3310_v51 = vmul.f32 -1.442695, %v956_v54 }
 0x47b   :  { %5532 = vpow2.f32 %v3308_v63 }
 0x47c   :  { %5534 = vpow2.f32 %v3309_v6 }
 0x47d   :  { %5536 = vpow2.f32 %v3310_v51 }
 0x47e   :  { %5538 = vtanh.f32 %v954_v47 }
 0x485   :  { %v5533_v0 = vpop.eup %5532 }
 0x486   :  { %v5535_v38 = vpop.eup %5534  ;;  %v961_v4 = vadd.f32 1.0, %v5533_v0 }
 0x487   :  { %v967_v21 = vadd.f32 1.0, %v5535_v38  ;;  %v5537_v13 = vpop.eup %5536  ;;  %v982_v38 = vsel %vm240_vm4, %v7836_v12, %v6568_v44 }
 0x488   :  { %5540 = vrcp.f32 %v961_v4  ;;  %v5539_v23 = vpop.eup %5538  ;;  %v974_v20 = vadd.f32 1.0, %v5537_v13  ;;  %v983_v4 = vsel %vm243_vm5, %v7837_v57, %v982_v38  ;;  %v7928_v38 = vld [vmem:[#allocation18_spill] sm:$0xff] }
 0x489   :  { %5542 = vrcp.f32 %v967_v21  ;;  %v985_v21 = vsel %vm228_vm0, %v6159_v19, %v7839_v16  ;;  %v984_v51 = vsel %vm246_vm6, %v7838_v22, %v983_v4  ;;  %v7930_v4 = vld [vmem:[#allocation20_spill] sm:$0xff] }
 0x48a   :  { %5544 = vrcp.f32 %v974_v20  ;;  %v991_v13 = vrot.slane %v984_v51, 4  ;;  %v7933_v51 = vld [vmem:[#allocation30_spill] sm:$0xff] }
 0x492   :  { %v5541_v56 = vpop.eup %5540 }
 0x493   :  { %v5543_v36 = vpop.eup %5542  ;;  %v978_v63 = vmul.f32 %v5541_v56, %v5539_v23 }
 0x494   :  { %v977_v6 = vmul.f32 %v5543_v36, %v6476_v3  ;;  %v986_v3 = vsel %vm231_vm1, %v6172_v28, %v985_v21  ;;  %v5545_v23 = vpop.eup %5544  ;;  %v7929_v21 = vld [vmem:[#allocation23_spill] sm:$0xff] }
 0x495   :  { %v987_v54 = vsel %vm234_vm2, %v6184_v2, %v986_v3  ;;  %v7931_v3 = vld [vmem:[#allocation28_spill] sm:$0xff] }
 0x496   :  { %v6565_v59 = vadd.f32 %v978_v63, %v977_v6  ;;  %v992_v56 = vrot.slane %v987_v54, 4  ;;  %v7927_v6 = vld [vmem:[#allocation22_spill] sm:$0xff] }
 0x497   :  { %v7934_v54 = vld [vmem:[#allocation26_spill] sm:$0xff] }
 0x498   :  { %5546 = vtanh.f32 %v6565_v59  ;;  %v993_v63 = vsel %vm990_vm10, %v991_v13, %v992_v56  ;;  %v7936_v13 = vld [vmem:[#allocation27_spill] sm:$0xff] }
 0x499   :  { %v7937_v56 = vld [vmem:[#allocation35_spill] sm:$0xff] }
 0x4a2   :  { %v5547_v47 = vpop.eup %5546 }
 0x4a3   :  { %v6584_v0 = vmul.f32 %v5547_v47, %v5545_v23  ;;  %v7932_v23 = vld [vmem:[#allocation21_spill] sm:$0xff]  ;;  %v7935_v47 = vld [vmem:[#allocation34_spill] sm:$0xff] }
 0x4a5   :  { %7926 = vst [vmem:[#allocation32_spill] sm:$0xff] %v6584_v0  ;;  %v989_v20 = vrot.slane %v6584_v0, 4  ;;  %v7941_v0 = vld [vmem:[#allocation40_spill] sm:$0xff] }
 0x4a7   :  { %v994_v36 = vrot.slane %v989_v20, 4  ;;  %v7938_v20 = vld [vmem:[#allocation31_spill] sm:$0xff] }
 0x4a9   :  { %1062 = vmatprep.mubr.f32.mxu0 %v994_v36  ;;  %1133 = vmatprep.mubr.f32.mxu1 %v994_v36  ;;  %v7939_v36 = vld [vmem:[#allocation39_spill] sm:$0xff] }
 0x4aa   :  { %1063 = vmatmul.mubr.f32.vlgmr.msra.gmra.mrb[8].mxu0 %v993_v63  ;;  %1134 = vmatmul.mubr.f32.vlgmr.msra.gmra.mrb[8].mxu1 %v993_v63  ;;  %v7940_v63 = vld [vmem:[#allocation33_spill] sm:$0xff] }
 0x4ab   :  { %4043 = vmatpush1.bf16.msra.mxu0 %v5982_v8  ;;  %4107 = vmatpush1.bf16.msra.mxu1 %v5995_v25 }
 0x4ac   :  { %4045 = vmatprep.subr.bf16.mxu0 %v5984_v9  ;;  %4109 = vmatprep.subr.bf16.mxu1 %v6005_v33 }
 0x4af   :  { %4047 = vmatpush1.bf16.msra.mxu0 %v5988_v14  ;;  %4111 = vmatpush1.bf16.msra.mxu1 %v6007_v37 }
 0x4b0   :  { %4049 = vmatprep.subr.bf16.mxu0 %v5991_v17  ;;  %4113 = vmatprep.subr.bf16.mxu1 %v6013_v45 }
 0x4b3   :  { %4051 = vmatpush1.bf16.msra.mxu0 %v5998_v26  ;;  %4115 = vmatpush1.bf16.msra.mxu1 %v6019_v48 }
 0x4b4   :  { %4053 = vmatprep.subr.bf16.mxu0 %v6002_v30  ;;  %4117 = vmatprep.subr.bf16.mxu1 %v6022_v52 }
 0x4b7   :  { %4055 = vmatpush1.bf16.msra.mxu0 %v6011_v42  ;;  %4119 = vmatpush1.bf16.msra.mxu1 %v6031_v62 }
 0x4b8   :  { %4057 = vmatprep.subr.bf16.mxu0 %v6016_v46  ;;  %4121 = vmatprep.subr.bf16.mxu1 %v6034_v1 }
 0x4bb   :  { %4059 = vmatpush1.bf16.msra.mxu0 %v6025_v55  ;;  %4123 = vmatpush1.bf16.msra.mxu1 %v6043_v15 }
 0x4bc   :  { %4061 = vmatprep.subr.bf16.mxu0 %v6028_v58  ;;  %4125 = vmatprep.subr.bf16.mxu1 %v6046_v18 }
 0x4bf   :  { %4063 = vmatpush1.bf16.msra.mxu0 %v6037_v7  ;;  %4127 = vmatpush1.bf16.msra.mxu1 %v6055_v32 }
 0x4c0   :  { %4065 = vmatprep.subr.bf16.mxu0 %v6040_v10  ;;  %4129 = vmatprep.subr.bf16.mxu1 %v6058_v35 }
 0x4c3   :  { %4067 = vmatpush1.bf16.msra.mxu0 %v6049_v24  ;;  %4131 = vmatpush1.bf16.msra.mxu1 %v6067_v50 }
 0x4c4   :  { %4069 = vmatprep.subr.bf16.mxu0 %v6052_v27  ;;  %4133 = vmatprep.subr.bf16.mxu1 %v6070_v53 }
 0x4c7   :  { %4071 = vmatpush1.bf16.msra.mxu0 %v6061_v41  ;;  %4135 = vmatpush1.bf16.msra.mxu1 %v6079_v5 }
 0x4c8   :  { %4073 = vmatprep.subr.bf16.mxu0 %v6064_v43  ;;  %4137 = vmatprep.subr.bf16.mxu1 %v6082_v11 }
 0x4cb   :  { %4075 = vmatpush1.bf16.msra.mxu0 %v6073_v60  ;;  %4139 = vmatpush1.bf16.msra.mxu1 %v6091_v31 }
 0x4cc   :  { %4077 = vmatprep.subr.bf16.mxu0 %v6076_v61  ;;  %4141 = vmatprep.subr.bf16.mxu1 %v7817_v39 }
 0x4cf   :  { %4079 = vmatpush1.bf16.msra.mxu0 %v7897_v29  ;;  %4143 = vmatpush1.bf16.msra.mxu1 %v7927_v6 }
 0x4d0   :  { %4081 = vmatprep.subr.bf16.mxu0 %v7928_v38  ;;  %4145 = vmatprep.subr.bf16.mxu1 %v7929_v21 }
 0x4d3   :  { %4083 = vmatpush1.bf16.msra.mxu0 %v7930_v4  ;;  %4147 = vmatpush1.bf16.msra.mxu1 %v7931_v3  ;;  %v7942_v3 = vld [vmem:[#allocation37_spill] sm:$0xff] }
 0x4d4   :  { %4085 = vmatprep.subr.bf16.mxu0 %v7932_v23  ;;  %4149 = vmatprep.subr.bf16.mxu1 %v7933_v51  ;;  %v7943_v23 = vld [vmem:[#allocation43_spill] sm:$0xff]  ;;  %v7944_v51 = vld [vmem:[#allocation38_spill] sm:$0xff]  ;;  %v7954_v4 = vld [vmem:[#allocation49_spill] sm:$0xff] }
 0x4d7   :  { %4087 = vmatpush1.bf16.msra.mxu0 %v7934_v54  ;;  %4151 = vmatpush1.bf16.msra.mxu1 %v7935_v47  ;;  %v7945_v54 = vld [vmem:[#allocation44_spill] sm:$0xff]  ;;  %v7946_v47 = vld [vmem:[#allocation41_spill] sm:$0xff] }
 0x4d8   :  { %4089 = vmatprep.subr.bf16.mxu0 %v7936_v13  ;;  %4153 = vmatprep.subr.bf16.mxu1 %v7937_v56  ;;  %v7947_v13 = vld [vmem:[#allocation46_spill] sm:$0xff] }
 0x4d9   :  { %v7948_v56 = vld [vmem:[#allocation42_spill] sm:$0xff] }
 0x4db   :  { %4091 = vmatpush1.bf16.msra.mxu0 %v7938_v20  ;;  %4155 = vmatpush1.bf16.msra.mxu1 %v7939_v36  ;;  %v7949_v20 = vld [vmem:[#allocation47_spill] sm:$0xff]  ;;  %v7950_v36 = vld [vmem:[#allocation45_spill] sm:$0xff] }
 0x4dc   :  { %4093 = vmatprep.subr.bf16.mxu0 %v7940_v63  ;;  %4157 = vmatprep.subr.bf16.mxu1 %v7941_v0  ;;  %v7951_v63 = vld [vmem:[#allocation48_spill] sm:$0xff]  ;;  %v7952_v0 = vld [vmem:[#allocation15_spill] sm:$0xff] }
 0x4df   :  { %4095 = vmatpush1.bf16.msra.mxu0 %v7942_v3  ;;  %4159 = vmatpush1.bf16.msra.mxu1 %v7943_v23  ;;  %v7953_v3 = vld [vmem:[#allocation16_spill] sm:$0xff] }
 0x4e0   :  { %4097 = vmatprep.subr.bf16.mxu0 %v7944_v51  ;;  %4161 = vmatprep.subr.bf16.mxu1 %v7945_v54 }
 0x4e3   :  { %4099 = vmatpush1.bf16.msra.mxu0 %v7946_v47  ;;  %4163 = vmatpush1.bf16.msra.mxu1 %v7947_v13 }
 0x4e4   :  { %4101 = vmatprep.subr.bf16.mxu0 %v7948_v56  ;;  %4165 = vmatprep.subr.bf16.mxu1 %v7949_v20 }
 0x4e7   :  { %4103 = vmatpush1.bf16.msra.mxu0 %v7950_v36  ;;  %4167 = vmatpush1.bf16.msra.mxu1 %v7951_v63 }
 0x4e8   :  { %4169 = vmatprep.subr.bf16.mxu0 %v7952_v0  ;;  %4233 = vmatprep.subr.bf16.mxu1 %v7953_v3 }
 0x57d   :  { %v1064_v23 = vpop.f32.mrb[8].mxu0  ;;  %v1135_v51 = vpop.f32.mrb[8].mxu1 }
 0x57e   :  { %v1065_v54 = vadd.f32 %v1064_v23, %v7954_v4  ;;  %v1066_v21 = vpop.f32.mrb[9].mxu0  ;;  %v1137_v47 = vpop.f32.mrb[9].mxu1  ;;  %v1136_v63 = vadd.f32 %v1135_v51, %v7865_v49  ;;  %v1166_v51 = vsel %vm228_vm0, %v7839_v16, %v7838_v22 }
 0x57f   :  { %v1067_v13 = vadd.f32 %v1066_v21, %v7863_v40  ;;  %v1138_v36 = vadd.f32 %v1137_v47, %v7864_v34 }
 0x580   :  { %v3311_v38 = vmul.f32 -1.442695, %v1065_v54 }
 0x581   :  { %v3312_v56 = vmul.f32 -1.442695, %v1067_v13  ;;  %v3313_v20 = vmul.f32 -1.442695, %v1138_v36 }
 0x582   :  { %5548 = vpow2.f32 %v3311_v38 }
 0x583   :  { %5550 = vpow2.f32 %v3312_v56 }
 0x584   :  { %5552 = vpow2.f32 %v3313_v20 }
 0x585   :  { %5554 = vtanh.f32 %v1136_v63 }
 0x58c   :  { %v5549_v0 = vpop.eup %5548 }
 0x58d   :  { %v5551_v3 = vpop.eup %5550  ;;  %v1143_v6 = vadd.f32 1.0, %v5549_v0  ;;  %v1164_v0 = vsel %vm243_vm5, %v7836_v12, %v6568_v44 }
 0x58e   :  { %v1149_v29 = vadd.f32 1.0, %v5551_v3  ;;  %v5553_v23 = vpop.eup %5552 }
 0x58f   :  { %5556 = vrcp.f32 %v1143_v6  ;;  %v5555_v4 = vpop.eup %5554  ;;  %v1156_v54 = vadd.f32 1.0, %v5553_v23 }
 0x590   :  { %5558 = vrcp.f32 %v1149_v29  ;;  %v1167_v29 = vsel %vm231_vm1, %v6159_v19, %v1166_v51  ;;  %v7958_v51 = vld [vmem:[#allocation18_spill] sm:$0xff] }
 0x591   :  { %5560 = vrcp.f32 %v1156_v54  ;;  %v1168_v6 = vsel %vm234_vm2, %v6172_v28, %v1167_v29  ;;  %v7959_v29 = vld [vmem:[#allocation23_spill] sm:$0xff] }
 0x592   :  { %v1169_v3 = vsel %vm237_vm3, %v6184_v2, %v1168_v6  ;;  %v7961_v6 = vld [vmem:[#allocation28_spill] sm:$0xff] }
 0x593   :  { %v1174_v23 = vrot.slane %v1169_v3, 5  ;;  %v7964_v3 = vld [vmem:[#allocation26_spill] sm:$0xff] }
 0x599   :  { %v5557_v21 = vpop.eup %5556 }
 0x59a   :  { %v5559_v13 = vpop.eup %5558  ;;  %v1160_v38 = vmul.f32 %v5557_v21, %v5555_v4  ;;  %v1165_v4 = vsel %vm246_vm6, %v7837_v57, %v1164_v0  ;;  %v7960_v0 = vld [vmem:[#allocation20_spill] sm:$0xff] }
 0x59b   :  { %v1159_v56 = vmul.f32 %v5559_v13, %v6565_v59  ;;  %v5561_v59 = vpop.eup %5560  ;;  %v1173_v63 = vrot.slane %v1165_v4, 5  ;;  %v7963_v4 = vld [vmem:[#allocation30_spill] sm:$0xff] }
 0x59d   :  { %v6656_v47 = vadd.f32 %v1160_v38, %v1159_v56  ;;  %v1175_v13 = vsel %vm1172_vm11, %v1173_v63, %v1174_v23  ;;  %v7956_v38 = vld [vmem:[#allocation17_spill] sm:$0xff]  ;;  %v7957_v56 = vld [vmem:[#allocation22_spill] sm:$0xff]  ;;  %v7966_v63 = vld [vmem:[#allocation27_spill] sm:$0xff] }
 0x59e   :  { %v7967_v23 = vld [vmem:[#allocation35_spill] sm:$0xff] }
 0x59f   :  { %5562 = vtanh.f32 %v6656_v47 }
 0x5a9   :  { %v5563_v20 = vpop.eup %5562 }
 0x5aa   :  { %v6673_v36 = vmul.f32 %v5563_v20, %v5561_v59  ;;  %v7962_v59 = vld [vmem:[#allocation21_spill] sm:$0xff]  ;;  %v7965_v20 = vld [vmem:[#allocation34_spill] sm:$0xff] }
 0x5ac   :  { %7955 = vst [vmem:[#allocation36_spill] sm:$0xff] %v6673_v36  ;;  %v1171_v21 = vrot.slane %v6673_v36, 3  ;;  %v7971_v36 = vld [vmem:[#allocation40_spill] sm:$0xff] }
 0x5ae   :  { %v1176_v54 = vrot.slane %v1171_v21, 5  ;;  %v7968_v21 = vld [vmem:[#allocation31_spill] sm:$0xff] }
 0x5b0   :  { %1244 = vmatprep.mubr.f32.mxu0 %v1176_v54  ;;  %1315 = vmatprep.mubr.f32.mxu1 %v1176_v54  ;;  %v7969_v54 = vld [vmem:[#allocation39_spill] sm:$0xff] }
 0x5b1   :  { %1245 = vmatmul.mubr.f32.vlgmr.msra.gmra.mrb[10].mxu0 %v1175_v13  ;;  %1316 = vmatmul.mubr.f32.vlgmr.msra.gmra.mrb[10].mxu1 %v1175_v13  ;;  %v7970_v13 = vld [vmem:[#allocation33_spill] sm:$0xff] }
 0x5b2   :  { %4171 = vmatpush1.bf16.msra.mxu0 %v5982_v8  ;;  %4235 = vmatpush1.bf16.msra.mxu1 %v5995_v25 }
 0x5b3   :  { %4173 = vmatprep.subr.bf16.mxu0 %v5984_v9  ;;  %4237 = vmatprep.subr.bf16.mxu1 %v6005_v33 }
 0x5b6   :  { %4175 = vmatpush1.bf16.msra.mxu0 %v5988_v14  ;;  %4239 = vmatpush1.bf16.msra.mxu1 %v6007_v37 }
 0x5b7   :  { %4177 = vmatprep.subr.bf16.mxu0 %v5991_v17  ;;  %4241 = vmatprep.subr.bf16.mxu1 %v6013_v45 }
 0x5ba   :  { %4179 = vmatpush1.bf16.msra.mxu0 %v5998_v26  ;;  %4243 = vmatpush1.bf16.msra.mxu1 %v6019_v48 }
 0x5bb   :  { %4181 = vmatprep.subr.bf16.mxu0 %v6002_v30  ;;  %4245 = vmatprep.subr.bf16.mxu1 %v6022_v52 }
 0x5be   :  { %4183 = vmatpush1.bf16.msra.mxu0 %v6011_v42  ;;  %4247 = vmatpush1.bf16.msra.mxu1 %v6031_v62 }
 0x5bf   :  { %4185 = vmatprep.subr.bf16.mxu0 %v6016_v46  ;;  %4249 = vmatprep.subr.bf16.mxu1 %v6034_v1 }
 0x5c2   :  { %4187 = vmatpush1.bf16.msra.mxu0 %v6025_v55  ;;  %4251 = vmatpush1.bf16.msra.mxu1 %v6043_v15 }
 0x5c3   :  { %4189 = vmatprep.subr.bf16.mxu0 %v6028_v58  ;;  %4253 = vmatprep.subr.bf16.mxu1 %v6046_v18 }
 0x5c6   :  { %4191 = vmatpush1.bf16.msra.mxu0 %v6037_v7  ;;  %4255 = vmatpush1.bf16.msra.mxu1 %v6055_v32 }
 0x5c7   :  { %4193 = vmatprep.subr.bf16.mxu0 %v6040_v10  ;;  %4257 = vmatprep.subr.bf16.mxu1 %v6058_v35 }
 0x5ca   :  { %4195 = vmatpush1.bf16.msra.mxu0 %v6049_v24  ;;  %4259 = vmatpush1.bf16.msra.mxu1 %v6067_v50 }
 0x5cb   :  { %4197 = vmatprep.subr.bf16.mxu0 %v6052_v27  ;;  %4261 = vmatprep.subr.bf16.mxu1 %v6070_v53 }
 0x5ce   :  { %4199 = vmatpush1.bf16.msra.mxu0 %v6061_v41  ;;  %4263 = vmatpush1.bf16.msra.mxu1 %v6079_v5 }
 0x5cf   :  { %4201 = vmatprep.subr.bf16.mxu0 %v6064_v43  ;;  %4265 = vmatprep.subr.bf16.mxu1 %v6082_v11 }
 0x5d2   :  { %4203 = vmatpush1.bf16.msra.mxu0 %v6073_v60  ;;  %4267 = vmatpush1.bf16.msra.mxu1 %v6091_v31 }
 0x5d3   :  { %4205 = vmatprep.subr.bf16.mxu0 %v6076_v61  ;;  %4269 = vmatprep.subr.bf16.mxu1 %v7817_v39 }
 0x5d6   :  { %4207 = vmatpush1.bf16.msra.mxu0 %v7956_v38  ;;  %4271 = vmatpush1.bf16.msra.mxu1 %v7957_v56 }
 0x5d7   :  { %4209 = vmatprep.subr.bf16.mxu0 %v7958_v51  ;;  %4273 = vmatprep.subr.bf16.mxu1 %v7959_v29 }
 0x5da   :  { %4211 = vmatpush1.bf16.msra.mxu0 %v7960_v0  ;;  %4275 = vmatpush1.bf16.msra.mxu1 %v7961_v6  ;;  %v7972_v6 = vld [vmem:[#allocation37_spill] sm:$0xff] }
 0x5db   :  { %4213 = vmatprep.subr.bf16.mxu0 %v7962_v59  ;;  %4277 = vmatprep.subr.bf16.mxu1 %v7963_v4  ;;  %v7973_v59 = vld [vmem:[#allocation43_spill] sm:$0xff]  ;;  %v7974_v4 = vld [vmem:[#allocation38_spill] sm:$0xff]  ;;  %v7984_v0 = vld [vmem:[#allocation49_spill] sm:$0xff] }
 0x5de   :  { %4215 = vmatpush1.bf16.msra.mxu0 %v7964_v3  ;;  %4279 = vmatpush1.bf16.msra.mxu1 %v7965_v20  ;;  %v7975_v3 = vld [vmem:[#allocation44_spill] sm:$0xff]  ;;  %v7976_v20 = vld [vmem:[#allocation41_spill] sm:$0xff] }
 0x5df   :  { %4217 = vmatprep.subr.bf16.mxu0 %v7966_v63  ;;  %4281 = vmatprep.subr.bf16.mxu1 %v7967_v23  ;;  %v7977_v63 = vld [vmem:[#allocation46_spill] sm:$0xff] }
 0x5e0   :  { %v7978_v23 = vld [vmem:[#allocation42_spill] sm:$0xff] }
 0x5e2   :  { %4219 = vmatpush1.bf16.msra.mxu0 %v7968_v21  ;;  %4283 = vmatpush1.bf16.msra.mxu1 %v7969_v54  ;;  %v7979_v21 = vld [vmem:[#allocation47_spill] sm:$0xff]  ;;  %v7980_v54 = vld [vmem:[#allocation45_spill] sm:$0xff] }
 0x5e3   :  { %4221 = vmatprep.subr.bf16.mxu0 %v7970_v13  ;;  %4285 = vmatprep.subr.bf16.mxu1 %v7971_v36  ;;  %v7981_v13 = vld [vmem:[#allocation48_spill] sm:$0xff]  ;;  %v7982_v36 = vld [vmem:[#allocation15_spill] sm:$0xff] }
 0x5e6   :  { %4223 = vmatpush1.bf16.msra.mxu0 %v7972_v6  ;;  %4287 = vmatpush1.bf16.msra.mxu1 %v7973_v59  ;;  %v7983_v6 = vld [vmem:[#allocation16_spill] sm:$0xff] }
 0x5e7   :  { %4225 = vmatprep.subr.bf16.mxu0 %v7974_v4  ;;  %4289 = vmatprep.subr.bf16.mxu1 %v7975_v3 }
 0x5ea   :  { %4227 = vmatpush1.bf16.msra.mxu0 %v7976_v20  ;;  %4291 = vmatpush1.bf16.msra.mxu1 %v7977_v63 }
 0x5eb   :  { %4229 = vmatprep.subr.bf16.mxu0 %v7978_v23  ;;  %4293 = vmatprep.subr.bf16.mxu1 %v7979_v21 }
 0x5ee   :  { %4231 = vmatpush1.bf16.msra.mxu0 %v7980_v54  ;;  %4295 = vmatpush1.bf16.msra.mxu1 %v7981_v13 }
 0x5ef   :  { %4297 = vmatprep.subr.bf16.mxu0 %v7982_v36  ;;  %4361 = vmatprep.subr.bf16.mxu1 %v7983_v6 }
 0x684   :  { %v1246_v59 = vpop.f32.mrb[10].mxu0  ;;  %v1317_v4 = vpop.f32.mrb[10].mxu1 }
 0x685   :  { %v1247_v3 = vadd.f32 %v1246_v59, %v7984_v0  ;;  %v1248_v29 = vpop.f32.mrb[11].mxu0  ;;  %v1319_v20 = vpop.f32.mrb[11].mxu1  ;;  %v1318_v13 = vadd.f32 %v1317_v4, %v7865_v49  ;;  %v1347_v4 = vsel %vm228_vm0, %v7838_v22, %v7837_v57 }
 0x686   :  { %v1249_v63 = vadd.f32 %v1248_v29, %v7863_v40  ;;  %v1320_v54 = vadd.f32 %v1319_v20, %v7864_v34 }
 0x687   :  { %v3314_v51 = vmul.f32 -1.442695, %v1247_v3 }
 0x688   :  { %v3315_v23 = vmul.f32 -1.442695, %v1249_v63  ;;  %v3316_v21 = vmul.f32 -1.442695, %v1320_v54 }
 0x689   :  { %5564 = vpow2.f32 %v3314_v51 }
 0x68a   :  { %5566 = vpow2.f32 %v3315_v23 }
 0x68b   :  { %5568 = vpow2.f32 %v3316_v21  ;;  %v1348_v21 = vsel %vm231_vm1, %v7839_v16, %v1347_v4 }
 0x68c   :  { %5570 = vtanh.f32 %v1318_v13 }
 0x693   :  { %v5565_v36 = vpop.eup %5564 }
 0x694   :  { %v5567_v6 = vpop.eup %5566  ;;  %v1325_v56 = vadd.f32 1.0, %v5565_v36 }
 0x695   :  { %v1331_v38 = vadd.f32 1.0, %v5567_v6  ;;  %v5569_v59 = vpop.eup %5568 }
 0x696   :  { %5572 = vrcp.f32 %v1325_v56  ;;  %v5571_v0 = vpop.eup %5570  ;;  %v1338_v3 = vadd.f32 1.0, %v5569_v59 }
 0x697   :  { %5574 = vrcp.f32 %v1331_v38  ;;  %v1349_v38 = vsel %vm234_vm2, %v6159_v19, %v1348_v21 }
 0x698   :  { %5576 = vrcp.f32 %v1338_v3  ;;  %v1350_v56 = vsel %vm237_vm3, %v6172_v28, %v1349_v38 }
 0x699   :  { %v1351_v54 = vsel %vm240_vm4, %v6184_v2, %v1350_v56 }
 0x69a   :  { %v1356_v59 = vrot.slane %v1351_v54, 6 }
 0x6a0   :  { %v5573_v29 = vpop.eup %5572 }
 0x6a1   :  { %v5575_v63 = vpop.eup %5574  ;;  %v1342_v51 = vmul.f32 %v5573_v29, %v5571_v0 }
 0x6a2   :  { %v1341_v23 = vmul.f32 %v5575_v63, %v6656_v47  ;;  %v5577_v0 = vpop.eup %5576  ;;  %v1346_v47 = vsel %vm246_vm6, %v7836_v12, %v6568_v44 }
 0x6a3   :  { %v1355_v6 = vrot.slane %v1346_v47, 6 }
 0x6a4   :  { %v6748_v20 = vadd.f32 %v1342_v51, %v1341_v23 }
 0x6a5   :  { %v1357_v63 = vsel %vm1354_vm12, %v1355_v6, %v1356_v59 }
 0x6a6   :  { %5578 = vtanh.f32 %v6748_v20 }
 0x6b0   :  { %v5579_v13 = vpop.eup %5578 }
 0x6b1   :  { %v6762_v36 = vmul.f32 %v5579_v13, %v5577_v0 }
 0x6b3   :  { %7985 = vst [vmem:[#allocation15_spill] sm:$0xff] %v6762_v36  ;;  %v1353_v29 = vrot.slane %v6762_v36, 2  ;;  %v1807_v36 = vld [vmem:[#allocation7 + $0x308] sm:$0xff] }
 0x6b5   :  { %v1358_v3 = vrot.slane %v1353_v29, 6 }
 0x6b7   :  { %1426 = vmatprep.mubr.f32.mxu0 %v1358_v3  ;;  %1497 = vmatprep.mubr.f32.mxu1 %v1358_v3 }
 0x6b8   :  { %1427 = vmatmul.mubr.f32.vlgmr.msra.gmra.mrb[12].mxu0 %v1357_v63  ;;  %1498 = vmatmul.mubr.f32.vlgmr.msra.gmra.mrb[12].mxu1 %v1357_v63  ;;  %v1528_v63 = vsel %vm228_vm0, %v7837_v57, %v7836_v12 }
 0x6b9   :  { %4299 = vmatpush1.bf16.msra.mxu0 %v5982_v8  ;;  %4363 = vmatpush1.bf16.msra.mxu1 %v5995_v25  ;;  %v7986_v8 = vld [vmem:[#allocation17_spill] sm:$0xff]  ;;  %v7990_v25 = vld [vmem:[#allocation20_spill] sm:$0xff] }
 0x6ba   :  { %4301 = vmatprep.subr.bf16.mxu0 %v5984_v9  ;;  %4365 = vmatprep.subr.bf16.mxu1 %v6005_v33  ;;  %v7987_v9 = vld [vmem:[#allocation22_spill] sm:$0xff] }
 0x6bb   :  { %v7993_v33 = vld [vmem:[#allocation30_spill] sm:$0xff] }
 0x6bd   :  { %4303 = vmatpush1.bf16.msra.mxu0 %v5988_v14  ;;  %4367 = vmatpush1.bf16.msra.mxu1 %v6007_v37  ;;  %v7988_v14 = vld [vmem:[#allocation18_spill] sm:$0xff] }
 0x6be   :  { %4305 = vmatprep.subr.bf16.mxu0 %v5991_v17  ;;  %4369 = vmatprep.subr.bf16.mxu1 %v6013_v45  ;;  %v7989_v17 = vld [vmem:[#allocation23_spill] sm:$0xff]  ;;  %v7994_v37 = vld [vmem:[#allocation26_spill] sm:$0xff] }
 0x6bf   :  { %v7996_v45 = vld [vmem:[#allocation27_spill] sm:$0xff] }
 0x6c1   :  { %4307 = vmatpush1.bf16.msra.mxu0 %v5998_v26  ;;  %4371 = vmatpush1.bf16.msra.mxu1 %v6019_v48  ;;  %v7991_v26 = vld [vmem:[#allocation28_spill] sm:$0xff]  ;;  %v7998_v48 = vld [vmem:[#allocation31_spill] sm:$0xff] }
 0x6c2   :  { %4309 = vmatprep.subr.bf16.mxu0 %v6002_v30  ;;  %4373 = vmatprep.subr.bf16.mxu1 %v6022_v52  ;;  %v7992_v30 = vld [vmem:[#allocation21_spill] sm:$0xff]  ;;  %v7999_v52 = vld [vmem:[#allocation39_spill] sm:$0xff] }
 0x6c5   :  { %4311 = vmatpush1.bf16.msra.mxu0 %v6011_v42  ;;  %4375 = vmatpush1.bf16.msra.mxu1 %v6031_v62  ;;  %v7995_v42 = vld [vmem:[#allocation34_spill] sm:$0xff]  ;;  %v8002_v62 = vld [vmem:[#allocation37_spill] sm:$0xff] }
 0x6c6   :  { %4313 = vmatprep.subr.bf16.mxu0 %v6016_v46  ;;  %4377 = vmatprep.subr.bf16.mxu1 %v6034_v1  ;;  %v7997_v46 = vld [vmem:[#allocation35_spill] sm:$0xff] }
 0x6c7   :  { %v8003_v1 = vld [vmem:[#allocation43_spill] sm:$0xff] }
 0x6c9   :  { %4315 = vmatpush1.bf16.msra.mxu0 %v6025_v55  ;;  %4379 = vmatpush1.bf16.msra.mxu1 %v6043_v15  ;;  %v8000_v55 = vld [vmem:[#allocation33_spill] sm:$0xff] }
 0x6ca   :  { %4317 = vmatprep.subr.bf16.mxu0 %v6028_v58  ;;  %4381 = vmatprep.subr.bf16.mxu1 %v6046_v18  ;;  %v8001_v58 = vld [vmem:[#allocation40_spill] sm:$0xff]  ;;  %v8006_v15 = vld [vmem:[#allocation41_spill] sm:$0xff]  ;;  %v8007_v18 = vld [vmem:[#allocation46_spill] sm:$0xff] }
 0x6cd   :  { %4319 = vmatpush1.bf16.msra.mxu0 %v6037_v7  ;;  %4383 = vmatpush1.bf16.msra.mxu1 %v6055_v32  ;;  %v8004_v7 = vld [vmem:[#allocation38_spill] sm:$0xff]  ;;  %v8010_v32 = vld [vmem:[#allocation45_spill] sm:$0xff] }
 0x6ce   :  { %4321 = vmatprep.subr.bf16.mxu0 %v6040_v10  ;;  %4385 = vmatprep.subr.bf16.mxu1 %v6058_v35  ;;  %v8005_v10 = vld [vmem:[#allocation44_spill] sm:$0xff] }
 0x6cf   :  { %v8011_v35 = vld [vmem:[#allocation48_spill] sm:$0xff] }
 0x6d1   :  { %4323 = vmatpush1.bf16.msra.mxu0 %v6049_v24  ;;  %4387 = vmatpush1.bf16.msra.mxu1 %v6067_v50  ;;  %v8008_v24 = vld [vmem:[#allocation42_spill] sm:$0xff]  ;;  %v1713_v50 = vld [vmem:[#allocation7 + $0x18] sm:$0xff] }
 0x6d2   :  { %4325 = vmatprep.subr.bf16.mxu0 %v6052_v27  ;;  %4389 = vmatprep.subr.bf16.mxu1 %v6070_v53  ;;  %v8009_v27 = vld [vmem:[#allocation47_spill] sm:$0xff] }
 0x6d5   :  { %4327 = vmatpush1.bf16.msra.mxu0 %v6061_v41  ;;  %4391 = vmatpush1.bf16.msra.mxu1 %v6079_v5  ;;  %v1711_v41 = vld [vmem:[#allocation7 + $0x8] sm:$0xff] }
 0x6d6   :  { %4329 = vmatprep.subr.bf16.mxu0 %v6064_v43  ;;  %4393 = vmatprep.subr.bf16.mxu1 %v6082_v11  ;;  %v1715_v43 = vld [vmem:[#allocation7 + $0x28] sm:$0xff] }
 0x6d7   :  { %v6827_v53 = vpack.c.bf16 %v1715_v43, %v1711_v41  ;;  %v1727_v41 = vld [vmem:[#allocation7 + $0x88] sm:$0xff] }
 0x6d8   :  { %v1731_v43 = vld [vmem:[#allocation7 + $0xa8] sm:$0xff] }
 0x6d9   :  { %4331 = vmatpush1.bf16.msra.mxu0 %v6073_v60  ;;  %4395 = vmatpush1.bf16.msra.mxu1 %v6091_v31  ;;  %8012 = vst [vmem:[#allocation16_spill] sm:$0xff] %v6827_v53  ;;  %v1717_v60 = vld [vmem:[#allocation7 + $0x38] sm:$0xff] }
 0x6da   :  { %4333 = vmatprep.subr.bf16.mxu0 %v6076_v61  ;;  %4397 = vmatprep.subr.bf16.mxu1 %v7817_v39  ;;  %v6829_v61 = vpack.c.bf16 %v1717_v60, %v1713_v50  ;;  %v8014_v31 = vld [vmem:[#allocation49_spill] sm:$0xff] }
 0x6db   :  { %v1729_v50 = vld [vmem:[#allocation7 + $0x98] sm:$0xff] }
 0x6dc   :  { %8013 = vst [vmem:[#allocation17_spill] sm:$0xff] %v6829_v61  ;;  %v1733_v60 = vld [vmem:[#allocation7 + $0xb8] sm:$0xff] }
 0x6dd   :  { %4335 = vmatpush1.bf16.msra.mxu0 %v7986_v8  ;;  %4399 = vmatpush1.bf16.msra.mxu1 %v7987_v9 }
 0x6de   :  { %4337 = vmatprep.subr.bf16.mxu0 %v7988_v14  ;;  %4401 = vmatprep.subr.bf16.mxu1 %v7989_v17 }
 0x6e1   :  { %4339 = vmatpush1.bf16.msra.mxu0 %v7990_v25  ;;  %4403 = vmatpush1.bf16.msra.mxu1 %v7991_v26  ;;  %v1529_v26 = vsel %vm231_vm1, %v7838_v22, %v1528_v63 }
 0x6e2   :  { %4341 = vmatprep.subr.bf16.mxu0 %v7992_v30  ;;  %4405 = vmatprep.subr.bf16.mxu1 %v7993_v33  ;;  %v1530_v33 = vsel %vm234_vm2, %v7839_v16, %v1529_v26  ;;  %v1714_v16 = vld [vmem:[#allocation7 + $0x20] sm:$0xff]  ;;  %v1745_v26 = vld [vmem:[#allocation7 + $0x118] sm:$0xff] }
 0x6e3   :  { %v1531_v12 = vsel %vm237_vm3, %v6159_v19, %v1530_v33  ;;  %v1749_v33 = vld [vmem:[#allocation7 + $0x138] sm:$0xff] }
 0x6e4   :  { %v1532_v57 = vsel %vm240_vm4, %v6172_v28, %v1531_v12  ;;  %v1721_v28 = vld [vmem:[#allocation7 + $0x58] sm:$0xff] }
 0x6e5   :  { %4343 = vmatpush1.bf16.msra.mxu0 %v7994_v37  ;;  %4407 = vmatpush1.bf16.msra.mxu1 %v7995_v42 }
 0x6e6   :  { %4345 = vmatprep.subr.bf16.mxu0 %v7996_v45  ;;  %4409 = vmatprep.subr.bf16.mxu1 %v7997_v46  ;;  %v1537_v45 = vrot.slane %v6568_v44, 7  ;;  %v1722_v44 = vld [vmem:[#allocation7 + $0x60] sm:$0xff] }
 0x6e9   :  { %4347 = vmatpush1.bf16.msra.mxu0 %v7998_v48  ;;  %4411 = vmatpush1.bf16.msra.mxu1 %v7999_v52  ;;  %v1710_v48 = vld [vmem:[#allocation7] sm:$0xff]  ;;  %v1712_v52 = vld [vmem:[#allocation7 + $0x10] sm:$0xff] }
 0x6ea   :  { %4349 = vmatprep.subr.bf16.mxu0 %v8000_v55  ;;  %4413 = vmatprep.subr.bf16.mxu1 %v8001_v58  ;;  %v1716_v55 = vld [vmem:[#allocation7 + $0x30] sm:$0xff]  ;;  %v1719_v58 = vld [vmem:[#allocation7 + $0x48] sm:$0xff] }
 0x6ed   :  { %4351 = vmatpush1.bf16.msra.mxu0 %v8002_v62  ;;  %4415 = vmatpush1.bf16.msra.mxu1 %v8003_v1  ;;  %v1723_v62 = vld [vmem:[#allocation7 + $0x68] sm:$0xff]  ;;  %v1725_v1 = vld [vmem:[#allocation7 + $0x78] sm:$0xff] }
 0x6ee   :  { %4353 = vmatprep.subr.bf16.mxu0 %v8004_v7  ;;  %4417 = vmatprep.subr.bf16.mxu1 %v8005_v10 }
 0x6f1   :  { %4355 = vmatpush1.bf16.msra.mxu0 %v8006_v15  ;;  %4419 = vmatpush1.bf16.msra.mxu1 %v8007_v18  ;;  %v6860_v15 = vpack.c.bf16 %v1716_v55, %v1712_v52  ;;  %v1718_v18 = vld [vmem:[#allocation7 + $0x40] sm:$0xff]  ;;  %v1755_v52 = vld [vmem:[#allocation7 + $0x168] sm:$0xff]  ;;  %v1753_v55 = vld [vmem:[#allocation7 + $0x158] sm:$0xff] }
 0x6f2   :  { %4357 = vmatprep.subr.bf16.mxu0 %v8008_v24  ;;  %4421 = vmatprep.subr.bf16.mxu1 %v8009_v27  ;;  %v6862_v24 = vpack.c.bf16 %v1723_v62, %v1719_v58  ;;  %v6864_v27 = vpack.c.bf16 %v1725_v1, %v1721_v28  ;;  %v1757_v58 = vld [vmem:[#allocation7 + $0x178] sm:$0xff]  ;;  %v1750_v28 = vld [vmem:[#allocation7 + $0x140] sm:$0xff] }
 0x6f3   :  { %v1754_v1 = vld [vmem:[#allocation7 + $0x160] sm:$0xff] }
 0x6f5   :  { %4359 = vmatpush1.bf16.msra.mxu0 %v8010_v32  ;;  %4423 = vmatpush1.bf16.msra.mxu1 %v8011_v35  ;;  %v1720_v32 = vld [vmem:[#allocation7 + $0x50] sm:$0xff] }
 0x6f6   :  { %4425 = vmatprep.subr.bf16.mxu0 %v6827_v53  ;;  %4489 = vmatprep.subr.bf16.mxu1 %v6829_v61  ;;  %v1724_v35 = vld [vmem:[#allocation7 + $0x70] sm:$0xff] }
 0x78b   :  { %v1428_v5 = vpop.f32.mrb[12].mxu0  ;;  %v1499_v11 = vpop.f32.mrb[12].mxu1 }
 0x78c   :  { %v1429_v39 = vadd.f32 %v1428_v5, %v8014_v31  ;;  %v1430_v51 = vpop.f32.mrb[13].mxu0  ;;  %v1501_v23 = vpop.f32.mrb[13].mxu1  ;;  %v1500_v47 = vadd.f32 %v1499_v11, %v7865_v49  ;;  %v6868_v5 = vpack.c.bf16 %v1722_v44, %v1718_v18  ;;  %v6870_v11 = vpack.c.bf16 %v1724_v35, %v1720_v32  ;;  %v1752_v18 = vld [vmem:[#allocation7 + $0x150] sm:$0xff]  ;;  %v1759_v32 = vld [vmem:[#allocation7 + $0x188] sm:$0xff]  ;;  %v1809_v49 = vld [vmem:[#allocation7 + $0x318] sm:$0xff] }
 0x78d   :  { %v1431_v4 = vadd.f32 %v1430_v51, %v7863_v40  ;;  %v1502_v56 = vadd.f32 %v1501_v23, %v7864_v34  ;;  %v1730_v51 = vld [vmem:[#allocation7 + $0xa0] sm:$0xff]  ;;  %v6874_v23 = vpack.c.bf16 %v1731_v43, %v1727_v41  ;;  %v1756_v44 = vld [vmem:[#allocation7 + $0x170] sm:$0xff]  ;;  %v1763_v35 = vld [vmem:[#allocation7 + $0x1a8] sm:$0xff] }
 0x78e   :  { %v3317_v21 = vmul.f32 -1.442695, %v1429_v39  ;;  %v1726_v39 = vld [vmem:[#allocation7 + $0x80] sm:$0xff]  ;;  %v1761_v41 = vld [vmem:[#allocation7 + $0x198] sm:$0xff]  ;;  %v1815_v40 = vld [vmem:[#allocation7 + $0x348] sm:$0xff] }
 0x78f   :  { %v3318_v38 = vmul.f32 -1.442695, %v1431_v4  ;;  %v3319_v0 = vmul.f32 -1.442695, %v1502_v56  ;;  %v6876_v4 = vpack.c.bf16 %v1733_v60, %v1729_v50  ;;  %v1735_v56 = vld [vmem:[#allocation7 + $0xc8] sm:$0xff]  ;;  %v1765_v43 = vld [vmem:[#allocation7 + $0x1b8] sm:$0xff]  ;;  %v6918_v50 = vpack.c.bf16 %v1754_v1, %v1750_v28 }
 0x790   :  { %5580 = vpow2.f32 %v3317_v21  ;;  %v1728_v21 = vld [vmem:[#allocation7 + $0x90] sm:$0xff]  ;;  %v6920_v60 = vpack.c.bf16 %v1756_v44, %v1752_v18  ;;  %v1774_v28 = vld [vmem:[#allocation7 + $0x200] sm:$0xff]  ;;  %v1813_v34 = vld [vmem:[#allocation7 + $0x338] sm:$0xff] }
 0x791   :  { %5582 = vpow2.f32 %v3318_v38  ;;  %v1732_v38 = vld [vmem:[#allocation7 + $0xb0] sm:$0xff]  ;;  %v1778_v1 = vld [vmem:[#allocation7 + $0x220] sm:$0xff]  ;;  %v1819_v31 = vld [vmem:[#allocation7 + $0x368] sm:$0xff] }
 0x792   :  { %5584 = vpow2.f32 %v3319_v0  ;;  %v1739_v0 = vld [vmem:[#allocation7 + $0xe8] sm:$0xff] }
 0x793   :  { %5586 = vtanh.f32 %v1500_v47  ;;  %v1737_v47 = vld [vmem:[#allocation7 + $0xd8] sm:$0xff]  ;;  %v6888_v63 = vpack.c.bf16 %v1739_v0, %v1735_v56  ;;  %v1760_v56 = vld [vmem:[#allocation7 + $0x190] sm:$0xff] }
 0x794   :  { %v1764_v0 = vld [vmem:[#allocation7 + $0x1b0] sm:$0xff] }
 0x79a   :  { %v5581_v54 = vpop.eup %5580 }
 0x79b   :  { %v5583_v13 = vpop.eup %5582  ;;  %v1507_v6 = vadd.f32 1.0, %v5581_v54  ;;  %v1741_v54 = vld [vmem:[#allocation7 + $0xf8] sm:$0xff] }
 0x79c   :  { %v1513_v59 = vadd.f32 1.0, %v5583_v13  ;;  %v5585_v29 = vpop.eup %5584  ;;  %v8017_v13 = vmov 0.0  }
 0x79d   :  { %5588 = vrcp.f32 %v1507_v6  ;;  %v5587_v3 = vpop.eup %5586  ;;  %v1520_v9 = vadd.f32 1.0, %v5585_v29  ;;  %v6882_v6 = vpack.c.bf16 %v1730_v51, %v1726_v39  ;;  %v1734_v29 = vld [vmem:[#allocation7 + $0xc0] sm:$0xff] }
 0x79e   :  { %5590 = vrcp.f32 %v1513_v59  ;;  %v6884_v59 = vpack.c.bf16 %v1732_v38, %v1728_v21  ;;  %v1758_v39 = vld [vmem:[#allocation7 + $0x180] sm:$0xff]  ;;  %v6924_v21 = vpack.c.bf16 %v1763_v35, %v1759_v32  ;;  %v6926_v38 = vpack.c.bf16 %v1765_v43, %v1761_v41  ;;  %v1776_v32 = vld [vmem:[#allocation7 + $0x210] sm:$0xff]  ;;  %v1783_v41 = vld [vmem:[#allocation7 + $0x248] sm:$0xff] }
 0x79f   :  { %5592 = vrcp.f32 %v1520_v9  ;;  %v1736_v9 = vld [vmem:[#allocation7 + $0xd0] sm:$0xff]  ;;  %v1762_v51 = vld [vmem:[#allocation7 + $0x1a0] sm:$0xff]  ;;  %v1787_v43 = vld [vmem:[#allocation7 + $0x268] sm:$0xff] }
 0x7a0   :  { %v1780_v35 = vld [vmem:[#allocation7 + $0x230] sm:$0xff] }
 0x7a7   :  { %v5589_v8 = vpop.eup %5588 }
 0x7a8   :  { %v5591_v14 = vpop.eup %5590  ;;  %v1524_v17 = vmul.f32 %v5589_v8, %v5587_v3  ;;  %v1738_v3 = vld [vmem:[#allocation7 + $0xe0] sm:$0xff]  ;;  %v6890_v8 = vpack.c.bf16 %v1741_v54, %v1737_v47  ;;  %v1767_v47 = vld [vmem:[#allocation7 + $0x1c8] sm:$0xff] }
 0x7a9   :  { %v1523_v25 = vmul.f32 %v5591_v14, %v6748_v20  ;;  %v5593_v37 = vpop.eup %5592  ;;  %v1533_v20 = vsel %vm243_vm5, %v6184_v2, %v1532_v57  ;;  %v6858_v2 = vpack.c.bf16 %v1714_v16, %v1710_v48  ;;  %v1740_v14 = vld [vmem:[#allocation7 + $0xf0] sm:$0xff]  ;;  %v6894_v12 = vpack.c.bf16 %v1738_v3, %v1734_v29  ;;  %v1751_v16 = vld [vmem:[#allocation7 + $0x148] sm:$0xff]  ;;  %v1769_v29 = vld [vmem:[#allocation7 + $0x1d8] sm:$0xff] }
 0x7aa   :  { %v1538_v46 = vrot.slane %v1533_v20, 7  ;;  %v6896_v57 = vpack.c.bf16 %v1740_v14, %v1736_v9  ;;  %v1746_v20 = vld [vmem:[#allocation7 + $0x120] sm:$0xff]  ;;  %v1748_v48 = vld [vmem:[#allocation7 + $0x130] sm:$0xff]  ;;  %v1771_v54 = vld [vmem:[#allocation7 + $0x1e8] sm:$0xff]  ;;  %v6930_v9 = vpack.c.bf16 %v1762_v51, %v1758_v39  ;;  %v6932_v14 = vpack.c.bf16 %v1764_v0, %v1760_v56 }
 0x7ab   :  { %v6843_v30 = vadd.f32 %v1524_v17, %v1523_v25  ;;  %v1743_v17 = vld [vmem:[#allocation7 + $0x108] sm:$0xff]  ;;  %v1773_v3 = vld [vmem:[#allocation7 + $0x1f8] sm:$0xff]  ;;  %v6954_v56 = vpack.c.bf16 %v1778_v1, %v1774_v28  ;;  %v6956_v0 = vpack.c.bf16 %v1780_v35, %v1776_v32  ;;  %v1790_v28 = vld [vmem:[#allocation7 + $0x280] sm:$0xff] }
 0x7ac   :  { %v1539_v10 = vsel %vm1536_vm13, %v1537_v45, %v1538_v46  ;;  %v1747_v25 = vld [vmem:[#allocation7 + $0x128] sm:$0xff]  ;;  %v6902_v45 = vpack.c.bf16 %v1749_v33, %v1745_v26  ;;  %v1744_v46 = vld [vmem:[#allocation7 + $0x110] sm:$0xff]  ;;  %v6936_v26 = vpack.c.bf16 %v1771_v54, %v1767_v47  ;;  %v6938_v33 = vpack.c.bf16 %v1773_v3, %v1769_v29  ;;  %v1785_v39 = vld [vmem:[#allocation7 + $0x258] sm:$0xff] }
 0x7ad   :  { %8015 = vst [vmem:[#allocation22_spill] sm:$0xff] %v6843_v30  ;;  %5594 = vtanh.f32 %v6843_v30  ;;  %v6908_v62 = vpack.c.bf16 %v1748_v48, %v1744_v46  ;;  %v1775_v46 = vld [vmem:[#allocation7 + $0x208] sm:$0xff]  ;;  %v1789_v51 = vld [vmem:[#allocation7 + $0x278] sm:$0xff]  ;;  %v1782_v47 = vld [vmem:[#allocation7 + $0x240] sm:$0xff]  ;;  %v6960_v29 = vpack.c.bf16 %v1787_v43, %v1783_v41 }
 0x7ae   :  { %v1779_v48 = vld [vmem:[#allocation7 + $0x228] sm:$0xff]  ;;  %v1786_v54 = vld [vmem:[#allocation7 + $0x260] sm:$0xff]  ;;  %v6962_v3 = vpack.c.bf16 %v1789_v51, %v1785_v39  ;;  %v1792_v41 = vld [vmem:[#allocation7 + $0x290] sm:$0xff] }
 0x7af   :  { %v6948_v18 = vpack.c.bf16 %v1779_v48, %v1775_v46  ;;  %v1793_v46 = vld [vmem:[#allocation7 + $0x298] sm:$0xff]  ;;  %v1794_v1 = vld [vmem:[#allocation7 + $0x2a0] sm:$0xff]  ;;  %v1796_v43 = vld [vmem:[#allocation7 + $0x2b0] sm:$0xff] }
 0x7b0   :  { %v1797_v48 = vld [vmem:[#allocation7 + $0x2b8] sm:$0xff]  ;;  %v1799_v39 = vld [vmem:[#allocation7 + $0x2c8] sm:$0xff] }
 0x7b1   :  { %v6974_v35 = vpack.c.bf16 %v1797_v48, %v1793_v46  ;;  %v1803_v51 = vld [vmem:[#allocation7 + $0x2e8] sm:$0xff]  ;;  %v1800_v46 = vld [vmem:[#allocation7 + $0x2d0] sm:$0xff] }
 0x7b2   :  { %v1804_v48 = vld [vmem:[#allocation7 + $0x2f0] sm:$0xff]  ;;  %v1811_v30 = vld [vmem:[#allocation7 + $0x328] sm:$0xff] }
 0x7b7   :  { %v5595_v42 = vpop.eup %5594 }
 0x7b8   :  { %v6854_v22 = vmul.f32 %v5595_v42, %v5593_v37  ;;  %v1742_v37 = vld [vmem:[#allocation7 + $0x100] sm:$0xff]  ;;  %v6900_v42 = vpack.c.bf16 %v1747_v25, %v1743_v17 }
 0x7b9   :  { %v1766_v17 = vld [vmem:[#allocation7 + $0x1c0] sm:$0xff] }
 0x7ba   :  { %8016 = vst [vmem:[#allocation18_spill] sm:$0xff] %v6854_v22  ;;  %v1535_v19 = vrot.slane %v6854_v22, 1  ;;  %v1770_v25 = vld [vmem:[#allocation7 + $0x1e0] sm:$0xff]  ;;  %v1805_v22 = vld [vmem:[#allocation7 + $0x2f8] sm:$0xff] }
 0x7bc   :  { %v1540_v7 = vrot.slane %v1535_v19, 7  ;;  %v6906_v19 = vpack.c.bf16 %v1746_v20, %v1742_v37  ;;  %v1768_v37 = vld [vmem:[#allocation7 + $0x1d0] sm:$0xff] }
 0x7bd   :  { %v1772_v20 = vld [vmem:[#allocation7 + $0x1f0] sm:$0xff] }
 0x7be   :  { %1608 = vmatprep.mubr.f32.mxu0 %v1540_v7  ;;  %1679 = vmatprep.mubr.f32.mxu1 %v1540_v7  ;;  %v6912_v7 = vpack.c.bf16 %v1755_v52, %v1751_v16  ;;  %v1777_v16 = vld [vmem:[#allocation7 + $0x218] sm:$0xff] }
 0x7bf   :  { %1609 = vmatmul.mubr.f32.vlgmr.msra.gmra.mrb[14].mxu0 %v1539_v10  ;;  %1680 = vmatmul.mubr.f32.vlgmr.msra.gmra.mrb[14].mxu1 %v1539_v10  ;;  %v6914_v10 = vpack.c.bf16 %v1757_v58, %v1753_v55  ;;  %v1781_v52 = vld [vmem:[#allocation7 + $0x238] sm:$0xff]  ;;  %v6942_v55 = vpack.c.bf16 %v1770_v25, %v1766_v17  ;;  %v6944_v58 = vpack.c.bf16 %v1772_v20, %v1768_v37  ;;  %v1784_v17 = vld [vmem:[#allocation7 + $0x250] sm:$0xff]  ;;  %v1791_v37 = vld [vmem:[#allocation7 + $0x288] sm:$0xff] }
 0x7c0   :  { %4427 = vmatpush1.bf16.msra.mxu0 %v6858_v2  ;;  %4491 = vmatpush1.bf16.msra.mxu1 %v6860_v15  ;;  %v6950_v44 = vpack.c.bf16 %v1781_v52, %v1777_v16  ;;  %v1788_v25 = vld [vmem:[#allocation7 + $0x270] sm:$0xff]  ;;  %v1795_v20 = vld [vmem:[#allocation7 + $0x2a8] sm:$0xff]  ;;  %v6966_v16 = vpack.c.bf16 %v1786_v54, %v1782_v47  ;;  %v6978_v47 = vpack.c.bf16 %v1794_v1, %v1790_v28 }
 0x7c1   :  { %4429 = vmatprep.subr.bf16.mxu0 %v6862_v24  ;;  %4493 = vmatprep.subr.bf16.mxu1 %v6864_v27  ;;  %v6968_v52 = vpack.c.bf16 %v1788_v25, %v1784_v17  ;;  %v6972_v32 = vpack.c.bf16 %v1795_v20, %v1791_v37  ;;  %v6980_v54 = vpack.c.bf16 %v1796_v43, %v1792_v41  ;;  %v1798_v17 = vld [vmem:[#allocation7 + $0x2c0] sm:$0xff] }
 0x7c2   :  { %1924 = vmatprep.mubr.f32.mxu0 %v8017_v13  ;;  %1995 = vmatprep.mubr.f32.mxu1 %v8017_v13  ;;  %v1801_v13 = vld [vmem:[#allocation7 + $0x2d8] sm:$0xff]  ;;  %8018 = vst [vmem:[#allocation23_spill] sm:$0xff] %v6978_v47  ;;  %v1802_v25 = vld [vmem:[#allocation7 + $0x2e0] sm:$0xff]  ;;  %v6984_v37 = vpack.c.bf16 %v1803_v51, %v1799_v39  ;;  %v6992_v1 = vpack.c.bf16 %v1804_v48, %v1800_v46  ;;  %v1808_v39 = vld [vmem:[#allocation7 + $0x310] sm:$0xff] }
 0x7c3   :  { %8019 = vst [vmem:[#allocation20_spill] sm:$0xff] %v6980_v54  ;;  %v6986_v20 = vpack.c.bf16 %v1805_v22, %v1801_v13  ;;  %v6990_v28 = vpack.c.bf16 %v1802_v25, %v1798_v17  ;;  %v1806_v41 = vld [vmem:[#allocation7 + $0x300] sm:$0xff]  ;;  %v6996_v22 = vpack.c.bf16 %v1811_v30, %v1807_v36  ;;  %v6998_v13 = vpack.c.bf16 %v1813_v34, %v1809_v49  ;;  %v1812_v51 = vld [vmem:[#allocation7 + $0x330] sm:$0xff] }
 0x7c4   :  { %4431 = vmatpush1.bf16.msra.mxu0 %v6868_v5  ;;  %4495 = vmatpush1.bf16.msra.mxu1 %v6870_v11  ;;  %8020 = vst [vmem:[#allocation28_spill] sm:$0xff] %v6984_v37  ;;  %8023 = vst [vmem:[#allocation26_spill] sm:$0xff] %v6992_v1  ;;  %v1810_v43 = vld [vmem:[#allocation7 + $0x320] sm:$0xff]  ;;  %v7004_v25 = vpack.c.bf16 %v1812_v51, %v1808_v39  ;;  %v7008_v34 = vpack.c.bf16 %v1819_v31, %v1815_v40  ;;  %v1816_v36 = vld [vmem:[#allocation7 + $0x350] sm:$0xff] }
 0x7c5   :  { %4433 = vmatprep.subr.bf16.mxu0 %v6874_v23  ;;  %4497 = vmatprep.subr.bf16.mxu1 %v6876_v4  ;;  %8021 = vst [vmem:[#allocation21_spill] sm:$0xff] %v6986_v20  ;;  %8022 = vst [vmem:[#allocation30_spill] sm:$0xff] %v6990_v28  ;;  %v7002_v17 = vpack.c.bf16 %v1810_v43, %v1806_v41  ;;  %v1814_v46 = vld [vmem:[#allocation7 + $0x340] sm:$0xff]  ;;  %v1820_v30 = vld [vmem:[#allocation7 + $0x370] sm:$0xff] }
 0x7c6   :  { %8024 = vst [vmem:[#allocation34_spill] sm:$0xff] %v6996_v22  ;;  %8025 = vst [vmem:[#allocation27_spill] sm:$0xff] %v6998_v13  ;;  %v1818_v48 = vld [vmem:[#allocation7 + $0x360] sm:$0xff]  ;;  %v7016_v43 = vpack.c.bf16 %v1820_v30, %v1816_v36  ;;  %v1836_v30 = vld [vmem:[#allocation7 + $0x3f0] sm:$0xff] }
 0x7c7   :  { %8026 = vst [vmem:[#allocation35_spill] sm:$0xff] %v7002_v17  ;;  %8027 = vst [vmem:[#allocation31_spill] sm:$0xff] %v7004_v25  ;;  %v7014_v41 = vpack.c.bf16 %v1818_v48, %v1814_v46  ;;  %v1822_v39 = vld [vmem:[#allocation7 + $0x380] sm:$0xff] }
 0x7c8   :  { %4435 = vmatpush1.bf16.msra.mxu0 %v6882_v6  ;;  %4499 = vmatpush1.bf16.msra.mxu1 %v6884_v59  ;;  %8028 = vst [vmem:[#allocation39_spill] sm:$0xff] %v7008_v34  ;;  %8031 = vst [vmem:[#allocation37_spill] sm:$0xff] %v7016_v43  ;;  %v1826_v51 = vld [vmem:[#allocation7 + $0x3a0] sm:$0xff] }
 0x7c9   :  { %4437 = vmatprep.subr.bf16.mxu0 %v6888_v63  ;;  %4501 = vmatprep.subr.bf16.mxu1 %v6890_v8  ;;  %8030 = vst [vmem:[#allocation40_spill] sm:$0xff] %v7014_v41  ;;  %v7026_v46 = vpack.c.bf16 %v1826_v51, %v1822_v39  ;;  %v1830_v36 = vld [vmem:[#allocation7 + $0x3c0] sm:$0xff] }
 0x7cb   :  { %8034 = vst [vmem:[#allocation44_spill] sm:$0xff] %v7026_v46 }
 0x7cc   :  { %4439 = vmatpush1.bf16.msra.mxu0 %v6894_v12  ;;  %4503 = vmatpush1.bf16.msra.mxu1 %v6896_v57 }
 0x7cd   :  { %4441 = vmatprep.subr.bf16.mxu0 %v6900_v42  ;;  %4505 = vmatprep.subr.bf16.mxu1 %v6902_v45 }
 0x7d0   :  { %4443 = vmatpush1.bf16.msra.mxu0 %v6906_v19  ;;  %4507 = vmatpush1.bf16.msra.mxu1 %v6908_v62 }
 0x7d1   :  { %4445 = vmatprep.subr.bf16.mxu0 %v6912_v7  ;;  %4509 = vmatprep.subr.bf16.mxu1 %v6914_v10 }
 0x7d4   :  { %4447 = vmatpush1.bf16.msra.mxu0 %v6918_v50  ;;  %4511 = vmatpush1.bf16.msra.mxu1 %v6920_v60 }
 0x7d5   :  { %4449 = vmatprep.subr.bf16.mxu0 %v6924_v21  ;;  %4513 = vmatprep.subr.bf16.mxu1 %v6926_v38 }
 0x7d8   :  { %4451 = vmatpush1.bf16.msra.mxu0 %v6930_v9  ;;  %4515 = vmatpush1.bf16.msra.mxu1 %v6932_v14 }
 0x7d9   :  { %4453 = vmatprep.subr.bf16.mxu0 %v6936_v26  ;;  %4517 = vmatprep.subr.bf16.mxu1 %v6938_v33 }
 0x7dc   :  { %4455 = vmatpush1.bf16.msra.mxu0 %v6942_v55  ;;  %4519 = vmatpush1.bf16.msra.mxu1 %v6944_v58 }
 0x7dd   :  { %4457 = vmatprep.subr.bf16.mxu0 %v6948_v18  ;;  %4521 = vmatprep.subr.bf16.mxu1 %v6950_v44 }
 0x7e0   :  { %4459 = vmatpush1.bf16.msra.mxu0 %v6954_v56  ;;  %4523 = vmatpush1.bf16.msra.mxu1 %v6956_v0 }
 0x7e1   :  { %4461 = vmatprep.subr.bf16.mxu0 %v6960_v29  ;;  %4525 = vmatprep.subr.bf16.mxu1 %v6962_v3 }
 0x7e4   :  { %4463 = vmatpush1.bf16.msra.mxu0 %v6966_v16  ;;  %4527 = vmatpush1.bf16.msra.mxu1 %v6968_v52 }
 0x7e5   :  { %4465 = vmatprep.subr.bf16.mxu0 %v6972_v32  ;;  %4529 = vmatprep.subr.bf16.mxu1 %v6974_v35 }
 0x7e8   :  { %4467 = vmatpush1.bf16.msra.mxu0 %v6978_v47  ;;  %4531 = vmatpush1.bf16.msra.mxu1 %v6980_v54  ;;  %v1817_v47 = vld [vmem:[#allocation7 + $0x358] sm:$0xff] }
 0x7e9   :  { %4469 = vmatprep.subr.bf16.mxu0 %v6984_v37  ;;  %4533 = vmatprep.subr.bf16.mxu1 %v6986_v20  ;;  %v1821_v54 = vld [vmem:[#allocation7 + $0x378] sm:$0xff]  ;;  %v1823_v20 = vld [vmem:[#allocation7 + $0x388] sm:$0xff] }
 0x7ea   :  { %v7010_v49 = vpack.c.bf16 %v1821_v54, %v1817_v47  ;;  %v1825_v37 = vld [vmem:[#allocation7 + $0x398] sm:$0xff]  ;;  %v1824_v47 = vld [vmem:[#allocation7 + $0x390] sm:$0xff] }
 0x7eb   :  { %v1828_v54 = vld [vmem:[#allocation7 + $0x3b0] sm:$0xff] }
 0x7ec   :  { %4471 = vmatpush1.bf16.msra.mxu0 %v6990_v28  ;;  %4535 = vmatpush1.bf16.msra.mxu1 %v6992_v1  ;;  %8029 = vst [vmem:[#allocation33_spill] sm:$0xff] %v7010_v49  ;;  %v1827_v28 = vld [vmem:[#allocation7 + $0x3a8] sm:$0xff]  ;;  %v1829_v1 = vld [vmem:[#allocation7 + $0x3b8] sm:$0xff]  ;;  %v7028_v48 = vpack.c.bf16 %v1828_v54, %v1824_v47  ;;  %v8045_v54 = vld [vmem:[#allocation30_spill] sm:$0xff] }
 0x7ed   :  { %4473 = vmatprep.subr.bf16.mxu0 %v6996_v22  ;;  %4537 = vmatprep.subr.bf16.mxu1 %v6998_v13  ;;  %v7020_v40 = vpack.c.bf16 %v1827_v28, %v1823_v20  ;;  %v7022_v31 = vpack.c.bf16 %v1829_v1, %v1825_v37  ;;  %v1831_v13 = vld [vmem:[#allocation7 + $0x3c8] sm:$0xff]  ;;  %v1833_v22 = vld [vmem:[#allocation7 + $0x3d8] sm:$0xff]  ;;  %v1834_v28 = vld [vmem:[#allocation7 + $0x3e0] sm:$0xff] }
 0x7ee   :  { %8035 = vst [vmem:[#allocation41_spill] sm:$0xff] %v7028_v48  ;;  %v1832_v1 = vld [vmem:[#allocation7 + $0x3d0] sm:$0xff]  ;;  %v7038_v39 = vpack.c.bf16 %v1834_v28, %v1830_v36  ;;  %v8044_v47 = vld [vmem:[#allocation21_spill] sm:$0xff]  ;;  %v8046_v36 = vld [vmem:[#allocation26_spill] sm:$0xff] }
 0x7ef   :  { %8032 = vst [vmem:[#allocation43_spill] sm:$0xff] %v7020_v40  ;;  %8033 = vst [vmem:[#allocation38_spill] sm:$0xff] %v7022_v31  ;;  %v7040_v51 = vpack.c.bf16 %v1836_v30, %v1832_v1  ;;  %v8047_v28 = vld [vmem:[#allocation34_spill] sm:$0xff]  ;;  %v8048_v1 = vld [vmem:[#allocation27_spill] sm:$0xff] }
 0x7f0   :  { %4475 = vmatpush1.bf16.msra.mxu0 %v7002_v17  ;;  %4539 = vmatpush1.bf16.msra.mxu1 %v7004_v25  ;;  %v1835_v17 = vld [vmem:[#allocation7 + $0x3e8] sm:$0xff]  ;;  %v1837_v25 = vld [vmem:[#allocation7 + $0x3f8] sm:$0xff]  ;;  %8038 = vst [vmem:[#allocation47_spill] sm:$0xff] %v7038_v39 }
 0x7f1   :  { %4477 = vmatprep.subr.bf16.mxu0 %v7008_v34  ;;  %4541 = vmatprep.subr.bf16.mxu1 %v7010_v49  ;;  %v7032_v37 = vpack.c.bf16 %v1835_v17, %v1831_v13  ;;  %v7034_v20 = vpack.c.bf16 %v1837_v25, %v1833_v22  ;;  %8039 = vst [vmem:[#allocation45_spill] sm:$0xff] %v7040_v51  ;;  %v8040_v22 = vld [vmem:[#allocation25_spill] sm:$0xff]  ;;  %v8041_v13 = vld [vmem:[#allocation23_spill] sm:$0xff]  ;;  %v8042_v17 = vld [vmem:[#allocation20_spill] sm:$0xff] }
 0x7f2   :  { %v8043_v25 = vld [vmem:[#allocation28_spill] sm:$0xff]  ;;  %v8049_v30 = vld [vmem:[#allocation35_spill] sm:$0xff] }
 0x7f3   :  { %8036 = vst [vmem:[#allocation46_spill] sm:$0xff] %v7032_v37  ;;  %8037 = vst [vmem:[#allocation42_spill] sm:$0xff] %v7034_v20 }
 0x7f4   :  { %4479 = vmatpush1.bf16.msra.mxu0 %v7014_v41  ;;  %4543 = vmatpush1.bf16.msra.mxu1 %v7016_v43 }
 0x7f5   :  { %4481 = vmatprep.subr.bf16.mxu0 %v7020_v40  ;;  %4545 = vmatprep.subr.bf16.mxu1 %v7022_v31 }
 0x7f8   :  { %4483 = vmatpush1.bf16.msra.mxu0 %v7026_v46  ;;  %4547 = vmatpush1.bf16.msra.mxu1 %v7028_v48 }
 0x7f9   :  { %4485 = vmatprep.subr.bf16.mxu0 %v7032_v37  ;;  %4549 = vmatprep.subr.bf16.mxu1 %v7034_v20 }
 0x7fc   :  { %4487 = vmatpush1.bf16.msra.mxu0 %v7038_v39  ;;  %4551 = vmatpush1.bf16.msra.mxu1 %v7040_v51 }
 0x7fd   :  { %4553 = vmatprep.subr.bf16.mxu0 %v6827_v53  ;;  %4617 = vmatprep.subr.bf16.mxu1 %v6829_v61 }
 0x7ff   :  { %1925 = vmatmul.mubr.f32.vlgmr.msra.gmra.mrb[16].mxu0 %v8040_v22  ;;  %1996 = vmatmul.mubr.f32.vlgmr.msra.gmra.mrb[16].mxu1 %v8040_v22  ;;  %v8050_v22 = vld [vmem:[#allocation31_spill] sm:$0xff] }
 0x800   :  { %4555 = vmatpush1.bf16.msra.mxu0 %v6858_v2  ;;  %4619 = vmatpush1.bf16.msra.mxu1 %v6860_v15 }
 0x801   :  { %4557 = vmatprep.subr.bf16.mxu0 %v6862_v24  ;;  %4621 = vmatprep.subr.bf16.mxu1 %v6864_v27 }
 0x804   :  { %4559 = vmatpush1.bf16.msra.mxu0 %v6868_v5  ;;  %4623 = vmatpush1.bf16.msra.mxu1 %v6870_v11 }
 0x805   :  { %4561 = vmatprep.subr.bf16.mxu0 %v6874_v23  ;;  %4625 = vmatprep.subr.bf16.mxu1 %v6876_v4 }
 0x808   :  { %4563 = vmatpush1.bf16.msra.mxu0 %v6882_v6  ;;  %4627 = vmatpush1.bf16.msra.mxu1 %v6884_v59 }
 0x809   :  { %4565 = vmatprep.subr.bf16.mxu0 %v6888_v63  ;;  %4629 = vmatprep.subr.bf16.mxu1 %v6890_v8 }
 0x80c   :  { %4567 = vmatpush1.bf16.msra.mxu0 %v6894_v12  ;;  %4631 = vmatpush1.bf16.msra.mxu1 %v6896_v57 }
 0x80d   :  { %4569 = vmatprep.subr.bf16.mxu0 %v6900_v42  ;;  %4633 = vmatprep.subr.bf16.mxu1 %v6902_v45 }
 0x810   :  { %4571 = vmatpush1.bf16.msra.mxu0 %v6906_v19  ;;  %4635 = vmatpush1.bf16.msra.mxu1 %v6908_v62 }
 0x811   :  { %4573 = vmatprep.subr.bf16.mxu0 %v6912_v7  ;;  %4637 = vmatprep.subr.bf16.mxu1 %v6914_v10 }
 0x814   :  { %4575 = vmatpush1.bf16.msra.mxu0 %v6918_v50  ;;  %4639 = vmatpush1.bf16.msra.mxu1 %v6920_v60 }
 0x815   :  { %4577 = vmatprep.subr.bf16.mxu0 %v6924_v21  ;;  %4641 = vmatprep.subr.bf16.mxu1 %v6926_v38 }
 0x818   :  { %4579 = vmatpush1.bf16.msra.mxu0 %v6930_v9  ;;  %4643 = vmatpush1.bf16.msra.mxu1 %v6932_v14 }
 0x819   :  { %4581 = vmatprep.subr.bf16.mxu0 %v6936_v26  ;;  %4645 = vmatprep.subr.bf16.mxu1 %v6938_v33 }
 0x81c   :  { %4583 = vmatpush1.bf16.msra.mxu0 %v6942_v55  ;;  %4647 = vmatpush1.bf16.msra.mxu1 %v6944_v58 }
 0x81d   :  { %4585 = vmatprep.subr.bf16.mxu0 %v6948_v18  ;;  %4649 = vmatprep.subr.bf16.mxu1 %v6950_v44 }
 0x820   :  { %4587 = vmatpush1.bf16.msra.mxu0 %v6954_v56  ;;  %4651 = vmatpush1.bf16.msra.mxu1 %v6956_v0 }
 0x821   :  { %4589 = vmatprep.subr.bf16.mxu0 %v6960_v29  ;;  %4653 = vmatprep.subr.bf16.mxu1 %v6962_v3 }
 0x824   :  { %4591 = vmatpush1.bf16.msra.mxu0 %v6966_v16  ;;  %4655 = vmatpush1.bf16.msra.mxu1 %v6968_v52 }
 0x825   :  { %4593 = vmatprep.subr.bf16.mxu0 %v6972_v32  ;;  %4657 = vmatprep.subr.bf16.mxu1 %v6974_v35 }
 0x828   :  { %4595 = vmatpush1.bf16.msra.mxu0 %v8041_v13  ;;  %4659 = vmatpush1.bf16.msra.mxu1 %v8042_v17 }
 0x829   :  { %4597 = vmatprep.subr.bf16.mxu0 %v8043_v25  ;;  %4661 = vmatprep.subr.bf16.mxu1 %v8044_v47 }
 0x82c   :  { %4599 = vmatpush1.bf16.msra.mxu0 %v8045_v54  ;;  %4663 = vmatpush1.bf16.msra.mxu1 %v8046_v36 }
 0x82d   :  { %4601 = vmatprep.subr.bf16.mxu0 %v8047_v28  ;;  %4665 = vmatprep.subr.bf16.mxu1 %v8048_v1 }
 0x830   :  { %4603 = vmatpush1.bf16.msra.mxu0 %v8049_v30  ;;  %4667 = vmatpush1.bf16.msra.mxu1 %v8050_v22 }
 0x831   :  { %4605 = vmatprep.subr.bf16.mxu0 %v7008_v34  ;;  %4669 = vmatprep.subr.bf16.mxu1 %v7010_v49  ;;  %v8052_v34 = vld [vmem:[#allocation50_spill] sm:$0xff] }
 0x834   :  { %4607 = vmatpush1.bf16.msra.mxu0 %v7014_v41  ;;  %4671 = vmatpush1.bf16.msra.mxu1 %v7016_v43  ;;  %v8051_v41 = vld [vmem:[#allocation49_spill] sm:$0xff] }
 0x835   :  { %4609 = vmatprep.subr.bf16.mxu0 %v7020_v40  ;;  %4673 = vmatprep.subr.bf16.mxu1 %v7022_v31 }
 0x838   :  { %4611 = vmatpush1.bf16.msra.mxu0 %v7026_v46  ;;  %4675 = vmatpush1.bf16.msra.mxu1 %v7028_v48 }
 0x839   :  { %4613 = vmatprep.subr.bf16.mxu0 %v7032_v37  ;;  %4677 = vmatprep.subr.bf16.mxu1 %v7034_v20  ;;  %v8053_v20 = vld [vmem:[#allocation51_spill] sm:$0xff] }
 0x83c   :  { %4615 = vmatpush1.bf16.msra.mxu0 %v7038_v39  ;;  %4679 = vmatpush1.bf16.msra.mxu1 %v7040_v51  ;;  %v8054_v51 = vld [vmem:[#allocation52_spill] sm:$0xff] }
 0x83d   :  { %4681 = vmatprep.subr.bf16.mxu0 %v6827_v53  ;;  %4745 = vmatprep.subr.bf16.mxu1 %v6829_v61 }
 0x892   :  { %v1610_v43 = vpop.f32.mrb[14].mxu0  ;;  %v1681_v40 = vpop.f32.mrb[14].mxu1 }
 0x893   :  { %v1611_v31 = vadd.f32 %v1610_v43, %v8051_v41  ;;  %v1612_v49 = vpop.f32.mrb[15].mxu0  ;;  %v1683_v46 = vpop.f32.mrb[15].mxu1  ;;  %v1682_v1 = vadd.f32 %v1681_v40, %v8054_v51 }
 0x894   :  { %v1613_v48 = vadd.f32 %v1612_v49, %v8052_v34  ;;  %v1684_v39 = vadd.f32 %v1683_v46, %v8053_v20 }
 0x895   :  { %v3320_v22 = vmul.f32 -1.442695, %v1611_v31 }
 0x896   :  { %v3321_v37 = vmul.f32 -1.442695, %v1613_v48  ;;  %v3322_v30 = vmul.f32 -1.442695, %v1684_v39 }
 0x897   :  { %5596 = vpow2.f32 %v3320_v22 }
 0x898   :  { %5598 = vpow2.f32 %v3321_v37  ;;  %v8055_v37 = vld [vmem:[#allocation22_spill] sm:$0xff] }
 0x899   :  { %5600 = vpow2.f32 %v3322_v30 }
 0x89a   :  { %5602 = vtanh.f32 %v1682_v1 }
 0x8a1   :  { %v5597_v53 = vpop.eup %5596 }
 0x8a2   :  { %v5599_v61 = vpop.eup %5598  ;;  %v1689_v28 = vadd.f32 1.0, %v5597_v53  ;;  %v1838_v53 = vld [vmem:[%s7616_s4] sm:$0xf] }
 0x8a3   :  { %v1695_v36 = vadd.f32 1.0, %v5599_v61  ;;  %v5601_v41 = vpop.eup %5600  ;;  %v8057_v61 = vld [vmem:[#allocation19_spill] sm:$0xff] }
 0x8a4   :  { %5604 = vrcp.f32 %v1689_v28  ;;  %v5603_v43 = vpop.eup %5602  ;;  %v1702_v49 = vadd.f32 1.0, %v5601_v41  ;;  %v8058_v51 = vsub.s32 0, %v8057_v61  ;;  %v8060_v28 = vsub.s32 1, %v8057_v61 }
 0x8a5   :  { %5606 = vrcp.f32 %v1695_v36 }
 0x8a6   :  { %5608 = vrcp.f32 %v1702_v49  ;;  %v7126_v36 = vrot.slane %v1838_v53, %v8058_v51  ;;  %v7130_v1 = vrot.slane %v1838_v53, %v8060_v28 }
 0x8a8   :  { %8059 = vst [vmem:[#allocation25_spill] sm:$0xff] %v7126_v36 }
 0x8ae   :  { %v5605_v34 = vpop.eup %5604 }
 0x8af   :  { %v5607_v31 = vpop.eup %5606  ;;  %v1706_v48 = vmul.f32 %v5605_v34, %v5603_v43 }
 0x8b0   :  { %v1705_v22 = vmul.f32 %v5607_v31, %v8055_v37  ;;  %v5609_v40 = vpop.eup %5608 }
 0x8b2   :  { %v1707_v46 = vadd.f32 %v1706_v48, %v1705_v22  ;;  %v8061_v22 = vsub.s32 3, %v8057_v61 }
 0x8b4   :  { %5610 = vtanh.f32 %v1707_v46  ;;  %v7136_v46 = vrot.slane %v1838_v53, %v8061_v22 }
 0x8b6   :  { %8062 = vst [vmem:[#allocation23_spill] sm:$0xff] %v7136_v46 }
 0x8be   :  { %v5611_v20 = vpop.eup %5610 }
 0x8bf   :  { %v7119_v39 = vmul.f32 %v5611_v20, %v5609_v40  ;;  %v8063_v20 = vsub.s32 2, %v8057_v61 }
 0x8c1   :  { %8056 = vst [vmem:[#allocation48_spill] sm:$0xff] %v7119_v39  ;;  %v7141_v51 = vrot.slane %v1838_v53, %v8063_v20  ;;  %v8066_v20 = vld [vmem:[#allocation34_spill] sm:$0xff] }
 0x8d2   :  { %v1926_v30 = vpop.f32.mrb[16].mxu0  ;;  %v1997_v41 = vpop.f32.mrb[16].mxu1 }
 0x8d3   :  { %v1927_v43 = vadd.f32 %v1926_v30, %v7126_v36  ;;  %v1928_v34 = vpop.f32.mrb[17].mxu0  ;;  %v1999_v49 = vpop.f32.mrb[17].mxu1  ;;  %v1998_v30 = vadd.f32 %v1997_v41, %v7141_v51 }
 0x8d4   :  { %v1929_v31 = vadd.f32 %v1928_v34, %v7130_v1  ;;  %v2000_v40 = vadd.f32 %v1999_v49, %v7136_v46 }
 0x8d5   :  { %v3323_v48 = vmul.f32 -1.442695, %v1927_v43 }
 0x8d6   :  { %v3324_v37 = vmul.f32 -1.442695, %v1929_v31  ;;  %v3325_v28 = vmul.f32 -1.442695, %v2000_v40 }
 0x8d7   :  { %5612 = vpow2.f32 %v3323_v48 }
 0x8d8   :  { %5614 = vpow2.f32 %v3324_v37 }
 0x8d9   :  { %5616 = vpow2.f32 %v3325_v28  ;;  %v8067_v28 = vld [vmem:[#allocation27_spill] sm:$0xff] }
 0x8da   :  { %5618 = vtanh.f32 %v1998_v30  ;;  %v8068_v30 = vld [vmem:[#allocation35_spill] sm:$0xff] }
 0x8e1   :  { %v5613_v39 = vpop.eup %5612 }
 0x8e2   :  { %v5615_v36 = vpop.eup %5614  ;;  %v2005_v34 = vadd.f32 1.0, %v5613_v39 }
 0x8e3   :  { %v2011_v43 = vadd.f32 1.0, %v5615_v36  ;;  %v5617_v31 = vpop.eup %5616  ;;  %v8064_v36 = vld [vmem:[#allocation24_spill] sm:$0xff] }
 0x8e4   :  { %5620 = vrcp.f32 %v2005_v34  ;;  %v5619_v48 = vpop.eup %5618  ;;  %v2018_v46 = vadd.f32 1.0, %v5617_v31  ;;  %v8069_v34 = vld [vmem:[#allocation31_spill] sm:$0xff]  ;;  %v8071_v31 = vld [vmem:[#allocation33_spill] sm:$0xff] }
 0x8e5   :  { %5622 = vrcp.f32 %v2011_v43  ;;  %v8070_v43 = vld [vmem:[#allocation39_spill] sm:$0xff] }
 0x8e6   :  { %5624 = vrcp.f32 %v2018_v46  ;;  %v8065_v46 = vld [vmem:[#allocation26_spill] sm:$0xff] }
 0x8ee   :  { %v5621_v37 = vpop.eup %5620 }
 0x8ef   :  { %v5623_v22 = vpop.eup %5622  ;;  %v2022_v49 = vmul.f32 %v5621_v37, %v5619_v48  ;;  %v8072_v48 = vld [vmem:[#allocation40_spill] sm:$0xff]  ;;  %v8073_v37 = vld [vmem:[#allocation37_spill] sm:$0xff] }
 0x8f0   :  { %v2021_v61 = vmul.f32 0.0, %v5623_v22  ;;  %v5625_v41 = vpop.eup %5624  ;;  %v8074_v22 = vld [vmem:[#allocation43_spill] sm:$0xff] }
 0x8f2   :  { %v7144_v53 = vadd.f32 %v2022_v49, %v2021_v61  ;;  %v8075_v49 = vld [vmem:[#allocation38_spill] sm:$0xff]  ;;  %v8076_v61 = vld [vmem:[#allocation44_spill] sm:$0xff] }
 0x8f4   :  { %5626 = vtanh.f32 %v7144_v53 }
 0x8fe   :  { %v5627_v40 = vpop.eup %5626 }
 0x8ff   :  { %v2025_v39 = vmul.f32 %v5627_v40, %v5625_v41  ;;  %v8077_v41 = vld [vmem:[#allocation41_spill] sm:$0xff]  ;;  %v8078_v40 = vld [vmem:[#allocation46_spill] sm:$0xff] }
 0x901   :  { %2090 = vmatprep.mubr.f32.mxu0 %v2025_v39  ;;  %2161 = vmatprep.mubr.f32.mxu1 %v2025_v39  ;;  %v8079_v39 = vld [vmem:[#allocation42_spill] sm:$0xff] }
 0x902   :  { %2091 = vmatmul.mubr.f32.vlgmr.msra.gmra.mrb[18].mxu0 %v8064_v36  ;;  %2162 = vmatmul.mubr.f32.vlgmr.msra.gmra.mrb[18].mxu1 %v8064_v36  ;;  %v8080_v36 = vld [vmem:[#allocation47_spill] sm:$0xff] }
 0x903   :  { %4683 = vmatpush1.bf16.msra.mxu0 %v6858_v2  ;;  %4747 = vmatpush1.bf16.msra.mxu1 %v6860_v15 }
 0x904   :  { %4685 = vmatprep.subr.bf16.mxu0 %v6862_v24  ;;  %4749 = vmatprep.subr.bf16.mxu1 %v6864_v27 }
 0x907   :  { %4687 = vmatpush1.bf16.msra.mxu0 %v6868_v5  ;;  %4751 = vmatpush1.bf16.msra.mxu1 %v6870_v11 }
 0x908   :  { %4689 = vmatprep.subr.bf16.mxu0 %v6874_v23  ;;  %4753 = vmatprep.subr.bf16.mxu1 %v6876_v4 }
 0x90b   :  { %4691 = vmatpush1.bf16.msra.mxu0 %v6882_v6  ;;  %4755 = vmatpush1.bf16.msra.mxu1 %v6884_v59 }
 0x90c   :  { %4693 = vmatprep.subr.bf16.mxu0 %v6888_v63  ;;  %4757 = vmatprep.subr.bf16.mxu1 %v6890_v8 }
 0x90f   :  { %4695 = vmatpush1.bf16.msra.mxu0 %v6894_v12  ;;  %4759 = vmatpush1.bf16.msra.mxu1 %v6896_v57 }
 0x910   :  { %4697 = vmatprep.subr.bf16.mxu0 %v6900_v42  ;;  %4761 = vmatprep.subr.bf16.mxu1 %v6902_v45 }
 0x913   :  { %4699 = vmatpush1.bf16.msra.mxu0 %v6906_v19  ;;  %4763 = vmatpush1.bf16.msra.mxu1 %v6908_v62 }
 0x914   :  { %4701 = vmatprep.subr.bf16.mxu0 %v6912_v7  ;;  %4765 = vmatprep.subr.bf16.mxu1 %v6914_v10 }
 0x917   :  { %4703 = vmatpush1.bf16.msra.mxu0 %v6918_v50  ;;  %4767 = vmatpush1.bf16.msra.mxu1 %v6920_v60 }
 0x918   :  { %4705 = vmatprep.subr.bf16.mxu0 %v6924_v21  ;;  %4769 = vmatprep.subr.bf16.mxu1 %v6926_v38 }
 0x91b   :  { %4707 = vmatpush1.bf16.msra.mxu0 %v6930_v9  ;;  %4771 = vmatpush1.bf16.msra.mxu1 %v6932_v14 }
 0x91c   :  { %4709 = vmatprep.subr.bf16.mxu0 %v6936_v26  ;;  %4773 = vmatprep.subr.bf16.mxu1 %v6938_v33 }
 0x91f   :  { %4711 = vmatpush1.bf16.msra.mxu0 %v6942_v55  ;;  %4775 = vmatpush1.bf16.msra.mxu1 %v6944_v58 }
 0x920   :  { %4713 = vmatprep.subr.bf16.mxu0 %v6948_v18  ;;  %4777 = vmatprep.subr.bf16.mxu1 %v6950_v44 }
 0x923   :  { %4715 = vmatpush1.bf16.msra.mxu0 %v6954_v56  ;;  %4779 = vmatpush1.bf16.msra.mxu1 %v6956_v0 }
 0x924   :  { %4717 = vmatprep.subr.bf16.mxu0 %v6960_v29  ;;  %4781 = vmatprep.subr.bf16.mxu1 %v6962_v3 }
 0x927   :  { %4719 = vmatpush1.bf16.msra.mxu0 %v6966_v16  ;;  %4783 = vmatpush1.bf16.msra.mxu1 %v6968_v52 }
 0x928   :  { %4721 = vmatprep.subr.bf16.mxu0 %v6972_v32  ;;  %4785 = vmatprep.subr.bf16.mxu1 %v6974_v35 }
 0x92b   :  { %4723 = vmatpush1.bf16.msra.mxu0 %v8041_v13  ;;  %4787 = vmatpush1.bf16.msra.mxu1 %v8042_v17 }
 0x92c   :  { %4725 = vmatprep.subr.bf16.mxu0 %v8043_v25  ;;  %4789 = vmatprep.subr.bf16.mxu1 %v8044_v47 }
 0x92f   :  { %4727 = vmatpush1.bf16.msra.mxu0 %v8045_v54  ;;  %4791 = vmatpush1.bf16.msra.mxu1 %v8065_v46 }
 0x930   :  { %4729 = vmatprep.subr.bf16.mxu0 %v8066_v20  ;;  %4793 = vmatprep.subr.bf16.mxu1 %v8067_v28 }
 0x933   :  { %4731 = vmatpush1.bf16.msra.mxu0 %v8068_v30  ;;  %4795 = vmatpush1.bf16.msra.mxu1 %v8069_v34  ;;  %v8084_v34 = vld [vmem:[#allocation25_spill] sm:$0xff] }
 0x934   :  { %4733 = vmatprep.subr.bf16.mxu0 %v8070_v43  ;;  %4797 = vmatprep.subr.bf16.mxu1 %v8071_v31  ;;  %v8081_v43 = vld [vmem:[#allocation45_spill] sm:$0xff]  ;;  %v8082_v31 = vld [vmem:[#allocation16_spill] sm:$0xff] }
 0x937   :  { %4735 = vmatpush1.bf16.msra.mxu0 %v8072_v48  ;;  %4799 = vmatpush1.bf16.msra.mxu1 %v8073_v37  ;;  %v8083_v48 = vld [vmem:[#allocation17_spill] sm:$0xff] }
 0x938   :  { %4737 = vmatprep.subr.bf16.mxu0 %v8074_v22  ;;  %4801 = vmatprep.subr.bf16.mxu1 %v8075_v49 }
 0x93b   :  { %4739 = vmatpush1.bf16.msra.mxu0 %v8076_v61  ;;  %4803 = vmatpush1.bf16.msra.mxu1 %v8077_v41 }
 0x93c   :  { %4741 = vmatprep.subr.bf16.mxu0 %v8078_v40  ;;  %4805 = vmatprep.subr.bf16.mxu1 %v8079_v39  ;;  %v8085_v39 = vld [vmem:[#allocation23_spill] sm:$0xff] }
 0x93f   :  { %4743 = vmatpush1.bf16.msra.mxu0 %v8080_v36  ;;  %4807 = vmatpush1.bf16.msra.mxu1 %v8081_v43 }
 0x940   :  { %4809 = vmatprep.subr.bf16.mxu0 %v8082_v31  ;;  %4873 = vmatprep.subr.bf16.mxu1 %v8083_v48 }
 0x9d5   :  { %v2092_v37 = vpop.f32.mrb[18].mxu0  ;;  %v2163_v22 = vpop.f32.mrb[18].mxu1 }
 0x9d6   :  { %v2093_v49 = vadd.f32 %v2092_v37, %v8084_v34  ;;  %v2094_v30 = vpop.f32.mrb[19].mxu0  ;;  %v2165_v61 = vpop.f32.mrb[19].mxu1  ;;  %v2164_v43 = vadd.f32 %v2163_v22, %v7141_v51 }
 0x9d7   :  { %v2095_v41 = vadd.f32 %v2094_v30, %v7130_v1  ;;  %v2166_v36 = vadd.f32 %v2165_v61, %v8085_v39 }
 0x9d8   :  { %v3326_v28 = vmul.f32 -1.442695, %v2093_v49 }
 0x9d9   :  { %v3327_v40 = vmul.f32 -1.442695, %v2095_v41  ;;  %v3328_v20 = vmul.f32 -1.442695, %v2166_v36  ;;  %v8092_v36 = vld [vmem:[#allocation31_spill] sm:$0xff] }
 0x9da   :  { %5628 = vpow2.f32 %v3326_v28 }
 0x9db   :  { %5630 = vpow2.f32 %v3327_v40 }
 0x9dc   :  { %5632 = vpow2.f32 %v3328_v20 }
 0x9dd   :  { %5634 = vtanh.f32 %v2164_v43  ;;  %v8090_v43 = vld [vmem:[#allocation27_spill] sm:$0xff] }
 0x9e4   :  { %v5629_v31 = vpop.eup %5628 }
 0x9e5   :  { %v5631_v46 = vpop.eup %5630  ;;  %v2171_v48 = vadd.f32 1.0, %v5629_v31 }
 0x9e6   :  { %v2177_v54 = vadd.f32 1.0, %v5631_v46  ;;  %v5633_v37 = vpop.eup %5632  ;;  %v8086_v46 = vld [vmem:[#allocation29_spill] sm:$0xff] }
 0x9e7   :  { %5636 = vrcp.f32 %v2171_v48  ;;  %v5635_v34 = vpop.eup %5634  ;;  %v2184_v28 = vadd.f32 1.0, %v5633_v37  ;;  %v8091_v48 = vld [vmem:[#allocation35_spill] sm:$0xff] }
 0x9e8   :  { %5638 = vrcp.f32 %v2177_v54  ;;  %v8087_v54 = vld [vmem:[#allocation30_spill] sm:$0xff]  ;;  %v8093_v37 = vld [vmem:[#allocation39_spill] sm:$0xff] }
 0x9e9   :  { %5640 = vrcp.f32 %v2184_v28  ;;  %v8097_v28 = vld [vmem:[#allocation43_spill] sm:$0xff] }
 0x9f1   :  { %v5637_v30 = vpop.eup %5636 }
 0x9f2   :  { %v5639_v49 = vpop.eup %5638  ;;  %v2188_v41 = vmul.f32 %v5637_v30, %v5635_v34  ;;  %v8089_v34 = vld [vmem:[#allocation34_spill] sm:$0xff]  ;;  %v8094_v30 = vld [vmem:[#allocation33_spill] sm:$0xff] }
 0x9f3   :  { %v2187_v40 = vmul.f32 %v5639_v49, %v7144_v53  ;;  %v5641_v22 = vpop.eup %5640  ;;  %v8088_v53 = vld [vmem:[#allocation26_spill] sm:$0xff]  ;;  %v8095_v49 = vld [vmem:[#allocation40_spill] sm:$0xff] }
 0x9f5   :  { %v7218_v61 = vadd.f32 %v2188_v41, %v2187_v40  ;;  %v8096_v41 = vld [vmem:[#allocation37_spill] sm:$0xff]  ;;  %v8098_v40 = vld [vmem:[#allocation38_spill] sm:$0xff] }
 0x9f7   :  { %5642 = vtanh.f32 %v7218_v61 }
 0xa01   :  { %v5643_v31 = vpop.eup %5642 }
 0xa02   :  { %v2191_v20 = vmul.f32 %v5643_v31, %v5641_v22  ;;  %v8099_v22 = vld [vmem:[#allocation44_spill] sm:$0xff]  ;;  %v8100_v31 = vld [vmem:[#allocation41_spill] sm:$0xff] }
 0xa04   :  { %2256 = vmatprep.mubr.f32.mxu0 %v2191_v20  ;;  %2327 = vmatprep.mubr.f32.mxu1 %v2191_v20  ;;  %v8101_v20 = vld [vmem:[#allocation46_spill] sm:$0xff] }
 0xa05   :  { %2257 = vmatmul.mubr.f32.vlgmr.msra.gmra.mrb[20].mxu0 %v8086_v46  ;;  %2328 = vmatmul.mubr.f32.vlgmr.msra.gmra.mrb[20].mxu1 %v8086_v46  ;;  %v8102_v46 = vld [vmem:[#allocation42_spill] sm:$0xff] }
 0xa06   :  { %4811 = vmatpush1.bf16.msra.mxu0 %v6858_v2  ;;  %4875 = vmatpush1.bf16.msra.mxu1 %v6860_v15 }
 0xa07   :  { %4813 = vmatprep.subr.bf16.mxu0 %v6862_v24  ;;  %4877 = vmatprep.subr.bf16.mxu1 %v6864_v27 }
 0xa0a   :  { %4815 = vmatpush1.bf16.msra.mxu0 %v6868_v5  ;;  %4879 = vmatpush1.bf16.msra.mxu1 %v6870_v11 }
 0xa0b   :  { %4817 = vmatprep.subr.bf16.mxu0 %v6874_v23  ;;  %4881 = vmatprep.subr.bf16.mxu1 %v6876_v4 }
 0xa0e   :  { %4819 = vmatpush1.bf16.msra.mxu0 %v6882_v6  ;;  %4883 = vmatpush1.bf16.msra.mxu1 %v6884_v59 }
 0xa0f   :  { %4821 = vmatprep.subr.bf16.mxu0 %v6888_v63  ;;  %4885 = vmatprep.subr.bf16.mxu1 %v6890_v8 }
 0xa12   :  { %4823 = vmatpush1.bf16.msra.mxu0 %v6894_v12  ;;  %4887 = vmatpush1.bf16.msra.mxu1 %v6896_v57 }
 0xa13   :  { %4825 = vmatprep.subr.bf16.mxu0 %v6900_v42  ;;  %4889 = vmatprep.subr.bf16.mxu1 %v6902_v45 }
 0xa16   :  { %4827 = vmatpush1.bf16.msra.mxu0 %v6906_v19  ;;  %4891 = vmatpush1.bf16.msra.mxu1 %v6908_v62 }
 0xa17   :  { %4829 = vmatprep.subr.bf16.mxu0 %v6912_v7  ;;  %4893 = vmatprep.subr.bf16.mxu1 %v6914_v10 }
 0xa1a   :  { %4831 = vmatpush1.bf16.msra.mxu0 %v6918_v50  ;;  %4895 = vmatpush1.bf16.msra.mxu1 %v6920_v60 }
 0xa1b   :  { %4833 = vmatprep.subr.bf16.mxu0 %v6924_v21  ;;  %4897 = vmatprep.subr.bf16.mxu1 %v6926_v38 }
 0xa1e   :  { %4835 = vmatpush1.bf16.msra.mxu0 %v6930_v9  ;;  %4899 = vmatpush1.bf16.msra.mxu1 %v6932_v14 }
 0xa1f   :  { %4837 = vmatprep.subr.bf16.mxu0 %v6936_v26  ;;  %4901 = vmatprep.subr.bf16.mxu1 %v6938_v33 }
 0xa22   :  { %4839 = vmatpush1.bf16.msra.mxu0 %v6942_v55  ;;  %4903 = vmatpush1.bf16.msra.mxu1 %v6944_v58 }
 0xa23   :  { %4841 = vmatprep.subr.bf16.mxu0 %v6948_v18  ;;  %4905 = vmatprep.subr.bf16.mxu1 %v6950_v44 }
 0xa26   :  { %4843 = vmatpush1.bf16.msra.mxu0 %v6954_v56  ;;  %4907 = vmatpush1.bf16.msra.mxu1 %v6956_v0 }
 0xa27   :  { %4845 = vmatprep.subr.bf16.mxu0 %v6960_v29  ;;  %4909 = vmatprep.subr.bf16.mxu1 %v6962_v3 }
 0xa2a   :  { %4847 = vmatpush1.bf16.msra.mxu0 %v6966_v16  ;;  %4911 = vmatpush1.bf16.msra.mxu1 %v6968_v52 }
 0xa2b   :  { %4849 = vmatprep.subr.bf16.mxu0 %v6972_v32  ;;  %4913 = vmatprep.subr.bf16.mxu1 %v6974_v35 }
 0xa2e   :  { %4851 = vmatpush1.bf16.msra.mxu0 %v8041_v13  ;;  %4915 = vmatpush1.bf16.msra.mxu1 %v8042_v17 }
 0xa2f   :  { %4853 = vmatprep.subr.bf16.mxu0 %v8043_v25  ;;  %4917 = vmatprep.subr.bf16.mxu1 %v8044_v47 }
 0xa32   :  { %4855 = vmatpush1.bf16.msra.mxu0 %v8087_v54  ;;  %4919 = vmatpush1.bf16.msra.mxu1 %v8088_v53 }
 0xa33   :  { %4857 = vmatprep.subr.bf16.mxu0 %v8089_v34  ;;  %4921 = vmatprep.subr.bf16.mxu1 %v8090_v43 }
 0xa36   :  { %4859 = vmatpush1.bf16.msra.mxu0 %v8091_v48  ;;  %4923 = vmatpush1.bf16.msra.mxu1 %v8092_v36  ;;  %v8103_v36 = vld [vmem:[#allocation47_spill] sm:$0xff]  ;;  %v8107_v48 = vld [vmem:[#allocation25_spill] sm:$0xff] }
 0xa37   :  { %4861 = vmatprep.subr.bf16.mxu0 %v8093_v37  ;;  %4925 = vmatprep.subr.bf16.mxu1 %v8094_v30  ;;  %v8104_v37 = vld [vmem:[#allocation45_spill] sm:$0xff]  ;;  %v8105_v30 = vld [vmem:[#allocation16_spill] sm:$0xff] }
 0xa3a   :  { %4863 = vmatpush1.bf16.msra.mxu0 %v8095_v49  ;;  %4927 = vmatpush1.bf16.msra.mxu1 %v8096_v41  ;;  %v8106_v49 = vld [vmem:[#allocation17_spill] sm:$0xff] }
 0xa3b   :  { %4865 = vmatprep.subr.bf16.mxu0 %v8097_v28  ;;  %4929 = vmatprep.subr.bf16.mxu1 %v8098_v40 }
 0xa3e   :  { %4867 = vmatpush1.bf16.msra.mxu0 %v8099_v22  ;;  %4931 = vmatpush1.bf16.msra.mxu1 %v8100_v31 }
 0xa3f   :  { %4869 = vmatprep.subr.bf16.mxu0 %v8101_v20  ;;  %4933 = vmatprep.subr.bf16.mxu1 %v8102_v46 }
 0xa42   :  { %4871 = vmatpush1.bf16.msra.mxu0 %v8103_v36  ;;  %4935 = vmatpush1.bf16.msra.mxu1 %v8104_v37 }
 0xa43   :  { %4937 = vmatprep.subr.bf16.mxu0 %v8105_v30  ;;  %5001 = vmatprep.subr.bf16.mxu1 %v8106_v49 }
 0xad8   :  { %v2258_v41 = vpop.f32.mrb[20].mxu0  ;;  %v2329_v28 = vpop.f32.mrb[20].mxu1 }
 0xad9   :  { %v2259_v40 = vadd.f32 %v2258_v41, %v8107_v48  ;;  %v2260_v43 = vpop.f32.mrb[21].mxu0  ;;  %v2331_v22 = vpop.f32.mrb[21].mxu1  ;;  %v2330_v37 = vadd.f32 %v2329_v28, %v7141_v51 }
 0xada   :  { %v2261_v31 = vadd.f32 %v2260_v43, %v7130_v1  ;;  %v2332_v36 = vadd.f32 %v2331_v22, %v8085_v39 }
 0xadb   :  { %v3329_v34 = vmul.f32 -1.442695, %v2259_v40 }
 0xadc   :  { %v3330_v20 = vmul.f32 -1.442695, %v2261_v31  ;;  %v3331_v46 = vmul.f32 -1.442695, %v2332_v36 }
 0xadd   :  { %5644 = vpow2.f32 %v3329_v34 }
 0xade   :  { %5646 = vpow2.f32 %v3330_v20 }
 0xadf   :  { %5648 = vpow2.f32 %v3331_v46  ;;  %v8114_v46 = vld [vmem:[#allocation31_spill] sm:$0xff] }
 0xae0   :  { %5650 = vtanh.f32 %v2330_v37  ;;  %v8112_v37 = vld [vmem:[#allocation27_spill] sm:$0xff] }
 0xae7   :  { %v5645_v30 = vpop.eup %5644 }
 0xae8   :  { %v5647_v53 = vpop.eup %5646  ;;  %v2337_v49 = vadd.f32 1.0, %v5645_v30 }
 0xae9   :  { %v2343_v54 = vadd.f32 1.0, %v5647_v53  ;;  %v5649_v41 = vpop.eup %5648  ;;  %v8108_v53 = vld [vmem:[#allocation32_spill] sm:$0xff] }
 0xaea   :  { %5652 = vrcp.f32 %v2337_v49  ;;  %v5651_v48 = vpop.eup %5650  ;;  %v2350_v34 = vadd.f32 1.0, %v5649_v41  ;;  %v8113_v49 = vld [vmem:[#allocation35_spill] sm:$0xff] }
 0xaeb   :  { %5654 = vrcp.f32 %v2343_v54  ;;  %v8110_v54 = vld [vmem:[#allocation26_spill] sm:$0xff]  ;;  %v8115_v41 = vld [vmem:[#allocation39_spill] sm:$0xff] }
 0xaec   :  { %5656 = vrcp.f32 %v2350_v34  ;;  %v8119_v34 = vld [vmem:[#allocation43_spill] sm:$0xff] }
 0xaf4   :  { %v5653_v43 = vpop.eup %5652 }
 0xaf5   :  { %v5655_v40 = vpop.eup %5654  ;;  %v2354_v31 = vmul.f32 %v5653_v43, %v5651_v48  ;;  %v8111_v48 = vld [vmem:[#allocation34_spill] sm:$0xff]  ;;  %v8116_v43 = vld [vmem:[#allocation33_spill] sm:$0xff] }
 0xaf6   :  { %v2353_v20 = vmul.f32 %v5655_v40, %v7218_v61  ;;  %v5657_v36 = vpop.eup %5656  ;;  %v8109_v61 = vld [vmem:[#allocation30_spill] sm:$0xff]  ;;  %v8117_v40 = vld [vmem:[#allocation40_spill] sm:$0xff] }
 0xaf8   :  { %v7292_v22 = vadd.f32 %v2354_v31, %v2353_v20  ;;  %v8118_v31 = vld [vmem:[#allocation37_spill] sm:$0xff]  ;;  %v8120_v20 = vld [vmem:[#allocation38_spill] sm:$0xff] }
 0xafa   :  { %5658 = vtanh.f32 %v7292_v22 }
 0xb04   :  { %v5659_v30 = vpop.eup %5658 }
 0xb05   :  { %v2357_v28 = vmul.f32 %v5659_v30, %v5657_v36  ;;  %v8121_v36 = vld [vmem:[#allocation44_spill] sm:$0xff]  ;;  %v8122_v30 = vld [vmem:[#allocation41_spill] sm:$0xff] }
 0xb07   :  { %2422 = vmatprep.mubr.f32.mxu0 %v2357_v28  ;;  %2493 = vmatprep.mubr.f32.mxu1 %v2357_v28  ;;  %v8123_v28 = vld [vmem:[#allocation46_spill] sm:$0xff] }
 0xb08   :  { %2423 = vmatmul.mubr.f32.vlgmr.msra.gmra.mrb[22].mxu0 %v8108_v53  ;;  %2494 = vmatmul.mubr.f32.vlgmr.msra.gmra.mrb[22].mxu1 %v8108_v53  ;;  %v8124_v53 = vld [vmem:[#allocation42_spill] sm:$0xff] }
 0xb09   :  { %4939 = vmatpush1.bf16.msra.mxu0 %v6858_v2  ;;  %5003 = vmatpush1.bf16.msra.mxu1 %v6860_v15 }
 0xb0a   :  { %4941 = vmatprep.subr.bf16.mxu0 %v6862_v24  ;;  %5005 = vmatprep.subr.bf16.mxu1 %v6864_v27 }
 0xb0d   :  { %4943 = vmatpush1.bf16.msra.mxu0 %v6868_v5  ;;  %5007 = vmatpush1.bf16.msra.mxu1 %v6870_v11 }
 0xb0e   :  { %4945 = vmatprep.subr.bf16.mxu0 %v6874_v23  ;;  %5009 = vmatprep.subr.bf16.mxu1 %v6876_v4 }
 0xb11   :  { %4947 = vmatpush1.bf16.msra.mxu0 %v6882_v6  ;;  %5011 = vmatpush1.bf16.msra.mxu1 %v6884_v59 }
 0xb12   :  { %4949 = vmatprep.subr.bf16.mxu0 %v6888_v63  ;;  %5013 = vmatprep.subr.bf16.mxu1 %v6890_v8 }
 0xb15   :  { %4951 = vmatpush1.bf16.msra.mxu0 %v6894_v12  ;;  %5015 = vmatpush1.bf16.msra.mxu1 %v6896_v57 }
 0xb16   :  { %4953 = vmatprep.subr.bf16.mxu0 %v6900_v42  ;;  %5017 = vmatprep.subr.bf16.mxu1 %v6902_v45 }
 0xb19   :  { %4955 = vmatpush1.bf16.msra.mxu0 %v6906_v19  ;;  %5019 = vmatpush1.bf16.msra.mxu1 %v6908_v62 }
 0xb1a   :  { %4957 = vmatprep.subr.bf16.mxu0 %v6912_v7  ;;  %5021 = vmatprep.subr.bf16.mxu1 %v6914_v10 }
 0xb1d   :  { %4959 = vmatpush1.bf16.msra.mxu0 %v6918_v50  ;;  %5023 = vmatpush1.bf16.msra.mxu1 %v6920_v60 }
 0xb1e   :  { %4961 = vmatprep.subr.bf16.mxu0 %v6924_v21  ;;  %5025 = vmatprep.subr.bf16.mxu1 %v6926_v38 }
 0xb21   :  { %4963 = vmatpush1.bf16.msra.mxu0 %v6930_v9  ;;  %5027 = vmatpush1.bf16.msra.mxu1 %v6932_v14 }
 0xb22   :  { %4965 = vmatprep.subr.bf16.mxu0 %v6936_v26  ;;  %5029 = vmatprep.subr.bf16.mxu1 %v6938_v33 }
 0xb25   :  { %4967 = vmatpush1.bf16.msra.mxu0 %v6942_v55  ;;  %5031 = vmatpush1.bf16.msra.mxu1 %v6944_v58 }
 0xb26   :  { %4969 = vmatprep.subr.bf16.mxu0 %v6948_v18  ;;  %5033 = vmatprep.subr.bf16.mxu1 %v6950_v44 }
 0xb29   :  { %4971 = vmatpush1.bf16.msra.mxu0 %v6954_v56  ;;  %5035 = vmatpush1.bf16.msra.mxu1 %v6956_v0 }
 0xb2a   :  { %4973 = vmatprep.subr.bf16.mxu0 %v6960_v29  ;;  %5037 = vmatprep.subr.bf16.mxu1 %v6962_v3 }
 0xb2d   :  { %4975 = vmatpush1.bf16.msra.mxu0 %v6966_v16  ;;  %5039 = vmatpush1.bf16.msra.mxu1 %v6968_v52 }
 0xb2e   :  { %4977 = vmatprep.subr.bf16.mxu0 %v6972_v32  ;;  %5041 = vmatprep.subr.bf16.mxu1 %v6974_v35 }
 0xb31   :  { %4979 = vmatpush1.bf16.msra.mxu0 %v8041_v13  ;;  %5043 = vmatpush1.bf16.msra.mxu1 %v8042_v17 }
 0xb32   :  { %4981 = vmatprep.subr.bf16.mxu0 %v8043_v25  ;;  %5045 = vmatprep.subr.bf16.mxu1 %v8044_v47 }
 0xb35   :  { %4983 = vmatpush1.bf16.msra.mxu0 %v8109_v61  ;;  %5047 = vmatpush1.bf16.msra.mxu1 %v8110_v54 }
 0xb36   :  { %4985 = vmatprep.subr.bf16.mxu0 %v8111_v48  ;;  %5049 = vmatprep.subr.bf16.mxu1 %v8112_v37 }
 0xb39   :  { %4987 = vmatpush1.bf16.msra.mxu0 %v8113_v49  ;;  %5051 = vmatpush1.bf16.msra.mxu1 %v8114_v46  ;;  %v8125_v46 = vld [vmem:[#allocation47_spill] sm:$0xff]  ;;  %v8129_v49 = vld [vmem:[#allocation25_spill] sm:$0xff] }
 0xb3a   :  { %4989 = vmatprep.subr.bf16.mxu0 %v8115_v41  ;;  %5053 = vmatprep.subr.bf16.mxu1 %v8116_v43  ;;  %v8126_v41 = vld [vmem:[#allocation45_spill] sm:$0xff]  ;;  %v8127_v43 = vld [vmem:[#allocation16_spill] sm:$0xff] }
 0xb3d   :  { %4991 = vmatpush1.bf16.msra.mxu0 %v8117_v40  ;;  %5055 = vmatpush1.bf16.msra.mxu1 %v8118_v31  ;;  %v8128_v40 = vld [vmem:[#allocation17_spill] sm:$0xff] }
 0xb3e   :  { %4993 = vmatprep.subr.bf16.mxu0 %v8119_v34  ;;  %5057 = vmatprep.subr.bf16.mxu1 %v8120_v20 }
 0xb41   :  { %4995 = vmatpush1.bf16.msra.mxu0 %v8121_v36  ;;  %5059 = vmatpush1.bf16.msra.mxu1 %v8122_v30 }
 0xb42   :  { %4997 = vmatprep.subr.bf16.mxu0 %v8123_v28  ;;  %5061 = vmatprep.subr.bf16.mxu1 %v8124_v53 }
 0xb45   :  { %4999 = vmatpush1.bf16.msra.mxu0 %v8125_v46  ;;  %5063 = vmatpush1.bf16.msra.mxu1 %v8126_v41 }
 0xb46   :  { %5065 = vmatprep.subr.bf16.mxu0 %v8127_v43  ;;  %5129 = vmatprep.subr.bf16.mxu1 %v8128_v40 }
 0xbdb   :  { %v2424_v31 = vpop.f32.mrb[22].mxu0  ;;  %v2495_v34 = vpop.f32.mrb[22].mxu1 }
 0xbdc   :  { %v2425_v20 = vadd.f32 %v2424_v31, %v8129_v49  ;;  %v2426_v37 = vpop.f32.mrb[23].mxu0  ;;  %v2497_v36 = vpop.f32.mrb[23].mxu1  ;;  %v2496_v41 = vadd.f32 %v2495_v34, %v7141_v51 }
 0xbdd   :  { %v2427_v30 = vadd.f32 %v2426_v37, %v7130_v1  ;;  %v2498_v46 = vadd.f32 %v2497_v36, %v8085_v39 }
 0xbde   :  { %v3332_v48 = vmul.f32 -1.442695, %v2425_v20 }
 0xbdf   :  { %v3333_v28 = vmul.f32 -1.442695, %v2427_v30  ;;  %v3334_v53 = vmul.f32 -1.442695, %v2498_v46 }
 0xbe0   :  { %5660 = vpow2.f32 %v3332_v48 }
 0xbe1   :  { %5662 = vpow2.f32 %v3333_v28 }
 0xbe2   :  { %5664 = vpow2.f32 %v3334_v53  ;;  %v8136_v53 = vld [vmem:[#allocation31_spill] sm:$0xff] }
 0xbe3   :  { %5666 = vtanh.f32 %v2496_v41  ;;  %v8134_v41 = vld [vmem:[#allocation27_spill] sm:$0xff] }
 0xbea   :  { %v5661_v43 = vpop.eup %5660 }
 0xbeb   :  { %v5663_v54 = vpop.eup %5662  ;;  %v2503_v40 = vadd.f32 1.0, %v5661_v43 }
 0xbec   :  { %v2509_v61 = vadd.f32 1.0, %v5663_v54  ;;  %v5665_v31 = vpop.eup %5664  ;;  %v8130_v54 = vld [vmem:[#allocation36_spill] sm:$0xff] }
 0xbed   :  { %5668 = vrcp.f32 %v2503_v40  ;;  %v5667_v49 = vpop.eup %5666  ;;  %v2516_v48 = vadd.f32 1.0, %v5665_v31  ;;  %v8135_v40 = vld [vmem:[#allocation35_spill] sm:$0xff] }
 0xbee   :  { %5670 = vrcp.f32 %v2509_v61  ;;  %v8132_v61 = vld [vmem:[#allocation26_spill] sm:$0xff]  ;;  %v8137_v31 = vld [vmem:[#allocation39_spill] sm:$0xff] }
 0xbef   :  { %5672 = vrcp.f32 %v2516_v48  ;;  %v8141_v48 = vld [vmem:[#allocation43_spill] sm:$0xff] }
 0xbf7   :  { %v5669_v37 = vpop.eup %5668 }
 0xbf8   :  { %v5671_v20 = vpop.eup %5670  ;;  %v2520_v30 = vmul.f32 %v5669_v37, %v5667_v49  ;;  %v8133_v49 = vld [vmem:[#allocation34_spill] sm:$0xff]  ;;  %v8138_v37 = vld [vmem:[#allocation33_spill] sm:$0xff] }
 0xbf9   :  { %v2519_v28 = vmul.f32 %v5671_v20, %v7292_v22  ;;  %v5673_v46 = vpop.eup %5672  ;;  %v8131_v22 = vld [vmem:[#allocation30_spill] sm:$0xff]  ;;  %v8139_v20 = vld [vmem:[#allocation40_spill] sm:$0xff] }
 0xbfb   :  { %v7366_v36 = vadd.f32 %v2520_v30, %v2519_v28  ;;  %v8140_v30 = vld [vmem:[#allocation37_spill] sm:$0xff]  ;;  %v8142_v28 = vld [vmem:[#allocation38_spill] sm:$0xff] }
 0xbfd   :  { %5674 = vtanh.f32 %v7366_v36 }
 0xc07   :  { %v5675_v43 = vpop.eup %5674 }
 0xc08   :  { %v2523_v34 = vmul.f32 %v5675_v43, %v5673_v46  ;;  %v8143_v46 = vld [vmem:[#allocation44_spill] sm:$0xff]  ;;  %v8144_v43 = vld [vmem:[#allocation41_spill] sm:$0xff] }
 0xc0a   :  { %2588 = vmatprep.mubr.f32.mxu0 %v2523_v34  ;;  %2659 = vmatprep.mubr.f32.mxu1 %v2523_v34  ;;  %v8145_v34 = vld [vmem:[#allocation46_spill] sm:$0xff] }
 0xc0b   :  { %2589 = vmatmul.mubr.f32.vlgmr.msra.gmra.mrb[24].mxu0 %v8130_v54  ;;  %2660 = vmatmul.mubr.f32.vlgmr.msra.gmra.mrb[24].mxu1 %v8130_v54  ;;  %v8146_v54 = vld [vmem:[#allocation42_spill] sm:$0xff] }
 0xc0c   :  { %5067 = vmatpush1.bf16.msra.mxu0 %v6858_v2  ;;  %5131 = vmatpush1.bf16.msra.mxu1 %v6860_v15 }
 0xc0d   :  { %5069 = vmatprep.subr.bf16.mxu0 %v6862_v24  ;;  %5133 = vmatprep.subr.bf16.mxu1 %v6864_v27 }
 0xc10   :  { %5071 = vmatpush1.bf16.msra.mxu0 %v6868_v5  ;;  %5135 = vmatpush1.bf16.msra.mxu1 %v6870_v11 }
 0xc11   :  { %5073 = vmatprep.subr.bf16.mxu0 %v6874_v23  ;;  %5137 = vmatprep.subr.bf16.mxu1 %v6876_v4 }
 0xc14   :  { %5075 = vmatpush1.bf16.msra.mxu0 %v6882_v6  ;;  %5139 = vmatpush1.bf16.msra.mxu1 %v6884_v59 }
 0xc15   :  { %5077 = vmatprep.subr.bf16.mxu0 %v6888_v63  ;;  %5141 = vmatprep.subr.bf16.mxu1 %v6890_v8 }
 0xc18   :  { %5079 = vmatpush1.bf16.msra.mxu0 %v6894_v12  ;;  %5143 = vmatpush1.bf16.msra.mxu1 %v6896_v57 }
 0xc19   :  { %5081 = vmatprep.subr.bf16.mxu0 %v6900_v42  ;;  %5145 = vmatprep.subr.bf16.mxu1 %v6902_v45 }
 0xc1c   :  { %5083 = vmatpush1.bf16.msra.mxu0 %v6906_v19  ;;  %5147 = vmatpush1.bf16.msra.mxu1 %v6908_v62 }
 0xc1d   :  { %5085 = vmatprep.subr.bf16.mxu0 %v6912_v7  ;;  %5149 = vmatprep.subr.bf16.mxu1 %v6914_v10 }
 0xc20   :  { %5087 = vmatpush1.bf16.msra.mxu0 %v6918_v50  ;;  %5151 = vmatpush1.bf16.msra.mxu1 %v6920_v60 }
 0xc21   :  { %5089 = vmatprep.subr.bf16.mxu0 %v6924_v21  ;;  %5153 = vmatprep.subr.bf16.mxu1 %v6926_v38 }
 0xc24   :  { %5091 = vmatpush1.bf16.msra.mxu0 %v6930_v9  ;;  %5155 = vmatpush1.bf16.msra.mxu1 %v6932_v14 }
 0xc25   :  { %5093 = vmatprep.subr.bf16.mxu0 %v6936_v26  ;;  %5157 = vmatprep.subr.bf16.mxu1 %v6938_v33 }
 0xc28   :  { %5095 = vmatpush1.bf16.msra.mxu0 %v6942_v55  ;;  %5159 = vmatpush1.bf16.msra.mxu1 %v6944_v58 }
 0xc29   :  { %5097 = vmatprep.subr.bf16.mxu0 %v6948_v18  ;;  %5161 = vmatprep.subr.bf16.mxu1 %v6950_v44 }
 0xc2c   :  { %5099 = vmatpush1.bf16.msra.mxu0 %v6954_v56  ;;  %5163 = vmatpush1.bf16.msra.mxu1 %v6956_v0 }
 0xc2d   :  { %5101 = vmatprep.subr.bf16.mxu0 %v6960_v29  ;;  %5165 = vmatprep.subr.bf16.mxu1 %v6962_v3 }
 0xc30   :  { %5103 = vmatpush1.bf16.msra.mxu0 %v6966_v16  ;;  %5167 = vmatpush1.bf16.msra.mxu1 %v6968_v52 }
 0xc31   :  { %5105 = vmatprep.subr.bf16.mxu0 %v6972_v32  ;;  %5169 = vmatprep.subr.bf16.mxu1 %v6974_v35 }
 0xc34   :  { %5107 = vmatpush1.bf16.msra.mxu0 %v8041_v13  ;;  %5171 = vmatpush1.bf16.msra.mxu1 %v8042_v17 }
 0xc35   :  { %5109 = vmatprep.subr.bf16.mxu0 %v8043_v25  ;;  %5173 = vmatprep.subr.bf16.mxu1 %v8044_v47 }
 0xc38   :  { %5111 = vmatpush1.bf16.msra.mxu0 %v8131_v22  ;;  %5175 = vmatpush1.bf16.msra.mxu1 %v8132_v61 }
 0xc39   :  { %5113 = vmatprep.subr.bf16.mxu0 %v8133_v49  ;;  %5177 = vmatprep.subr.bf16.mxu1 %v8134_v41 }
 0xc3c   :  { %5115 = vmatpush1.bf16.msra.mxu0 %v8135_v40  ;;  %5179 = vmatpush1.bf16.msra.mxu1 %v8136_v53  ;;  %v8147_v53 = vld [vmem:[#allocation47_spill] sm:$0xff]  ;;  %v8151_v40 = vld [vmem:[#allocation25_spill] sm:$0xff] }
 0xc3d   :  { %5117 = vmatprep.subr.bf16.mxu0 %v8137_v31  ;;  %5181 = vmatprep.subr.bf16.mxu1 %v8138_v37  ;;  %v8148_v31 = vld [vmem:[#allocation45_spill] sm:$0xff]  ;;  %v8149_v37 = vld [vmem:[#allocation16_spill] sm:$0xff] }
 0xc40   :  { %5119 = vmatpush1.bf16.msra.mxu0 %v8139_v20  ;;  %5183 = vmatpush1.bf16.msra.mxu1 %v8140_v30  ;;  %v8150_v20 = vld [vmem:[#allocation17_spill] sm:$0xff] }
 0xc41   :  { %5121 = vmatprep.subr.bf16.mxu0 %v8141_v48  ;;  %5185 = vmatprep.subr.bf16.mxu1 %v8142_v28 }
 0xc44   :  { %5123 = vmatpush1.bf16.msra.mxu0 %v8143_v46  ;;  %5187 = vmatpush1.bf16.msra.mxu1 %v8144_v43 }
 0xc45   :  { %5125 = vmatprep.subr.bf16.mxu0 %v8145_v34  ;;  %5189 = vmatprep.subr.bf16.mxu1 %v8146_v54 }
 0xc48   :  { %5127 = vmatpush1.bf16.msra.mxu0 %v8147_v53  ;;  %5191 = vmatpush1.bf16.msra.mxu1 %v8148_v31 }
 0xc49   :  { %5193 = vmatprep.subr.bf16.mxu0 %v8149_v37  ;;  %5257 = vmatprep.subr.bf16.mxu1 %v8150_v20 }
 0xcde   :  { %v2590_v30 = vpop.f32.mrb[24].mxu0  ;;  %v2661_v48 = vpop.f32.mrb[24].mxu1 }
 0xcdf   :  { %v2591_v28 = vadd.f32 %v2590_v30, %v8151_v40  ;;  %v2592_v41 = vpop.f32.mrb[25].mxu0  ;;  %v2663_v46 = vpop.f32.mrb[25].mxu1  ;;  %v2662_v31 = vadd.f32 %v2661_v48, %v7141_v51 }
 0xce0   :  { %v2593_v43 = vadd.f32 %v2592_v41, %v7130_v1  ;;  %v2664_v53 = vadd.f32 %v2663_v46, %v8085_v39 }
 0xce1   :  { %v3335_v49 = vmul.f32 -1.442695, %v2591_v28 }
 0xce2   :  { %v3336_v34 = vmul.f32 -1.442695, %v2593_v43  ;;  %v3337_v54 = vmul.f32 -1.442695, %v2664_v53 }
 0xce3   :  { %5676 = vpow2.f32 %v3335_v49 }
 0xce4   :  { %5678 = vpow2.f32 %v3336_v34 }
 0xce5   :  { %5680 = vpow2.f32 %v3337_v54  ;;  %v8158_v54 = vld [vmem:[#allocation31_spill] sm:$0xff] }
 0xce6   :  { %5682 = vtanh.f32 %v2662_v31  ;;  %v8156_v31 = vld [vmem:[#allocation27_spill] sm:$0xff] }
 0xced   :  { %v5677_v37 = vpop.eup %5676 }
 0xcee   :  { %v5679_v61 = vpop.eup %5678  ;;  %v2669_v20 = vadd.f32 1.0, %v5677_v37 }
 0xcef   :  { %v2675_v22 = vadd.f32 1.0, %v5679_v61  ;;  %v5681_v30 = vpop.eup %5680  ;;  %v8152_v61 = vld [vmem:[#allocation15_spill] sm:$0xff] }
 0xcf0   :  { %5684 = vrcp.f32 %v2669_v20  ;;  %v5683_v40 = vpop.eup %5682  ;;  %v2682_v49 = vadd.f32 1.0, %v5681_v30  ;;  %v8157_v20 = vld [vmem:[#allocation35_spill] sm:$0xff] }
 0xcf1   :  { %5686 = vrcp.f32 %v2675_v22  ;;  %v8154_v22 = vld [vmem:[#allocation26_spill] sm:$0xff]  ;;  %v8159_v30 = vld [vmem:[#allocation39_spill] sm:$0xff] }
 0xcf2   :  { %5688 = vrcp.f32 %v2682_v49  ;;  %v8163_v49 = vld [vmem:[#allocation43_spill] sm:$0xff] }
 0xcfa   :  { %v5685_v41 = vpop.eup %5684 }
 0xcfb   :  { %v5687_v28 = vpop.eup %5686  ;;  %v2686_v43 = vmul.f32 %v5685_v41, %v5683_v40  ;;  %v8155_v40 = vld [vmem:[#allocation34_spill] sm:$0xff]  ;;  %v8160_v41 = vld [vmem:[#allocation33_spill] sm:$0xff] }
 0xcfc   :  { %v2685_v34 = vmul.f32 %v5687_v28, %v7366_v36  ;;  %v5689_v53 = vpop.eup %5688  ;;  %v8153_v36 = vld [vmem:[#allocation30_spill] sm:$0xff]  ;;  %v8161_v28 = vld [vmem:[#allocation40_spill] sm:$0xff] }
 0xcfe   :  { %v7440_v46 = vadd.f32 %v2686_v43, %v2685_v34  ;;  %v8162_v43 = vld [vmem:[#allocation37_spill] sm:$0xff]  ;;  %v8164_v34 = vld [vmem:[#allocation38_spill] sm:$0xff] }
 0xd00   :  { %5690 = vtanh.f32 %v7440_v46 }
 0xd0a   :  { %v5691_v37 = vpop.eup %5690 }
 0xd0b   :  { %v2689_v48 = vmul.f32 %v5691_v37, %v5689_v53  ;;  %v8165_v53 = vld [vmem:[#allocation44_spill] sm:$0xff]  ;;  %v8166_v37 = vld [vmem:[#allocation41_spill] sm:$0xff] }
 0xd0d   :  { %2754 = vmatprep.mubr.f32.mxu0 %v2689_v48  ;;  %2825 = vmatprep.mubr.f32.mxu1 %v2689_v48  ;;  %v8167_v48 = vld [vmem:[#allocation46_spill] sm:$0xff] }
 0xd0e   :  { %2755 = vmatmul.mubr.f32.vlgmr.msra.gmra.mrb[26].mxu0 %v8152_v61  ;;  %2826 = vmatmul.mubr.f32.vlgmr.msra.gmra.mrb[26].mxu1 %v8152_v61  ;;  %v8168_v61 = vld [vmem:[#allocation42_spill] sm:$0xff] }
 0xd0f   :  { %5195 = vmatpush1.bf16.msra.mxu0 %v6858_v2  ;;  %5259 = vmatpush1.bf16.msra.mxu1 %v6860_v15 }
 0xd10   :  { %5197 = vmatprep.subr.bf16.mxu0 %v6862_v24  ;;  %5261 = vmatprep.subr.bf16.mxu1 %v6864_v27 }
 0xd13   :  { %5199 = vmatpush1.bf16.msra.mxu0 %v6868_v5  ;;  %5263 = vmatpush1.bf16.msra.mxu1 %v6870_v11 }
 0xd14   :  { %5201 = vmatprep.subr.bf16.mxu0 %v6874_v23  ;;  %5265 = vmatprep.subr.bf16.mxu1 %v6876_v4 }
 0xd17   :  { %5203 = vmatpush1.bf16.msra.mxu0 %v6882_v6  ;;  %5267 = vmatpush1.bf16.msra.mxu1 %v6884_v59 }
 0xd18   :  { %5205 = vmatprep.subr.bf16.mxu0 %v6888_v63  ;;  %5269 = vmatprep.subr.bf16.mxu1 %v6890_v8 }
 0xd1b   :  { %5207 = vmatpush1.bf16.msra.mxu0 %v6894_v12  ;;  %5271 = vmatpush1.bf16.msra.mxu1 %v6896_v57 }
 0xd1c   :  { %5209 = vmatprep.subr.bf16.mxu0 %v6900_v42  ;;  %5273 = vmatprep.subr.bf16.mxu1 %v6902_v45 }
 0xd1f   :  { %5211 = vmatpush1.bf16.msra.mxu0 %v6906_v19  ;;  %5275 = vmatpush1.bf16.msra.mxu1 %v6908_v62 }
 0xd20   :  { %5213 = vmatprep.subr.bf16.mxu0 %v6912_v7  ;;  %5277 = vmatprep.subr.bf16.mxu1 %v6914_v10 }
 0xd23   :  { %5215 = vmatpush1.bf16.msra.mxu0 %v6918_v50  ;;  %5279 = vmatpush1.bf16.msra.mxu1 %v6920_v60 }
 0xd24   :  { %5217 = vmatprep.subr.bf16.mxu0 %v6924_v21  ;;  %5281 = vmatprep.subr.bf16.mxu1 %v6926_v38 }
 0xd27   :  { %5219 = vmatpush1.bf16.msra.mxu0 %v6930_v9  ;;  %5283 = vmatpush1.bf16.msra.mxu1 %v6932_v14 }
 0xd28   :  { %5221 = vmatprep.subr.bf16.mxu0 %v6936_v26  ;;  %5285 = vmatprep.subr.bf16.mxu1 %v6938_v33 }
 0xd2b   :  { %5223 = vmatpush1.bf16.msra.mxu0 %v6942_v55  ;;  %5287 = vmatpush1.bf16.msra.mxu1 %v6944_v58 }
 0xd2c   :  { %5225 = vmatprep.subr.bf16.mxu0 %v6948_v18  ;;  %5289 = vmatprep.subr.bf16.mxu1 %v6950_v44 }
 0xd2f   :  { %5227 = vmatpush1.bf16.msra.mxu0 %v6954_v56  ;;  %5291 = vmatpush1.bf16.msra.mxu1 %v6956_v0 }
 0xd30   :  { %5229 = vmatprep.subr.bf16.mxu0 %v6960_v29  ;;  %5293 = vmatprep.subr.bf16.mxu1 %v6962_v3 }
 0xd33   :  { %5231 = vmatpush1.bf16.msra.mxu0 %v6966_v16  ;;  %5295 = vmatpush1.bf16.msra.mxu1 %v6968_v52 }
 0xd34   :  { %5233 = vmatprep.subr.bf16.mxu0 %v6972_v32  ;;  %5297 = vmatprep.subr.bf16.mxu1 %v6974_v35 }
 0xd37   :  { %5235 = vmatpush1.bf16.msra.mxu0 %v8041_v13  ;;  %5299 = vmatpush1.bf16.msra.mxu1 %v8042_v17 }
 0xd38   :  { %5237 = vmatprep.subr.bf16.mxu0 %v8043_v25  ;;  %5301 = vmatprep.subr.bf16.mxu1 %v8044_v47 }
 0xd3b   :  { %5239 = vmatpush1.bf16.msra.mxu0 %v8153_v36  ;;  %5303 = vmatpush1.bf16.msra.mxu1 %v8154_v22 }
 0xd3c   :  { %5241 = vmatprep.subr.bf16.mxu0 %v8155_v40  ;;  %5305 = vmatprep.subr.bf16.mxu1 %v8156_v31 }
 0xd3f   :  { %5243 = vmatpush1.bf16.msra.mxu0 %v8157_v20  ;;  %5307 = vmatpush1.bf16.msra.mxu1 %v8158_v54  ;;  %v8169_v54 = vld [vmem:[#allocation47_spill] sm:$0xff]  ;;  %v8173_v20 = vld [vmem:[#allocation25_spill] sm:$0xff] }
 0xd40   :  { %5245 = vmatprep.subr.bf16.mxu0 %v8159_v30  ;;  %5309 = vmatprep.subr.bf16.mxu1 %v8160_v41  ;;  %v8170_v30 = vld [vmem:[#allocation45_spill] sm:$0xff]  ;;  %v8171_v41 = vld [vmem:[#allocation16_spill] sm:$0xff] }
 0xd43   :  { %5247 = vmatpush1.bf16.msra.mxu0 %v8161_v28  ;;  %5311 = vmatpush1.bf16.msra.mxu1 %v8162_v43  ;;  %v8172_v28 = vld [vmem:[#allocation17_spill] sm:$0xff] }
 0xd44   :  { %5249 = vmatprep.subr.bf16.mxu0 %v8163_v49  ;;  %5313 = vmatprep.subr.bf16.mxu1 %v8164_v34 }
 0xd47   :  { %5251 = vmatpush1.bf16.msra.mxu0 %v8165_v53  ;;  %5315 = vmatpush1.bf16.msra.mxu1 %v8166_v37 }
 0xd48   :  { %5253 = vmatprep.subr.bf16.mxu0 %v8167_v48  ;;  %5317 = vmatprep.subr.bf16.mxu1 %v8168_v61 }
 0xd4b   :  { %5255 = vmatpush1.bf16.msra.mxu0 %v8169_v54  ;;  %5319 = vmatpush1.bf16.msra.mxu1 %v8170_v30 }
 0xd4c   :  { %5321 = vmatprep.subr.bf16.mxu0 %v8171_v41  ;;  %5385 = vmatprep.subr.bf16.mxu1 %v8172_v28 }
 0xde1   :  { %v2756_v43 = vpop.f32.mrb[26].mxu0  ;;  %v2827_v49 = vpop.f32.mrb[26].mxu1 }
 0xde2   :  { %v2757_v34 = vadd.f32 %v2756_v43, %v8173_v20  ;;  %v2758_v31 = vpop.f32.mrb[27].mxu0  ;;  %v2829_v53 = vpop.f32.mrb[27].mxu1  ;;  %v2828_v30 = vadd.f32 %v2827_v49, %v7141_v51 }
 0xde3   :  { %v2759_v37 = vadd.f32 %v2758_v31, %v7130_v1  ;;  %v2830_v54 = vadd.f32 %v2829_v53, %v8085_v39 }
 0xde4   :  { %v3338_v40 = vmul.f32 -1.442695, %v2757_v34 }
 0xde5   :  { %v3339_v48 = vmul.f32 -1.442695, %v2759_v37  ;;  %v3340_v61 = vmul.f32 -1.442695, %v2830_v54 }
 0xde6   :  { %5692 = vpow2.f32 %v3338_v40 }
 0xde7   :  { %5694 = vpow2.f32 %v3339_v48 }
 0xde8   :  { %5696 = vpow2.f32 %v3340_v61 }
 0xde9   :  { %5698 = vtanh.f32 %v2828_v30  ;;  %v3189_v30 = vld [vmem:[#allocation8 + $0x8] sm:$0xff] }
 0xdf0   :  { %v5693_v41 = vpop.eup %5692 }
 0xdf1   :  { %v5695_v22 = vpop.eup %5694  ;;  %v2835_v28 = vadd.f32 1.0, %v5693_v41 }
 0xdf2   :  { %v2841_v36 = vadd.f32 1.0, %v5695_v22  ;;  %v5697_v43 = vpop.eup %5696  ;;  %v8174_v22 = vld [vmem:[#allocation18_spill] sm:$0xff] }
 0xdf3   :  { %5700 = vrcp.f32 %v2835_v28  ;;  %v5699_v20 = vpop.eup %5698  ;;  %v2848_v40 = vadd.f32 1.0, %v5697_v43  ;;  %v5868_v28 = vmov 0.0|0.0   ;;  %v3190_v43 = vld [vmem:[#allocation8 + $0x10] sm:$0xff] }
 0xdf4   :  { %5702 = vrcp.f32 %v2841_v36  ;;  %v8194_v36 = vld [vmem:[#allocation48_spill] sm:$0xff] }
 0xdf5   :  { %5704 = vrcp.f32 %v2848_v40  ;;  %v3193_v40 = vld [vmem:[#allocation8 + $0x28] sm:$0xff] }
 0xdfd   :  { %v5701_v31 = vpop.eup %5700 }
 0xdfe   :  { %v5703_v34 = vpop.eup %5702  ;;  %v2852_v37 = vmul.f32 %v5701_v31, %v5699_v20  ;;  %v3188_v20 = vld [vmem:[#allocation8] sm:$0xff]  ;;  %v3191_v31 = vld [vmem:[#allocation8 + $0x18] sm:$0xff] }
 0xdff   :  { %v2851_v48 = vmul.f32 %v5703_v34, %v7440_v46  ;;  %v5705_v54 = vpop.eup %5704  ;;  %v5449_v41 = vpack.c.bf16 %v3189_v30, %v3188_v20  ;;  %v5452_v34 = vpack.c.bf16 %v3191_v31, %v3190_v43 }
 0xe01   :  { %v7514_v53 = vadd.f32 %v2852_v37, %v2851_v48  ;;  %v3192_v37 = vld [vmem:[#allocation8 + $0x20] sm:$0xff] }
 0xe02   :  { %v5455_v48 = vpack.c.bf16 %v3193_v40, %v3192_v37 }
 0xe03   :  { %5706 = vtanh.f32 %v7514_v53 }
 0xe0d   :  { %v5707_v49 = vpop.eup %5706 }
 0xe0e   :  { %v2855_v61 = vmul.f32 %v5707_v49, %v5705_v54  ;;  %v3195_v54 = vld [vmem:[#allocation8 + $0x38] sm:$0xff] }
 0xe10   :  { %2920 = vmatprep.mubr.f32.mxu0 %v2855_v61  ;;  %2991 = vmatprep.mubr.f32.mxu1 %v2855_v61  ;;  %v3196_v61 = vld [vmem:[#allocation8 + $0x40] sm:$0xff] }
 0xe11   :  { %2921 = vmatmul.mubr.f32.vlgmr.msra.gmra.mrb[28].mxu0 %v8174_v22  ;;  %2992 = vmatmul.mubr.f32.vlgmr.msra.gmra.mrb[28].mxu1 %v8174_v22  ;;  %v3197_v22 = vld [vmem:[#allocation8 + $0x48] sm:$0xff] }
 0xe12   :  { %5323 = vmatpush1.bf16.msra.mxu0 %v6858_v2  ;;  %5387 = vmatpush1.bf16.msra.mxu1 %v6860_v15  ;;  %v8175_v2 = vld [vmem:[#allocation30_spill] sm:$0xff] }
 0xe13   :  { %5325 = vmatprep.subr.bf16.mxu0 %v6862_v24  ;;  %5389 = vmatprep.subr.bf16.mxu1 %v6864_v27  ;;  %v8176_v15 = vld [vmem:[#allocation26_spill] sm:$0xff]  ;;  %v8178_v27 = vld [vmem:[#allocation27_spill] sm:$0xff] }
 0xe14   :  { %v8177_v24 = vld [vmem:[#allocation34_spill] sm:$0xff] }
 0xe16   :  { %5327 = vmatpush1.bf16.msra.mxu0 %v6868_v5  ;;  %5391 = vmatpush1.bf16.msra.mxu1 %v6870_v11  ;;  %v8179_v5 = vld [vmem:[#allocation35_spill] sm:$0xff] }
 0xe17   :  { %5329 = vmatprep.subr.bf16.mxu0 %v6874_v23  ;;  %5393 = vmatprep.subr.bf16.mxu1 %v6876_v4  ;;  %v8180_v11 = vld [vmem:[#allocation31_spill] sm:$0xff]  ;;  %v8182_v4 = vld [vmem:[#allocation33_spill] sm:$0xff] }
 0xe18   :  { %v8181_v23 = vld [vmem:[#allocation39_spill] sm:$0xff] }
 0xe1a   :  { %5331 = vmatpush1.bf16.msra.mxu0 %v6882_v6  ;;  %5395 = vmatpush1.bf16.msra.mxu1 %v6884_v59  ;;  %v8183_v6 = vld [vmem:[#allocation40_spill] sm:$0xff]  ;;  %v8184_v59 = vld [vmem:[#allocation37_spill] sm:$0xff] }
 0xe1b   :  { %5333 = vmatprep.subr.bf16.mxu0 %v6888_v63  ;;  %5397 = vmatprep.subr.bf16.mxu1 %v6890_v8  ;;  %v8185_v63 = vld [vmem:[#allocation43_spill] sm:$0xff]  ;;  %v8186_v8 = vld [vmem:[#allocation38_spill] sm:$0xff] }
 0xe1e   :  { %5335 = vmatpush1.bf16.msra.mxu0 %v6894_v12  ;;  %5399 = vmatpush1.bf16.msra.mxu1 %v6896_v57  ;;  %v8187_v12 = vld [vmem:[#allocation44_spill] sm:$0xff]  ;;  %v8188_v57 = vld [vmem:[#allocation41_spill] sm:$0xff] }
 0xe1f   :  { %5337 = vmatprep.subr.bf16.mxu0 %v6900_v42  ;;  %5401 = vmatprep.subr.bf16.mxu1 %v6902_v45  ;;  %v8189_v42 = vld [vmem:[#allocation46_spill] sm:$0xff] }
 0xe20   :  { %v8190_v45 = vld [vmem:[#allocation42_spill] sm:$0xff] }
 0xe22   :  { %5339 = vmatpush1.bf16.msra.mxu0 %v6906_v19  ;;  %5403 = vmatpush1.bf16.msra.mxu1 %v6908_v62  ;;  %v8191_v19 = vld [vmem:[#allocation47_spill] sm:$0xff]  ;;  %v8192_v62 = vld [vmem:[#allocation45_spill] sm:$0xff] }
 0xe23   :  { %5341 = vmatprep.subr.bf16.mxu0 %v6912_v7  ;;  %5405 = vmatprep.subr.bf16.mxu1 %v6914_v10 }
 0xe26   :  { %5343 = vmatpush1.bf16.msra.mxu0 %v6918_v50  ;;  %5407 = vmatpush1.bf16.msra.mxu1 %v6920_v60  ;;  %v8193_v50 = vld [vmem:[#allocation25_spill] sm:$0xff] }
 0xe27   :  { %5345 = vmatprep.subr.bf16.mxu0 %v6924_v21  ;;  %5409 = vmatprep.subr.bf16.mxu1 %v6926_v38 }
 0xe2a   :  { %5347 = vmatpush1.bf16.msra.mxu0 %v6930_v9  ;;  %5411 = vmatpush1.bf16.msra.mxu1 %v6932_v14 }
 0xe2b   :  { %5349 = vmatprep.subr.bf16.mxu0 %v6936_v26  ;;  %5413 = vmatprep.subr.bf16.mxu1 %v6938_v33 }
 0xe2e   :  { %5351 = vmatpush1.bf16.msra.mxu0 %v6942_v55  ;;  %5415 = vmatpush1.bf16.msra.mxu1 %v6944_v58 }
 0xe2f   :  { %5353 = vmatprep.subr.bf16.mxu0 %v6948_v18  ;;  %5417 = vmatprep.subr.bf16.mxu1 %v6950_v44 }
 0xe32   :  { %5355 = vmatpush1.bf16.msra.mxu0 %v6954_v56  ;;  %5419 = vmatpush1.bf16.msra.mxu1 %v6956_v0 }
 0xe33   :  { %5357 = vmatprep.subr.bf16.mxu0 %v6960_v29  ;;  %5421 = vmatprep.subr.bf16.mxu1 %v6962_v3 }
 0xe36   :  { %5359 = vmatpush1.bf16.msra.mxu0 %v6966_v16  ;;  %5423 = vmatpush1.bf16.msra.mxu1 %v6968_v52 }
 0xe37   :  { %5361 = vmatprep.subr.bf16.mxu0 %v6972_v32  ;;  %5425 = vmatprep.subr.bf16.mxu1 %v6974_v35 }
 0xe3a   :  { %5363 = vmatpush1.bf16.msra.mxu0 %v8041_v13  ;;  %5427 = vmatpush1.bf16.msra.mxu1 %v8042_v17 }
 0xe3b   :  { %5365 = vmatprep.subr.bf16.mxu0 %v8043_v25  ;;  %5429 = vmatprep.subr.bf16.mxu1 %v8044_v47 }
 0xe3e   :  { %5367 = vmatpush1.bf16.msra.mxu0 %v8175_v2  ;;  %5431 = vmatpush1.bf16.msra.mxu1 %v8176_v15  ;;  %v5461_v2 = vpack.c.bf16 %v3197_v22, %v3196_v61  ;;  %v3198_v15 = vld [vmem:[#allocation8 + $0x50] sm:$0xff] }
 0xe3f   :  { %5369 = vmatprep.subr.bf16.mxu0 %v8177_v24  ;;  %5433 = vmatprep.subr.bf16.mxu1 %v8178_v27  ;;  %v3199_v24 = vld [vmem:[#allocation8 + $0x58] sm:$0xff]  ;;  %v3200_v27 = vld [vmem:[#allocation8 + $0x60] sm:$0xff] }
 0xe42   :  { %5371 = vmatpush1.bf16.msra.mxu0 %v8179_v5  ;;  %5435 = vmatpush1.bf16.msra.mxu1 %v8180_v11  ;;  %v5464_v5 = vpack.c.bf16 %v3199_v24, %v3198_v15  ;;  %v3201_v11 = vld [vmem:[#allocation8 + $0x68] sm:$0xff] }
 0xe43   :  { %5373 = vmatprep.subr.bf16.mxu0 %v8181_v23  ;;  %5437 = vmatprep.subr.bf16.mxu1 %v8182_v4  ;;  %v8195_v23 = vmov 0.0   ;;  %v5467_v4 = vpack.c.bf16 %v3201_v11, %v3200_v27 }
 0xe46   :  { %5375 = vmatpush1.bf16.msra.mxu0 %v8183_v6  ;;  %5439 = vmatpush1.bf16.msra.mxu1 %v8184_v59  ;;  %v3202_v6 = vld [vmem:[#allocation8 + $0x70] sm:$0xff]  ;;  %v3203_v59 = vld [vmem:[#allocation8 + $0x78] sm:$0xff] }
 0xe47   :  { %5377 = vmatprep.subr.bf16.mxu0 %v8185_v63  ;;  %5441 = vmatprep.subr.bf16.mxu1 %v8186_v8  ;;  %v5470_v63 = vpack.c.bf16 %v3203_v59, %v3202_v6 }
 0xe4a   :  { %5379 = vmatpush1.bf16.msra.mxu0 %v8187_v12  ;;  %5443 = vmatpush1.bf16.msra.mxu1 %v8188_v57 }
 0xe4b   :  { %5381 = vmatprep.subr.bf16.mxu0 %v8189_v42  ;;  %5445 = vmatprep.subr.bf16.mxu1 %v8190_v45 }
 0xe4e   :  { %5383 = vmatpush1.bf16.msra.mxu0 %v8191_v19  ;;  %5447 = vmatpush1.bf16.msra.mxu1 %v8192_v62 }
 0xe4f   :  { %5448 = vmatprep.subr.bf16.mxu0 %v5868_v28 }
 0xee4   :  { %v2922_v7 = vpop.f32.mrb[28].mxu0  ;;  %v2993_v10 = vpop.f32.mrb[28].mxu1 }
 0xee5   :  { %v2923_v60 = vadd.f32 %v2922_v7, %v8193_v50  ;;  %v2924_v21 = vpop.f32.mrb[29].mxu0  ;;  %v2995_v38 = vpop.f32.mrb[29].mxu1  ;;  %v2994_v58 = vadd.f32 %v2993_v10, %v7141_v51 }
 0xee6   :  { %v2925_v9 = vadd.f32 %v2924_v21, %v7130_v1  ;;  %v2996_v33 = vadd.f32 %v2995_v38, %v8085_v39 }
 0xee7   :  { %v3341_v14 = vmul.f32 -1.442695, %v2923_v60 }
 0xee8   :  { %v3342_v26 = vmul.f32 -1.442695, %v2925_v9  ;;  %v3343_v55 = vmul.f32 -1.442695, %v2996_v33 }
 0xee9   :  { %5708 = vpow2.f32 %v3341_v14 }
 0xeea   :  { %5710 = vpow2.f32 %v3342_v26 }
 0xeeb   :  { %5712 = vpow2.f32 %v3343_v55 }
 0xeec   :  { %5714 = vtanh.f32 %v2994_v58 }
 0xef3   :  { %v5709_v18 = vpop.eup %5708 }
 0xef4   :  { %v5711_v44 = vpop.eup %5710  ;;  %v3001_v56 = vadd.f32 1.0, %v5709_v18 }
 0xef5   :  { %v3007_v0 = vadd.f32 1.0, %v5711_v44  ;;  %v5713_v29 = vpop.eup %5712 }
 0xef6   :  { %5716 = vrcp.f32 %v3001_v56  ;;  %v5715_v3 = vpop.eup %5714  ;;  %v3014_v35 = vadd.f32 1.0, %v5713_v29  ;;  %v3347_v29 = vld [vmem:[%s7618_s6] ss:$0 sm:$0xff] }
 0xef7   :  { %5718 = vrcp.f32 %v3007_v0 }
 0xef8   :  { %5720 = vrcp.f32 %v3014_v35 }
 0xf00   :  { %v5717_v16 = vpop.eup %5716 }
 0xf01   :  { %v5719_v52 = vpop.eup %5718  ;;  %v3018_v32 = vmul.f32 %v5717_v16, %v5715_v3 }
 0xf02   :  { %v3017_v13 = vmul.f32 %v5719_v52, %v7514_v53  ;;  %v5721_v25 = vpop.eup %5720  ;;  %v3194_v53 = vld [vmem:[#allocation8 + $0x30] sm:$0xff] }
 0xf03   :  { %v5458_v49 = vpack.c.bf16 %v3195_v54, %v3194_v53 }
 0xf04   :  { %v7586_v17 = vadd.f32 %v3018_v32, %v3017_v13 }
 0xf06   :  { %5722 = vtanh.f32 %v7586_v17 }
 0xf10   :  { %v5723_v47 = vpop.eup %5722 }
 0xf11   :  { %v3021_v46 = vmul.f32 %v5723_v47, %v5721_v25 }
 0xf13   :  { %3086 = vmatprep.mubr.f32.mxu0 %v3021_v46  ;;  %3157 = vmatprep.mubr.f32.mxu1 %v3021_v46 }
 0xf14   :  { %3087 = vmatmul.mubr.f32.vlgmr.msra.gmra.mrb[30].mxu0 %v8194_v36  ;;  %3158 = vmatmul.mubr.f32.vlgmr.msra.gmra.mrb[30].mxu1 %v8194_v36 }
 0xf15   :  { %5450 = vmatpush3.bf16.msra.mxu0 %v5449_v41  ;;  %3397 = vmatprep.mubr.msk.f32.mxu0 %vm5869_vm14, %v8195_v23 }
 0xf16   :  { %5451 = vmatprep.subr.bf16.mxu0 %v5868_v28 }
 0xf19   :  { %5453 = vmatpush3.bf16.msra.mxu0 %v5452_v34 }
 0xf1a   :  { %5454 = vmatprep.subr.bf16.mxu0 %v5868_v28 }
 0xf1d   :  { %5456 = vmatpush3.bf16.msra.mxu0 %v5455_v48 }
 0xf1e   :  { %5457 = vmatprep.subr.bf16.mxu0 %v5868_v28 }
 0xf21   :  { %5459 = vmatpush3.bf16.msra.mxu0 %v5458_v49 }
 0xf22   :  { %5460 = vmatprep.subr.bf16.mxu0 %v5868_v28 }
 0xf25   :  { %5462 = vmatpush3.bf16.msra.mxu0 %v5461_v2 }
 0xf26   :  { %5463 = vmatprep.subr.bf16.mxu0 %v5868_v28 }
 0xf29   :  { %5465 = vmatpush3.bf16.msra.mxu0 %v5464_v5 }
 0xf2a   :  { %5466 = vmatprep.subr.bf16.mxu0 %v5868_v28 }
 0xf2d   :  { %5468 = vmatpush3.bf16.msra.mxu0 %v5467_v4 }
 0xf2e   :  { %5469 = vmatprep.subr.bf16.mxu0 %v5868_v28 }
 0xf31   :  { %5471 = vmatpush3.bf16.msra.mxu0 %v5470_v63 }
 0xfe7   :  { %v3088_v8 = vpop.f32.mrb[30].mxu0  ;;  %v3159_v12 = vpop.f32.mrb[30].mxu1 }
 0xfe8   :  { %v3089_v57 = vadd.f32 %v3088_v8, %v8193_v50  ;;  %v3090_v42 = vpop.f32.mrb[31].mxu0  ;;  %v3161_v45 = vpop.f32.mrb[31].mxu1  ;;  %v3160_v21 = vadd.f32 %v3159_v12, %v7141_v51 }
 0xfe9   :  { %v3091_v19 = vadd.f32 %v3090_v42, %v7130_v1  ;;  %v3162_v10 = vadd.f32 %v3161_v45, %v8085_v39 }
 0xfea   :  { %v3344_v62 = vmul.f32 -1.442695, %v3089_v57 }
 0xfeb   :  { %v3345_v7 = vmul.f32 -1.442695, %v3091_v19  ;;  %v3346_v60 = vmul.f32 -1.442695, %v3162_v10 }
 0xfec   :  { %5724 = vpow2.f32 %v3344_v62 }
 0xfed   :  { %5726 = vpow2.f32 %v3345_v7 }
 0xfee   :  { %5728 = vpow2.f32 %v3346_v60 }
 0xfef   :  { %5730 = vtanh.f32 %v3160_v21 }
 0xff6   :  { %v5725_v38 = vpop.eup %5724 }
 0xff7   :  { %v5727_v9 = vpop.eup %5726  ;;  %v3167_v14 = vadd.f32 1.0, %v5725_v38 }
 0xff8   :  { %v3173_v26 = vadd.f32 1.0, %v5727_v9  ;;  %v5729_v50 = vpop.eup %5728 }
 0xff9   :  { %5732 = vrcp.f32 %v3167_v14  ;;  %v5731_v33 = vpop.eup %5730  ;;  %v3180_v18 = vadd.f32 1.0, %v5729_v50 }
 0xffa   :  { %5734 = vrcp.f32 %v3173_v26 }
 0xffb   :  { %5736 = vrcp.f32 %v3180_v18 }
0x1003   :  { %v5733_v1 = vpop.eup %5732 }
0x1004   :  { %v5735_v55 = vpop.eup %5734  ;;  %v3184_v58 = vmul.f32 %v5733_v1, %v5731_v33 }
0x1005   :  { %v3183_v44 = vmul.f32 %v5735_v55, %v7586_v17  ;;  %v5737_v51 = vpop.eup %5736 }
0x1007   :  { %v3185_v39 = vadd.f32 %v3184_v58, %v3183_v44 }
0x1009   :  { %5738 = vtanh.f32 %v3185_v39 }
0x1013   :  { %v5739_v56 = vpop.eup %5738 }
0x1014   :  { %v3187_v0 = vmul.f32 %v5739_v56, %v5737_v51 }
0x1016   :  { %3398 = vmatmul.mubr.f32.vlgmr.msra.gmra.mrb[32].mxu0 %v3187_v0 }
0x10e9   :  { %v3277_v3 = vpop.f32.mrb[32].mxu0 }
0x10ea   :  { %v3278_v16 = vadd.f32 %v3347_v29, %v3277_v3  ;;  %v3399_v52 = vpop.f32.mrb[33].mxu0 }
0x10ec   :  { %3281 = vst [vmem:[#allocation10] sm:$0xff] %v3278_v16 }
0x10ed   :  { %5840 = shalt.err (!%p5837_p8)
}
0x10ee   :  { %s5841_s13 = scalar_lea.hbm %s7619_s7, 128 }
0x10ef   :  { %p5842_p9 = scmp.ne.s32.totalorder %s7619_s7, %s5841_s13  ;;  %p5845_p10 = scmp.lt.u32.totalorder %s5841_s13, %s7619_s7 }
0x10f1   :  { %p5847_p11 = pnand %p5845_p10, %p5842_p9 }
0x10f3   :  { %5850 = shalt.err (!%p5847_p11)
}
0x10f4   :  { %3291 = dma.vmem_to_hbm [thread:$0]  %s3289_s30, 128, %s7619_s7, [#allocation4]  }
0x10f5   :  { %5857 = dma.done.wait [#allocation4], 128  }
0x10f6   :  { %5858 = vsyncadd [#allocation4], 4294967168 }
0x10f7   :  { %3295 = vsyncpa [#allocation3], 1 }
0x10f8   :  { %3296 = vsyncpa [#allocation6], 1 }
0x10f9   :  { %3297 = vsyncpa [#allocation9], 1 }
0x10fa   :  { %3298 = vsyncpa [#allocation4], 1 }

</bundles_post_ra>
